<compile_context>
chip_gen: v7x
topology: tpu7x:2x2x1
jax: 0.10.0
libtpu: 0.0.40
codegen_flags: <defaults>
</compile_context>

<pallas_src>
import functools

import jax
import jax.numpy as jnp
from jax import lax
from jax.experimental import pallas as pl
from jax.experimental.pallas import tpu as pltpu


# --------------------------------------------------------------------------- #
# Small helpers
# --------------------------------------------------------------------------- #
def _round_up(x, m):
    return ((x + m - 1) // m) * m


def _tpu_generation():
    try:
        kind = jax.devices()[0].device_kind.lower()
    except Exception:
        return 0
    for g in (7, 6, 5, 4, 3, 2):
        if f"v{g}" in kind:
            return g
    return 0


def _vmem_limit(gen):
    # v4/v5e/v6e: 128 MiB physical VMEM -> generous budget.
    # v7x (and unknown chips): 64 MiB physical -> stay well under.
    return (96 << 20) if 3 <= gen <= 6 else (40 << 20)


def _pick_th(h, w, min_bands, m_target):
    """Pick a row-band height TH (a divisor of H) for the KxK conv kernel.

    Prefers the smallest TH with TH*w >= m_target (MXU-friendly M, max bands),
    subject (when it does not destroy M) to at least `min_bands` bands so both
    v7x TensorCores get work.
    """
    divs = [d for d in range(1, h + 1) if h % d == 0]
    allowed = [d for d in divs if h // d >= min_bands]
    if not allowed or max(allowed) * w < m_target // 2:
        allowed = divs
    good = [d for d in allowed if d * w >= m_target]
    if good:
        return min(good)
    return max(allowed)


# --------------------------------------------------------------------------- #
# Kernel 1: fused concat + matmul + bias + ReLU   (1x1 conv_concat)
# --------------------------------------------------------------------------- #
def _concat_matmul_kernel(*refs, n_feats):
    # refs = x_0..x_{F-1} (tm, Cf), w_0..w_{F-1} (Cf, tn), bias (1, tn), out (tm, tn)
    x_refs = refs[:n_feats]
    w_refs = refs[n_feats:2 * n_feats]
    b_ref = refs[2 * n_feats]
    o_ref = refs[2 * n_feats + 1]

    acc = None
    for f in range(n_feats):
        d = jnp.dot(x_refs[f][...], w_refs[f][...],
                    preferred_element_type=jnp.float32)
        acc = d if acc is None else acc + d
    o_ref[...] = jnp.maximum(acc + b_ref[...], 0.0).astype(o_ref.dtype)


def _fused_concat_matmul(feats2d, w_chunks, bias2d, *, out_dtype=jnp.bfloat16):
    """out = ReLU(concat(feats2d, axis=1) @ concat(w_chunks, axis=0) + bias)
    without materializing the concatenated activation in HBM.

    feats2d : list of [M, Cf] bf16   (channels innermost)
    w_chunks: list of [Cf, Cout] bf16 (BN scale folded in)
    bias2d  : [1, Cout] f32
    """
    M = feats2d[0].shape[0]
    Cout = w_chunks[0].shape[1]
    gen = _tpu_generation()

    # Large lane-dense M tile; v5e/v6e (128 MiB VMEM, single TC) go to 1024.
    tm = 1024 if 3 <= gen <= 6 else 512
    while tm > 8 and tm > M:
        tm //= 2
    if gen >= 7:
        # v7x only: keep >= 2 M tiles so both TensorCores get work.
        while tm > 256 and pl.cdiv(M, tm) < 2:
            tm //= 2

    # Lane-dense Cout tiling.  Pad Cout up to a multiple of 128 only when it is
    # already > 128 (padding a small Cout would multiply HBM store traffic).
    if Cout % 128 == 0:
        tn = 256 if Cout % 256 == 0 else 128
        cout_pad = Cout
    elif Cout > 128:
        cout_pad = _round_up(Cout, 128)
        tn = 128
        w_chunks = [jnp.pad(w, ((0, 0), (0, cout_pad - Cout))) for w in w_chunks]
        bias2d = jnp.pad(bias2d, ((0, 0), (0, cout_pad - Cout)))
    else:
        cout_pad = Cout
        tn = Cout

    nf = len(feats2d)
    grid = (pl.cdiv(M, tm), cout_pad // tn)   # ragged M tail handled by Pallas masking

    in_specs = []
    for f in feats2d:
        cf = f.shape[1]
        in_specs.append(pl.BlockSpec((tm, cf), lambda i, j: (i, 0)))
    for w in w_chunks:
        cf = w.shape[0]
        in_specs.append(pl.BlockSpec((cf, tn), lambda i, j: (0, j)))
    in_specs.append(pl.BlockSpec((1, tn), lambda i, j: (0, j)))

    out = pl.pallas_call(
        functools.partial(_concat_matmul_kernel, n_feats=nf),
        out_shape=jax.ShapeDtypeStruct((M, cout_pad), out_dtype),
        grid_spec=pltpu.PrefetchScalarGridSpec(
            num_scalar_prefetch=0,
            grid=grid,
            in_specs=in_specs,
            out_specs=pl.BlockSpec((tm, tn), lambda i, j: (i, j)),
        ),
        compiler_params=pltpu.CompilerParams(
            dimension_semantics=("parallel", "parallel"),
            vmem_limit_bytes=_vmem_limit(gen),
        ),
    )(*feats2d, *w_chunks, bias2d)
    return out if cout_pad == Cout else out[:, :Cout]


# --------------------------------------------------------------------------- #
# Kernel 2: KxK conv + bias + ReLU over a band of TH output rows
# --------------------------------------------------------------------------- #
def _conv_kxk_band_kernel(x_ref, w_ref, b_ref, o_ref, *, kh, kw, th, w8):
    # x_ref: (1, Hp, Wp8, Cin)   full padded image, VMEM-resident across bands
    # w_ref: (kh, kw, Cin, Cout) full weights, VMEM-resident (BN scale folded)
    # b_ref: (1, Cout) f32       folded BN bias
    # o_ref: (1, th, w8, Cout)   output band
    band = pl.program_id(1)
    row0 = band * th
    cin = x_ref.shape[-1]
    cout = w_ref.shape[-1]

    acc = None                                    # local f32 accumulator
    for dy in range(kh):                          # static unroll over all taps
        for dx in range(kw):
            tap = x_ref[0, pl.ds(row0 + dy, th), dx:dx + w8, :]   # (th, w8, Cin)
            # w8 % 8 == 0  ->  this reshape is layout preserving (no relayout).
            d = jnp.dot(tap.reshape(th * w8, cin), w_ref[dy, dx],
                        preferred_element_type=jnp.float32)
            acc = d if acc is None else acc + d

    y = jnp.maximum(acc + b_ref[...], 0.0)        # single epilogue, single store
    o_ref[0] = y.reshape(th, w8, cout).astype(o_ref.dtype)


def _conv_kxk_bias_relu(x_nhwc, w_hwio, bias2d, *, out_dtype=jnp.bfloat16):
    """Stride-1, 'same'-padded KxK conv + bias + ReLU (NHWC, bf16 in, f32 acc)."""
    N, H, W, Cin = x_nhwc.shape
    Kh, Kw, _, Cout = w_hwio.shape
    assert Kh % 2 == 1 and Kw % 2 == 1, "OsaBlock only uses odd kernel sizes"
    ph, pw = (Kh - 1) // 2, (Kw - 1) // 2

    # Round the kernel-internal output width up to a multiple of 8 so the
    # per-tap reshape never crosses (8,128) tile boundaries.
    w8 = _round_up(W, 8)
    # TODO(synk): the per-layer jnp.pad costs one extra activation HBM round
    # trip; it could be removed by emitting padded-layout outputs directly.
    xp = jnp.pad(x_nhwc, ((0, 0), (ph, ph), (pw, pw + (w8 - W)), (0, 0)))
    Hp = H + 2 * ph
    Wp8 = w8 + 2 * pw

    gen = _tpu_generation()
    m_target = 256 if gen >= 6 or gen == 0 else 128       # MXU M width (v5e: 128)
    min_bands = 2 if (gen >= 7 and N == 1) else 1         # feed both v7x cores
    th = _pick_th(H, w8, min_bands, m_target)
    grid = (N, H // th)

    kernel = functools.partial(_conv_kxk_band_kernel, kh=Kh, kw=Kw, th=th, w8=w8)
    out = pl.pallas_call(
        kernel,
        out_shape=jax.ShapeDtypeStruct((N, H, w8, Cout), out_dtype),
        grid_spec=pltpu.PrefetchScalarGridSpec(
            num_scalar_prefetch=0,
            grid=grid,
            in_specs=[
                # Whole padded image per n (fetched once per image, resident
                # across the band axis -> no halo re-read amplification).
                pl.BlockSpec((1, Hp, Wp8, Cin), lambda n, b: (n, 0, 0, 0)),
                # Full weight tensor, resident for the whole kernel.
                pl.BlockSpec((Kh, Kw, Cin, Cout), lambda n, b: (0, 0, 0, 0)),
                pl.BlockSpec((1, Cout), lambda n, b: (0, 0)),
            ],
            out_specs=pl.BlockSpec((1, th, w8, Cout), lambda n, b: (n, b, 0, 0)),
        ),
        compiler_params=pltpu.CompilerParams(
            dimension_semantics=("parallel", "parallel"),
            vmem_limit_bytes=_vmem_limit(gen),
        ),
    )(xp, w_hwio, bias2d)
    return out if w8 == W else out[:, :, :W, :]


# --------------------------------------------------------------------------- #
# ConvNormAct / OsaBlock glue (JAX wrappers)
# --------------------------------------------------------------------------- #
def _fold_bn(conv_w, gamma, beta, running_mean, running_var, *, eps=1e-5):
    """conv_w: [Cout, Cin, Kh, Kw] (PyTorch layout).  Returns
    (w_hwio bf16 with the BN scale folded in, bias [1, Cout] f32)."""
    scale = gamma / jnp.sqrt(running_var + eps)
    bias = (beta - running_mean * scale).astype(jnp.float32)
    w_hwio = jnp.transpose(conv_w, (2, 3, 1, 0)) * scale   # fold scale per Cout
    return w_hwio.astype(jnp.bfloat16), bias.reshape(1, -1)


def osa_block_forward(x_nchw, mid_params, concat_params, *, residual=False):
    """OsaBlock.forward (default config: depthwise=False, attn='', no conv_reduction).

    mid_params    : list of (conv_w, gamma, beta, running_mean, running_var) for
                    the layer_per_block 3x3 ConvNormActs (chained).
    concat_params : same tuple for the 1x1 conv_concat.
    """
    # TODO(synk): depthwise path (conv_reduction + SeparableConvNormAct) and the
    # optional 'ese' attention are not implemented; default OsaBlock doesn't use them.
    x_nhwc = jnp.transpose(x_nchw, (0, 2, 3, 1)).astype(jnp.bfloat16)
    N, H, W, _ = x_nhwc.shape

    feats = [x_nhwc]
    h = x_nhwc
    for p in mid_params:
        w_hwio, bias2d = _fold_bn(*p)
        h = _conv_kxk_bias_relu(h, w_hwio, bias2d)
        feats.append(h)

    # conv_concat: 1x1 conv over the channel concat, fused (no materialized cat).
    w_hwio, bias2d = _fold_bn(*concat_params)
    w2d = w_hwio.reshape(w_hwio.shape[2], w_hwio.shape[3])   # [Ccat, Cout]
    w_chunks, off = [], 0
    for f in feats:
        c = f.shape[-1]
        w_chunks.append(w2d[off:off + c])
        off += c
    M = N * H * W
    feats2d = [f.reshape(M, f.shape[-1]) for f in feats]     # free collapses
    out2d = _fused_concat_matmul(feats2d, w_chunks, bias2d)
    out = out2d.reshape(N, H, W, -1)

    if residual:
        assert out.shape[-1] == x_nhwc.shape[-1], \
            "OsaBlock residual requires in_chs == out_chs"
        out = out + x_nhwc
    return jnp.transpose(out, (0, 3, 1, 2)).astype(jnp.float32)


# --------------------------------------------------------------------------- #
# Main: small OsaBlock + reference check
# --------------------------------------------------------------------------- #
if __name__ == "__main__":
    key = jax.random.PRNGKey(0)

    # Small OsaBlock: in_chs=4, mid_chs=8, out_chs=16, layer_per_block=3, 16x16, batch 2.
    N, IN_CHS, MID_CHS, OUT_CHS, LAYERS, H, W = 2, 4, 8, 16, 3, 16, 16

    def make_cna_params(k, cin, cout, ksize):
        kw_, kg, kb, km, kv = jax.random.split(k, 5)
        conv_w = jax.random.normal(kw_, (cout, cin, ksize, ksize), jnp.float32) * 0.1
        gamma = jax.random.normal(kg, (cout,), jnp.float32) * 0.1 + 1.0
        beta = jax.random.normal(kb, (cout,), jnp.float32) * 0.1
        mean = jax.random.normal(km, (cout,), jnp.float32) * 0.1
        var = jax.random.uniform(kv, (cout,), jnp.float32) * 0.5 + 0.5
        return conv_w, gamma, beta, mean, var

    keys = jax.random.split(key, LAYERS + 2)
    x = jax.random.normal(keys[0], (N, IN_CHS, H, W), jnp.float32)

    mid_params = []
    cin = IN_CHS
    for i in range(LAYERS):
        mid_params.append(make_cna_params(keys[1 + i], cin, MID_CHS, 3))
        cin = MID_CHS
    concat_cin = IN_CHS + LAYERS * MID_CHS
    concat_params = make_cna_params(keys[-1], concat_cin, OUT_CHS, 1)

    out = osa_block_forward(x, mid_params, concat_params)
    out = jax.block_until_ready(out)
    assert out.shape == (N, OUT_CHS, H, W)

    # Reference: same bf16-quantized folded weights, lax convs with f32 accumulation.
    def ref_cna(x_nhwc, w_hwio, bias2d):
        kh, kw = w_hwio.shape[0], w_hwio.shape[1]
        ph, pw = (kh - 1) // 2, (kw - 1) // 2
        y = lax.conv_general_dilated(
            x_nhwc, w_hwio, window_strides=(1, 1),
            padding=((ph, ph), (pw, pw)),
            dimension_numbers=("NHWC", "HWIO", "NHWC"),
            preferred_element_type=jnp.float32)
        return jnp.maximum(y + bias2d.reshape(1, 1, 1, -1), 0.0).astype(jnp.bfloat16)

    xr = jnp.transpose(x, (0, 2, 3, 1)).astype(jnp.bfloat16)
    feats = [xr]
    hr = xr
    for p in mid_params:
        hr = ref_cna(hr, *_fold_bn(*p))
        feats.append(hr)
    ref = ref_cna(jnp.concatenate(feats, axis=-1), *_fold_bn(*concat_params))
    ref = jnp.transpose(ref, (0, 3, 1, 2)).astype(jnp.float32)

    err = float(jnp.max(jnp.abs(out - ref)))
    assert err < 3e-2, f"max abs err {err}"
    print("KERNEL_OK")
</pallas_src>

<mosaic_0001>
module attributes {stable_mosaic.version = 11 : i64} {
  func.func @_conv_kxk_band_kernel(%arg0: i32, %arg1: i32, %arg2: memref<1x18x18x4xbf16, #tpu.memory_space<vmem>>, %arg3: memref<3x3x4x8xbf16, #tpu.memory_space<vmem>>, %arg4: memref<1x8xf32, #tpu.memory_space<vmem>>, %arg5: memref<1x16x16x8xbf16, #tpu.memory_space<vmem>>) attributes {dimension_semantics = [#tpu.dimension_semantics<parallel>, #tpu.dimension_semantics<parallel>], iteration_bounds = array<i64: 2, 1>, scalar_prefetch = 0 : i64, scratch_operands = 0 : i64, tpu.core_type = #tpu.core_type<tc>, window_params = [{transform_indices = @transform_0, window_bounds = array<i64: 1, 18, 18, 4>}, {pipeline_mode = #tpu.pipeline_mode<synchronous>, transform_indices = @transform_1, window_bounds = array<i64: 3, 3, 4, 8>}, {pipeline_mode = #tpu.pipeline_mode<synchronous>, transform_indices = @transform_2, window_bounds = array<i64: 1, 8>}, {transform_indices = @transform_3, window_bounds = array<i64: 1, 16, 16, 8>}]} {
    %c16_i32 = arith.constant 16 : i32
    %0 = arith.muli %arg1, %c16_i32 : i32
    %c0_i32 = arith.constant 0 : i32
    %1 = arith.addi %0, %c0_i32 : i32
    %c0 = arith.constant 0 : index
    %2 = arith.index_cast %1 : i32 to index
    %c0_0 = arith.constant 0 : index
    %c0_1 = arith.constant 0 : index
    %3 = vector.load %arg2[%c0, %2, %c0_0, %c0_1] : memref<1x18x18x4xbf16, #tpu.memory_space<vmem>>, vector<1x16x16x4xbf16>
    %4 = vector.shape_cast %3 : vector<1x16x16x4xbf16> to vector<16x16x4xbf16>
    %5 = vector.shape_cast %4 : vector<16x16x4xbf16> to vector<256x4xbf16>
    %c0_2 = arith.constant 0 : index
    %c0_3 = arith.constant 0 : index
    %c0_4 = arith.constant 0 : index
    %c0_5 = arith.constant 0 : index
    %6 = vector.load %arg3[%c0_2, %c0_3, %c0_4, %c0_5] : memref<3x3x4x8xbf16, #tpu.memory_space<vmem>>, vector<1x1x4x8xbf16>
    %7 = vector.shape_cast %6 : vector<1x1x4x8xbf16> to vector<4x8xbf16>
    %cst = arith.constant dense<0.000000e+00> : vector<256x8xf32>
    %8 = tpu.matmul %5, %7, %cst {dimension_numbers = #tpu.dot_dimension_numbers<[1], [0], [0], [1], [0, 0, 1, 1], [], []>} : vector<256x4xbf16>, vector<4x8xbf16>, vector<256x8xf32> -> vector<256x8xf32>
    %c0_i32_6 = arith.constant 0 : i32
    %9 = arith.addi %0, %c0_i32_6 : i32
    %c0_7 = arith.constant 0 : index
    %10 = arith.index_cast %9 : i32 to index
    %c1 = arith.constant 1 : index
    %c0_8 = arith.constant 0 : index
    %11 = vector.load %arg2[%c0_7, %10, %c1, %c0_8] : memref<1x18x18x4xbf16, #tpu.memory_space<vmem>>, vector<1x16x16x4xbf16>
    %12 = vector.shape_cast %11 : vector<1x16x16x4xbf16> to vector<16x16x4xbf16>
    %13 = vector.shape_cast %12 : vector<16x16x4xbf16> to vector<256x4xbf16>
    %c0_9 = arith.constant 0 : index
    %c1_10 = arith.constant 1 : index
    %c0_11 = arith.constant 0 : index
    %c0_12 = arith.constant 0 : index
    %14 = vector.load %arg3[%c0_9, %c1_10, %c0_11, %c0_12] : memref<3x3x4x8xbf16, #tpu.memory_space<vmem>>, vector<1x1x4x8xbf16>
    %15 = vector.shape_cast %14 : vector<1x1x4x8xbf16> to vector<4x8xbf16>
    %cst_13 = arith.constant dense<0.000000e+00> : vector<256x8xf32>
    %16 = tpu.matmul %13, %15, %cst_13 {dimension_numbers = #tpu.dot_dimension_numbers<[1], [0], [0], [1], [0, 0, 1, 1], [], []>} : vector<256x4xbf16>, vector<4x8xbf16>, vector<256x8xf32> -> vector<256x8xf32>
    %17 = arith.addf %8, %16 : vector<256x8xf32>
    %c0_i32_14 = arith.constant 0 : i32
    %18 = arith.addi %0, %c0_i32_14 : i32
    %c0_15 = arith.constant 0 : index
    %19 = arith.index_cast %18 : i32 to index
    %c2 = arith.constant 2 : index
    %c0_16 = arith.constant 0 : index
    %20 = vector.load %arg2[%c0_15, %19, %c2, %c0_16] : memref<1x18x18x4xbf16, #tpu.memory_space<vmem>>, vector<1x16x16x4xbf16>
    %21 = vector.shape_cast %20 : vector<1x16x16x4xbf16> to vector<16x16x4xbf16>
    %22 = vector.shape_cast %21 : vector<16x16x4xbf16> to vector<256x4xbf16>
    %c0_17 = arith.constant 0 : index
    %c2_18 = arith.constant 2 : index
    %c0_19 = arith.constant 0 : index
    %c0_20 = arith.constant 0 : index
    %23 = vector.load %arg3[%c0_17, %c2_18, %c0_19, %c0_20] : memref<3x3x4x8xbf16, #tpu.memory_space<vmem>>, vector<1x1x4x8xbf16>
    %24 = vector.shape_cast %23 : vector<1x1x4x8xbf16> to vector<4x8xbf16>
    %cst_21 = arith.constant dense<0.000000e+00> : vector<256x8xf32>
    %25 = tpu.matmul %22, %24, %cst_21 {dimension_numbers = #tpu.dot_dimension_numbers<[1], [0], [0], [1], [0, 0, 1, 1], [], []>} : vector<256x4xbf16>, vector<4x8xbf16>, vector<256x8xf32> -> vector<256x8xf32>
    %26 = arith.addf %17, %25 : vector<256x8xf32>
    %c1_i32 = arith.constant 1 : i32
    %27 = arith.addi %0, %c1_i32 : i32
    %c0_22 = arith.constant 0 : index
    %28 = arith.index_cast %27 : i32 to index
    %c0_23 = arith.constant 0 : index
    %c0_24 = arith.constant 0 : index
    %29 = vector.load %arg2[%c0_22, %28, %c0_23, %c0_24] : memref<1x18x18x4xbf16, #tpu.memory_space<vmem>>, vector<1x16x16x4xbf16>
    %30 = vector.shape_cast %29 : vector<1x16x16x4xbf16> to vector<16x16x4xbf16>
    %31 = vector.shape_cast %30 : vector<16x16x4xbf16> to vector<256x4xbf16>
    %c1_25 = arith.constant 1 : index
    %c0_26 = arith.constant 0 : index
    %c0_27 = arith.constant 0 : index
    %c0_28 = arith.constant 0 : index
    %32 = vector.load %arg3[%c1_25, %c0_26, %c0_27, %c0_28] : memref<3x3x4x8xbf16, #tpu.memory_space<vmem>>, vector<1x1x4x8xbf16>
    %33 = vector.shape_cast %32 : vector<1x1x4x8xbf16> to vector<4x8xbf16>
    %cst_29 = arith.constant dense<0.000000e+00> : vector<256x8xf32>
    %34 = tpu.matmul %31, %33, %cst_29 {dimension_numbers = #tpu.dot_dimension_numbers<[1], [0], [0], [1], [0, 0, 1, 1], [], []>} : vector<256x4xbf16>, vector<4x8xbf16>, vector<256x8xf32> -> vector<256x8xf32>
    %35 = arith.addf %26, %34 : vector<256x8xf32>
    %c1_i32_30 = arith.constant 1 : i32
    %36 = arith.addi %0, %c1_i32_30 : i32
    %c0_31 = arith.constant 0 : index
    %37 = arith.index_cast %36 : i32 to index
    %c1_32 = arith.constant 1 : index
    %c0_33 = arith.constant 0 : index
    %38 = vector.load %arg2[%c0_31, %37, %c1_32, %c0_33] : memref<1x18x18x4xbf16, #tpu.memory_space<vmem>>, vector<1x16x16x4xbf16>
    %39 = vector.shape_cast %38 : vector<1x16x16x4xbf16> to vector<16x16x4xbf16>
    %40 = vector.shape_cast %39 : vector<16x16x4xbf16> to vector<256x4xbf16>
    %c1_34 = arith.constant 1 : index
    %c1_35 = arith.constant 1 : index
    %c0_36 = arith.constant 0 : index
    %c0_37 = arith.constant 0 : index
    %41 = vector.load %arg3[%c1_34, %c1_35, %c0_36, %c0_37] : memref<3x3x4x8xbf16, #tpu.memory_space<vmem>>, vector<1x1x4x8xbf16>
    %42 = vector.shape_cast %41 : vector<1x1x4x8xbf16> to vector<4x8xbf16>
    %cst_38 = arith.constant dense<0.000000e+00> : vector<256x8xf32>
    %43 = tpu.matmul %40, %42, %cst_38 {dimension_numbers = #tpu.dot_dimension_numbers<[1], [0], [0], [1], [0, 0, 1, 1], [], []>} : vector<256x4xbf16>, vector<4x8xbf16>, vector<256x8xf32> -> vector<256x8xf32>
    %44 = arith.addf %35, %43 : vector<256x8xf32>
    %c1_i32_39 = arith.constant 1 : i32
    %45 = arith.addi %0, %c1_i32_39 : i32
    %c0_40 = arith.constant 0 : index
    %46 = arith.index_cast %45 : i32 to index
    %c2_41 = arith.constant 2 : index
    %c0_42 = arith.constant 0 : index
    %47 = vector.load %arg2[%c0_40, %46, %c2_41, %c0_42] : memref<1x18x18x4xbf16, #tpu.memory_space<vmem>>, vector<1x16x16x4xbf16>
    %48 = vector.shape_cast %47 : vector<1x16x16x4xbf16> to vector<16x16x4xbf16>
    %49 = vector.shape_cast %48 : vector<16x16x4xbf16> to vector<256x4xbf16>
    %c1_43 = arith.constant 1 : index
    %c2_44 = arith.constant 2 : index
    %c0_45 = arith.constant 0 : index
    %c0_46 = arith.constant 0 : index
    %50 = vector.load %arg3[%c1_43, %c2_44, %c0_45, %c0_46] : memref<3x3x4x8xbf16, #tpu.memory_space<vmem>>, vector<1x1x4x8xbf16>
    %51 = vector.shape_cast %50 : vector<1x1x4x8xbf16> to vector<4x8xbf16>
    %cst_47 = arith.constant dense<0.000000e+00> : vector<256x8xf32>
    %52 = tpu.matmul %49, %51, %cst_47 {dimension_numbers = #tpu.dot_dimension_numbers<[1], [0], [0], [1], [0, 0, 1, 1], [], []>} : vector<256x4xbf16>, vector<4x8xbf16>, vector<256x8xf32> -> vector<256x8xf32>
    %53 = arith.addf %44, %52 : vector<256x8xf32>
    %c2_i32 = arith.constant 2 : i32
    %54 = arith.addi %0, %c2_i32 : i32
    %c0_48 = arith.constant 0 : index
    %55 = arith.index_cast %54 : i32 to index
    %c0_49 = arith.constant 0 : index
    %c0_50 = arith.constant 0 : index
    %56 = vector.load %arg2[%c0_48, %55, %c0_49, %c0_50] : memref<1x18x18x4xbf16, #tpu.memory_space<vmem>>, vector<1x16x16x4xbf16>
    %57 = vector.shape_cast %56 : vector<1x16x16x4xbf16> to vector<16x16x4xbf16>
    %58 = vector.shape_cast %57 : vector<16x16x4xbf16> to vector<256x4xbf16>
    %c2_51 = arith.constant 2 : index
    %c0_52 = arith.constant 0 : index
    %c0_53 = arith.constant 0 : index
    %c0_54 = arith.constant 0 : index
    %59 = vector.load %arg3[%c2_51, %c0_52, %c0_53, %c0_54] : memref<3x3x4x8xbf16, #tpu.memory_space<vmem>>, vector<1x1x4x8xbf16>
    %60 = vector.shape_cast %59 : vector<1x1x4x8xbf16> to vector<4x8xbf16>
    %cst_55 = arith.constant dense<0.000000e+00> : vector<256x8xf32>
    %61 = tpu.matmul %58, %60, %cst_55 {dimension_numbers = #tpu.dot_dimension_numbers<[1], [0], [0], [1], [0, 0, 1, 1], [], []>} : vector<256x4xbf16>, vector<4x8xbf16>, vector<256x8xf32> -> vector<256x8xf32>
    %62 = arith.addf %53, %61 : vector<256x8xf32>
    %c2_i32_56 = arith.constant 2 : i32
    %63 = arith.addi %0, %c2_i32_56 : i32
    %c0_57 = arith.constant 0 : index
    %64 = arith.index_cast %63 : i32 to index
    %c1_58 = arith.constant 1 : index
    %c0_59 = arith.constant 0 : index
    %65 = vector.load %arg2[%c0_57, %64, %c1_58, %c0_59] : memref<1x18x18x4xbf16, #tpu.memory_space<vmem>>, vector<1x16x16x4xbf16>
    %66 = vector.shape_cast %65 : vector<1x16x16x4xbf16> to vector<16x16x4xbf16>
    %67 = vector.shape_cast %66 : vector<16x16x4xbf16> to vector<256x4xbf16>
    %c2_60 = arith.constant 2 : index
    %c1_61 = arith.constant 1 : index
    %c0_62 = arith.constant 0 : index
    %c0_63 = arith.constant 0 : index
    %68 = vector.load %arg3[%c2_60, %c1_61, %c0_62, %c0_63] : memref<3x3x4x8xbf16, #tpu.memory_space<vmem>>, vector<1x1x4x8xbf16>
    %69 = vector.shape_cast %68 : vector<1x1x4x8xbf16> to vector<4x8xbf16>
    %cst_64 = arith.constant dense<0.000000e+00> : vector<256x8xf32>
    %70 = tpu.matmul %67, %69, %cst_64 {dimension_numbers = #tpu.dot_dimension_numbers<[1], [0], [0], [1], [0, 0, 1, 1], [], []>} : vector<256x4xbf16>, vector<4x8xbf16>, vector<256x8xf32> -> vector<256x8xf32>
    %71 = arith.addf %62, %70 : vector<256x8xf32>
    %c2_i32_65 = arith.constant 2 : i32
    %72 = arith.addi %0, %c2_i32_65 : i32
    %c0_66 = arith.constant 0 : index
    %73 = arith.index_cast %72 : i32 to index
    %c2_67 = arith.constant 2 : index
    %c0_68 = arith.constant 0 : index
    %74 = vector.load %arg2[%c0_66, %73, %c2_67, %c0_68] : memref<1x18x18x4xbf16, #tpu.memory_space<vmem>>, vector<1x16x16x4xbf16>
    %75 = vector.shape_cast %74 : vector<1x16x16x4xbf16> to vector<16x16x4xbf16>
    %76 = vector.shape_cast %75 : vector<16x16x4xbf16> to vector<256x4xbf16>
    %c2_69 = arith.constant 2 : index
    %c2_70 = arith.constant 2 : index
    %c0_71 = arith.constant 0 : index
    %c0_72 = arith.constant 0 : index
    %77 = vector.load %arg3[%c2_69, %c2_70, %c0_71, %c0_72] : memref<3x3x4x8xbf16, #tpu.memory_space<vmem>>, vector<1x1x4x8xbf16>
    %78 = vector.shape_cast %77 : vector<1x1x4x8xbf16> to vector<4x8xbf16>
    %cst_73 = arith.constant dense<0.000000e+00> : vector<256x8xf32>
    %79 = tpu.matmul %76, %78, %cst_73 {dimension_numbers = #tpu.dot_dimension_numbers<[1], [0], [0], [1], [0, 0, 1, 1], [], []>} : vector<256x4xbf16>, vector<4x8xbf16>, vector<256x8xf32> -> vector<256x8xf32>
    %80 = arith.addf %71, %79 : vector<256x8xf32>
    %c0_74 = arith.constant 0 : index
    %c0_75 = arith.constant 0 : index
    %81 = vector.load %arg4[%c0_74, %c0_75] : memref<1x8xf32, #tpu.memory_space<vmem>>, vector<1x8xf32>
    %82 = vector.broadcast %81 : vector<1x8xf32> to vector<256x8xf32>
    %83 = arith.addf %80, %82 : vector<256x8xf32>
    %cst_76 = arith.constant 0.000000e+00 : f32
    %84 = vector.broadcast %cst_76 : f32 to vector<256x8xf32>
    %85 = arith.maximumf %83, %84 : vector<256x8xf32>
    %86 = vector.shape_cast %85 : vector<256x8xf32> to vector<16x16x8xf32>
    %87 = arith.truncf %86 : vector<16x16x8xf32> to vector<16x16x8xbf16>
    %c0_77 = arith.constant 0 : index
    %c0_78 = arith.constant 0 : index
    %c0_79 = arith.constant 0 : index
    %c0_80 = arith.constant 0 : index
    %88 = vector.load %arg5[%c0_77, %c0_78, %c0_79, %c0_80] : memref<1x16x16x8xbf16, #tpu.memory_space<vmem>>, vector<1x16x16x8xbf16>
    %89 = vector.shape_cast %88 : vector<1x16x16x8xbf16> to vector<16x16x8xbf16>
    %90 = vector.shape_cast %87 : vector<16x16x8xbf16> to vector<1x16x16x8xbf16>
    tpu.vector_store %arg5[%c0_77, %c0_78, %c0_79, %c0_80], %90 {strides = array<i32>} : memref<1x16x16x8xbf16, #tpu.memory_space<vmem>>, vector<1x16x16x8xbf16>,
    return
  }
  func.func @transform_0(%arg0: i32, %arg1: i32) -> (i32, i32, i32, i32) {
    %c0_i32 = arith.constant 0 : i32
    %c0_i32_0 = arith.constant 0 : i32
    %c0_i32_1 = arith.constant 0 : i32
    %c0_i32_2 = arith.constant 0 : i32
    return %arg0, %c0_i32, %c0_i32_0, %c0_i32_1 : i32, i32, i32, i32
  }
  func.func @transform_1(%arg0: i32, %arg1: i32) -> (i32, i32, i32, i32) {
    %c0_i32 = arith.constant 0 : i32
    %c0_i32_0 = arith.constant 0 : i32
    %c0_i32_1 = arith.constant 0 : i32
    %c0_i32_2 = arith.constant 0 : i32
    %c0_i32_3 = arith.constant 0 : i32
    return %c0_i32, %c0_i32_0, %c0_i32_1, %c0_i32_2 : i32, i32, i32, i32
  }
  func.func @transform_2(%arg0: i32, %arg1: i32) -> (i32, i32) {
    %c0_i32 = arith.constant 0 : i32
    %c0_i32_0 = arith.constant 0 : i32
    %c0_i32_1 = arith.constant 0 : i32
    return %c0_i32, %c0_i32_0 : i32, i32
  }
  func.func @transform_3(%arg0: i32, %arg1: i32) -> (i32, i32, i32, i32) {
    %c0_i32 = arith.constant 0 : i32
    %c0_i32_0 = arith.constant 0 : i32
    %c0_i32_1 = arith.constant 0 : i32
    return %arg0, %arg1, %c0_i32, %c0_i32_0 : i32, i32, i32, i32
  }
}

</mosaic_0001>

<bundles_post_ra>
// kernel: tpu_custom_call.1
= control target key start
LH: loop header
LB: loop body
LE: loop exit
PB: predicated region body
PF: predicated region fallthrough
CT: control target
= control target key end

     0   :  { %s6608_s12 = smov 0   ;;  %s6610_s13 = smov 0   ;;  %s8463_s0 = inlined_call_operand.vmem [shape: bf16[2,18,18,4], index: 0, kind: input, shape index: {}]   ;;  %s8464_s1 = inlined_call_operand.vmem [shape: bf16[3,3,4,8], index: 1, kind: input, shape index: {}]   ;;  %s8465_s2 = inlined_call_operand.vmem [shape: f32[1,8], index: 2, kind: input, shape index: {}]   ;;  %s8466_s3 = inlined_call_operand.vmem [shape: bf16[2,16,16,8], index: 3, kind: output, shape index: {}]  }
   0x1   :  { %s6612_s14 = smov 0  }
   0x2 LB: > { %s25_s15 = sadd.s32 1, %s6582_s13  ;;  %p5099_p0 = scmp.ge.s32.totalorder %s6586_s14, 1  ;;  %s6586_s14 = sphi %s6612_s14, %s13_s14   ;;  %s6582_s13 = sphi %s6610_s13, %s8535_s13   ;;  %s6578_s12 = sphi %s6608_s12, %s8534_s12  }
   0x3   : > { %p27_p1 = scmp.ge.s32.totalorder %s25_s15, 2  ;;  %p151_p2 = scmp.lt.s32.totalorder %s6586_s14, 3 }
   0x5   : > { %s8537_s15 = smov (%p27_p1, %s25_s15), 0  ;;  %p152_p3 = pnand %p5099_p0, %p151_p2 }
   0x7   : > { %155 = sbr.rel (%p152_p3) target bundleno = 590 (0x24e), region = 32 }
   0xe   : > { %v5103_v0 = vld [vmem:[%s8464_s1 + $0x2] sm:$0x3]  ;;  %vm736_vm0 = vcmask 1041408   ;;  %v5330_v1 = vld [vmem:[%s8464_s1 + $0x8] sm:$0x3]  ;;  %p180_p4 = scmp.lt.s32.totalorder %s6578_s12, 1 }
   0xf   : > { %6424 = vmatprep.subr.msk.bf16.mxu1 %vm736_vm0, %v5103_v0  ;;  %6428 = vmatprep.subr.msk.bf16.mxu0 %vm736_vm0, %v5330_v1  ;;  %v738_v2 = vsel %vm736_vm0, %v5103_v0, 0  ;;  %v6636_v3 = vsel %vm736_vm0, %v5330_v1, 0  ;;  %v233_v4 = vld [vmem:[%s8464_s1] sm:$0x3]  ;;  %v5395_v5 = vld [vmem:[%s8464_s1 + $0xa] sm:$0x3] }
  0x10   : > { %8480 = vst [vmem:[#allocation2_spill] sm:$0xff] %v6636_v3  ;;  %5861 = vmatpush3.bf16.msra.mxu1 %v738_v2  ;;  %5997 = vmatpush3.bf16.msra.mxu0 %v6636_v3  ;;  %s8539_s12 = smov (!%p180_p4, %s6578_s12), 1  ;;  %vm250_vm1 = vsmask.f32 3328  ;;  %vm251_vm2 = vsmask.f32 7440 }
  0x11   : > { %6425 = vmatprep.subr.msk.bf16.mxu1 %vm736_vm0, %v233_v4  ;;  %6430 = vmatprep.subr.msk.bf16.mxu0 %vm736_vm0, %v5395_v5  ;;  %s6434_s24 = smul.u32 216, %s8539_s12  ;;  %vm687_vm3 = vcmask 31744   ;;  %v6666_v17 = vsel %vm736_vm0, %v233_v4, 0  ;;  %v6672_v26 = vld [vmem:[%s8464_s1 + $0xc] sm:$0x3]  ;;  %vm6679_vm4 = vmor %vm250_vm1, %vm251_vm2  ;;  %v6685_v37 = vsel %vm736_vm0, %v5395_v5, 0 }
  0x12   : > { %v6689_v41 = vsel %vm736_vm0, %v6672_v26, 0  ;;  %vm1241_vm5 = vcmask 1042432   ;;  %vm1242_vm6 = vcmask 1046532   ;;  %s5674_s21 = sshll.u32 %s8539_s12, 7  ;;  %vm4965_vm8 = vcmask 60416  }
  0x13   : > { %s6653_s27 = scalar_lea.vmem %s8463_s0, %s6434_s24  ;;  %vm6905_vm7 = vmor %vm1241_vm5, %vm1242_vm6  ;;  %s8353_s24 = scalar_lea.vmem %s8466_s3, %s5674_s21 }
  0x14   : > { %v201_v6 = vld [vmem:[%s6653_s27] sm:$0xf]  ;;  %v202_v7 = vld [vmem:[%s6653_s27 + $0x4] sm:$0xf]  ;;  %v234_v8 = vld [vmem:[%s6653_s27 + $0x8] sm:$0x1] }
  0x15   : > { %v254_v9 = vshrl.u32 %v201_v6, 16  ;;  %v257_v10 = vshll.u32 %v201_v6, 16  ;;  %v263_v11 = vshll.u32 %v202_v7, 16  ;;  %v267_v12 = vshrl.u32 %v202_v7, 16  ;;  %v5282_v13 = vld [vmem:[%s6653_s27 + $0xc] sm:$0xf] }
  0x16   : > { %v273_v14 = vshll.u32 %v234_v8, 16  ;;  %v6660_v15 = vld [vmem:[%s6653_s27 + $0x10] sm:$0xf]  ;;  %v6663_v16 = vld [vmem:[%s6653_s27 + $0x14] sm:$0x1]  ;;  %v2061_v23 = vshrl.u32 %v5282_v13, 16 }
  0x17   : > { %v256_v18 = vrot.slane %v254_v9, 4  ;;  %v259_v19 = vrot.slane %v257_v10, 5  ;;  %v265_v20 = vrot.slane %v263_v11, 5  ;;  %v269_v21 = vrot.slane %v267_v12, 4  ;;  %v203_v31 = vld [vmem:[%s6653_s27 + $0xc] sm:$0xf] }
  0x18   : > { %v275_v22 = vrot.slane %v273_v14, 5  ;;  %v2064_v24 = vshll.u32 %v5282_v13, 16  ;;  %v2070_v25 = vshll.u32 %v6660_v15, 16  ;;  %v2074_v29 = vshrl.u32 %v6660_v15, 16  ;;  %v204_v36 = vld [vmem:[%s6653_s27 + $0x10] sm:$0xf] }
  0x19   : > { %v260_v27 = vor.u32 %v259_v19, %v256_v18  ;;  %v270_v28 = vor.u32 %v269_v21, %v265_v20  ;;  %v2080_v30 = vshll.u32 %v6663_v16, 16  ;;  %v2063_v33 = vrot.slane %v2061_v23, 4  ;;  %v235_v44 = vld [vmem:[%s6653_s27 + $0x14] sm:$0x1]  ;;  %v5285_v55 = vld [vmem:[%s6653_s27 + $0x18] sm:$0xf] }
  0x1a   : > { %v2066_v34 = vrot.slane %v2064_v24, 5  ;;  %v2072_v35 = vrot.slane %v2070_v25, 5  ;;  %v2076_v40 = vrot.slane %v2074_v29, 4  ;;  %v278_v45 = vshrl.u32 %v203_v31, 16  ;;  %v6698_v60 = vld [vmem:[%s6653_s27 + $0x1c] sm:$0xf] }
  0x1b   : > { %v261_v38 = vrot.slane %v260_v27, 4  ;;  %v271_v39 = vrot.slane %v270_v28, 4  ;;  %v2082_v43 = vrot.slane %v2080_v30, 5  ;;  %v281_v46 = vshll.u32 %v203_v31, 16  ;;  %v6706_v1 = vld [vmem:[%s6653_s27 + $0x20] sm:$0x1] }
  0x1c   : > { %v2067_v42 = vor.u32 %v2066_v34, %v2063_v33  ;;  %v2077_v49 = vor.u32 %v2076_v40, %v2072_v35  ;;  %v287_v50 = vshll.u32 %v204_v36, 16  ;;  %v280_v53 = vrot.slane %v278_v45, 4  ;;  %v205_v18 = vld [vmem:[%s6653_s27 + $0x18] sm:$0xf]  ;;  %v206_v23 = vld [vmem:[%s6653_s27 + $0x1c] sm:$0xf] }
  0x1d   : > { %v266_v47 = vsel %vm6679_vm4, %v261_v38, %v265_v20  ;;  %v276_v48 = vsel %vm6679_vm4, %v271_v39, %v275_v22  ;;  %v283_v54 = vrot.slane %v281_v46, 5  ;;  %v291_v58 = vshrl.u32 %v204_v36, 16  ;;  %v236_v31 = vld [vmem:[%s6653_s27 + $0x20] sm:$0x1]  ;;  %v5288_v40 = vld [vmem:[%s6653_s27 + $0x24] sm:$0xf] }
  0x1e   : > { %v5104_v51 = vcombine.low %v266_v47, %v276_v48  ;;  %v2068_v52 = vrot.slane %v2067_v42, 4  ;;  %v2078_v56 = vrot.slane %v2077_v49, 4  ;;  %v289_v57 = vrot.slane %v287_v50, 5  ;;  %v6729_v46 = vld [vmem:[%s6653_s27 + $0x28] sm:$0xf] }
  0x1f   : > { %v297_v59 = vshll.u32 %v235_v44, 16  ;;  %v2804_v62 = vrot.slane %v6660_v15, 5  ;;  %v2807_v63 = vrot.slane %v6663_v16, 5  ;;  %v284_v0 = vor.u32 %v283_v54, %v280_v53  ;;  %v6738_v54 = vld [vmem:[%s6653_s27 + $0x2c] sm:$0x1] }
  0x20   : > { %5862 = vmatprep.mubr.msk.bf16.mxu1 %vm687_vm3, %v5104_v51  ;;  %v2073_v61 = vsel %vm6679_vm4, %v2068_v52, %v2072_v35  ;;  %v2083_v2 = vsel %vm6679_vm4, %v2078_v56, %v2082_v43  ;;  %v293_v4 = vrot.slane %v291_v58, 4  ;;  %v2085_v6 = vshrl.u32 %v5285_v55, 16  ;;  %v5184_v51 = vld [vmem:[%s8464_s1 + $0x4] sm:$0x3]  ;;  %v6938_v16 = vld [vmem:[%s6653_s27 + $0x7c] sm:$0xf] }
  0x21   : > { %v299_v5 = vrot.slane %v297_v59, 5  ;;  %v5331_v7 = vcombine.low %v2073_v61, %v2083_v2  ;;  %v285_v8 = vrot.slane %v284_v0, 4  ;;  %v2088_v9 = vshll.u32 %v5285_v55, 16  ;;  %v207_v0 = vld [vmem:[%s6653_s27 + $0x24] sm:$0xf] }
  0x22   : > { %v2094_v10 = vshll.u32 %v6698_v60, 16  ;;  %v294_v11 = vor.u32 %v293_v4, %v289_v57  ;;  %v2087_v12 = vrot.slane %v2085_v6, 4  ;;  %v2098_v13 = vshrl.u32 %v6698_v60, 16 }
  0x23   : > { %v2104_v14 = vshll.u32 %v6706_v1, 16  ;;  %5998 = vmatprep.mubr.msk.bf16.mxu0 %vm687_vm3, %v5331_v7  ;;  %v290_v19 = vsel %vm6679_vm4, %v285_v8, %v289_v57  ;;  %v2090_v20 = vrot.slane %v2088_v9, 5  ;;  %v2811_v22 = vrot.slane %v6698_v60, 5  ;;  %v208_v7 = vld [vmem:[%s6653_s27 + $0x28] sm:$0xf] }
  0x24   : > { %v2096_v21 = vrot.slane %v2094_v10, 5  ;;  %v295_v24 = vrot.slane %v294_v11, 4  ;;  %v2100_v25 = vrot.slane %v2098_v13, 4  ;;  %v2814_v28 = vrot.slane %v6706_v1, 5  ;;  %v237_v13 = vld [vmem:[%s6653_s27 + $0x2c] sm:$0x1] }
  0x25   : > { %v2106_v27 = vrot.slane %v2104_v14, 5  ;;  %v2091_v29 = vor.u32 %v2090_v20, %v2087_v12  ;;  %v6722_v30 = vrot.slane %v2811_v22, 4  ;;  %v302_v33 = vshrl.u32 %v205_v18, 16 }
  0x26   : > { %v305_v34 = vshll.u32 %v205_v18, 16  ;;  %v300_v35 = vsel %vm6679_vm4, %v295_v24, %v299_v5  ;;  %v2101_v36 = vor.u32 %v2100_v25, %v2096_v21  ;;  %v311_v38 = vshll.u32 %v206_v23, 16  ;;  %v5291_v24 = vld [vmem:[%s6653_s27 + $0x30] sm:$0xf] }
  0x27   : > { %v315_v39 = vshrl.u32 %v206_v23, 16  ;;  %v5105_v42 = vcombine.low %v290_v19, %v300_v35  ;;  %v2092_v43 = vrot.slane %v2091_v29, 4  ;;  %v304_v44 = vrot.slane %v302_v33, 4  ;;  %v6758_v33 = vld [vmem:[%s6653_s27 + $0x34] sm:$0xf] }
  0x28   : > { %v307_v45 = vrot.slane %v305_v34, 5  ;;  %v2102_v47 = vrot.slane %v2101_v36, 4  ;;  %v313_v48 = vrot.slane %v311_v38, 5  ;;  %v321_v50 = vshll.u32 %v236_v31, 16 }
  0x29   : > { %v317_v49 = vrot.slane %v315_v39, 4  ;;  %5863 = vmatmul.mubr.msk.bf16.vlgmr.msra.gmra.mrb[0].mxu1 %vm687_vm3, %v5105_v42  ;;  %v2097_v52 = vsel %vm6679_vm4, %v2092_v43, %v2096_v21  ;;  %v2109_v55 = vshrl.u32 %v5288_v40, 16  ;;  %v2112_v56 = vshll.u32 %v5288_v40, 16  ;;  %v6766_v40 = vld [vmem:[%s6653_s27 + $0x38] sm:$0x1] }
  0x2a   : > { %v308_v53 = vor.u32 %v307_v45, %v304_v44  ;;  %5895 = vmatpush3.bf16.msra.mxu1 %v6666_v17  ;;  %v2107_v57 = vsel %vm6679_vm4, %v2102_v47, %v2106_v27  ;;  %v323_v59 = vrot.slane %v321_v50, 5  ;;  %v2118_v61 = vshll.u32 %v6729_v46, 16 }
  0x2b   : > { %v318_v58 = vor.u32 %v317_v49, %v313_v48  ;;  %v5332_v2 = vcombine.low %v2097_v52, %v2107_v57  ;;  %v2111_v5 = vrot.slane %v2109_v55, 4  ;;  %v2114_v6 = vrot.slane %v2112_v56, 5  ;;  %6426 = vmatprep.subr.msk.bf16.mxu1 %vm736_vm0, %v5184_v51  ;;  %v209_v52 = vld [vmem:[%s6653_s27 + $0x30] sm:$0xf] }
  0x2c   : > { %v309_v4 = vrot.slane %v308_v53, 4  ;;  %v2120_v9 = vrot.slane %v2118_v61, 5  ;;  %v2122_v17 = vshrl.u32 %v6729_v46, 16  ;;  %v2128_v10 = vshll.u32 %v6738_v54, 16 }
  0x2d   : > { %v319_v8 = vrot.slane %v318_v58, 4  ;;  %5999 = vmatmul.mubr.msk.bf16.vlgmr.msra.gmra.mrb[0].mxu0 %vm687_vm3, %v5332_v2  ;;  %v2115_v12 = vor.u32 %v2114_v6, %v2111_v5  ;;  %v326_v14 = vshrl.u32 %v207_v0, 16  ;;  %v329_v18 = vshll.u32 %v207_v0, 16  ;;  %v210_v58 = vld [vmem:[%s6653_s27 + $0x34] sm:$0xf] }
  0x2e   : > { %v314_v11 = vsel %vm6679_vm4, %v309_v4, %v313_v48  ;;  %6031 = vmatpush3.bf16.msra.mxu0 %v6685_v37  ;;  %v2124_v20 = vrot.slane %v2122_v17, 4  ;;  %v2130_v21 = vrot.slane %v2128_v10, 5  ;;  %v335_v23 = vshll.u32 %v208_v7, 16  ;;  %v238_v4 = vld [vmem:[%s6653_s27 + $0x38] sm:$0x1] }
  0x2f   : > { %v324_v19 = vsel %vm6679_vm4, %v319_v8, %v323_v59  ;;  %v2116_v27 = vrot.slane %v2115_v12, 4  ;;  %v328_v29 = vrot.slane %v326_v14, 4  ;;  %v331_v31 = vrot.slane %v329_v18, 5  ;;  %6431 = vmatprep.subr.msk.bf16.mxu0 %vm736_vm0, %v6672_v26  ;;  %v5294_v12 = vld [vmem:[%s6653_s27 + $0x3c] sm:$0xf] }
  0x30   : > { %v5106_v25 = vcombine.low %v314_v11, %v324_v19  ;;  %v2125_v34 = vor.u32 %v2124_v20, %v2120_v9  ;;  %v337_v35 = vrot.slane %v335_v23, 5  ;;  %v339_v37 = vshrl.u32 %v208_v7, 16  ;;  %v6783_v20 = vld [vmem:[%s6653_s27 + $0x40] sm:$0xf] }
  0x31   : > { %v345_v36 = vshll.u32 %v237_v13, 16  ;;  %v2121_v38 = vsel %vm6679_vm4, %v2116_v27, %v2120_v9  ;;  %v332_v39 = vor.u32 %v331_v31, %v328_v29  ;;  %v2133_v42 = vshrl.u32 %v5291_v24, 16 }
  0x32   : > { %5866 = vmatprep.mubr.msk.bf16.mxu1 %vm687_vm3, %v5106_v25  ;;  %v2136_v43 = vshll.u32 %v5291_v24, 16  ;;  %v2126_v44 = vrot.slane %v2125_v34, 4  ;;  %v341_v45 = vrot.slane %v339_v37, 4  ;;  %v2142_v26 = vshll.u32 %v6758_v33, 16  ;;  %v6788_v34 = vld [vmem:[%s6653_s27 + $0x44] sm:$0x1] }
  0x33   : > { %v347_v47 = vrot.slane %v345_v36, 5  ;;  %v333_v48 = vrot.slane %v332_v39, 4  ;;  %v2135_v49 = vrot.slane %v2133_v42, 4  ;;  %v2146_v51 = vshrl.u32 %v6758_v33, 16  ;;  %v211_v42 = vld [vmem:[%s6653_s27 + $0x3c] sm:$0xf] }
  0x34   : > { %v2138_v50 = vrot.slane %v2136_v43, 5  ;;  %v2131_v53 = vsel %vm6679_vm4, %v2126_v44, %v2130_v21  ;;  %v342_v55 = vor.u32 %v341_v45, %v337_v35  ;;  %v2144_v56 = vrot.slane %v2142_v26, 5  ;;  %v212_v26 = vld [vmem:[%s6653_s27 + $0x40] sm:$0xf] }
  0x35   : > { %v2152_v57 = vshll.u32 %v6766_v40, 16  ;;  %v5333_v59 = vcombine.low %v2121_v38, %v2131_v53  ;;  %v338_v61 = vsel %vm6679_vm4, %v333_v48, %v337_v35  ;;  %v2148_v2 = vrot.slane %v2146_v51, 4 }
  0x36   : > { %v2139_v0 = vor.u32 %v2138_v50, %v2135_v49  ;;  %v343_v5 = vrot.slane %v342_v55, 4  ;;  %v350_v7 = vshrl.u32 %v209_v52, 16  ;;  %v353_v8 = vshll.u32 %v209_v52, 16 }
  0x37   : > { %v2154_v6 = vrot.slane %v2152_v57, 5  ;;  %6002 = vmatprep.mubr.msk.bf16.mxu0 %vm687_vm3, %v5333_v59  ;;  %v2149_v17 = vor.u32 %v2148_v2, %v2144_v56  ;;  %v359_v10 = vshll.u32 %v210_v58, 16  ;;  %v363_v11 = vshrl.u32 %v210_v58, 16  ;;  %v5297_v2 = vld [vmem:[%s6653_s27 + $0x48] sm:$0xf] }
  0x38   : > { %v2140_v9 = vrot.slane %v2139_v0, 4  ;;  %v348_v13 = vsel %vm6679_vm4, %v343_v5, %v347_v47  ;;  %v352_v14 = vrot.slane %v350_v7, 4  ;;  %v355_v18 = vrot.slane %v353_v8, 5  ;;  %v6806_v8 = vld [vmem:[%s6653_s27 + $0x4c] sm:$0xf] }
  0x39   : > { %v369_v19 = vshll.u32 %v238_v4, 16  ;;  %v5107_v21 = vcombine.low %v338_v61, %v348_v13  ;;  %v2150_v24 = vrot.slane %v2149_v17, 4  ;;  %v361_v25 = vrot.slane %v359_v10, 5  ;;  %v239_v61 = vld [vmem:[%s6653_s27 + $0x44] sm:$0x1] }
  0x3a   : > { %v2145_v23 = vsel %vm6679_vm4, %v2140_v9, %v2144_v56  ;;  %v356_v27 = vor.u32 %v355_v18, %v352_v14  ;;  %v365_v29 = vrot.slane %v363_v11, 4  ;;  %v2157_v35 = vshrl.u32 %v5294_v12, 16 }
  0x3b   : > { %v371_v31 = vrot.slane %v369_v19, 5  ;;  %5867 = vmatmul.mubr.msk.bf16.gmra.mrb[4].mxu1 %vm687_vm3, %v5107_v21  ;;  %v2155_v37 = vsel %vm6679_vm4, %v2150_v24, %v2154_v6  ;;  %v2160_v36 = vshll.u32 %v5294_v12, 16  ;;  %v2166_v38 = vshll.u32 %v6783_v20, 16 }
  0x3c   : > { %v2170_v39 = vshrl.u32 %v6783_v20, 16  ;;  %v5334_v43 = vcombine.low %v2145_v23, %v2155_v37  ;;  %v357_v44 = vrot.slane %v356_v27, 4  ;;  %v366_v45 = vor.u32 %v365_v29, %v361_v25  ;;  %v6814_v23 = vld [vmem:[%s6653_s27 + $0x50] sm:$0x1]  ;;  %v6818_v27 = vld [vmem:[%s6653_s27 + $0x48] sm:$0xf] }
  0x3d   : > { %v2159_v47 = vrot.slane %v2157_v35, 4  ;;  %v2162_v48 = vrot.slane %v2160_v36, 5  ;;  %v2168_v49 = vrot.slane %v2166_v38, 5  ;;  %v2176_v51 = vshll.u32 %v6788_v34, 16  ;;  %v6821_v36 = vld [vmem:[%s6653_s27 + $0x4c] sm:$0xf] }
  0x3e   : > { %v2172_v50 = vrot.slane %v2170_v39, 4  ;;  %6003 = vmatmul.mubr.msk.bf16.gmra.mrb[4].mxu0 %vm687_vm3, %v5334_v43  ;;  %v362_v52 = vsel %vm6679_vm4, %v357_v44, %v361_v25  ;;  %v367_v53 = vrot.slane %v366_v45, 4  ;;  %v374_v55 = vshrl.u32 %v211_v42, 16 }
  0x3f   : > { %v377_v56 = vshll.u32 %v211_v42, 16  ;;  %v2163_v57 = vor.u32 %v2162_v48, %v2159_v47  ;;  %v2178_v59 = vrot.slane %v2176_v51, 5  ;;  %v383_v0 = vshll.u32 %v212_v26, 16 }
  0x40   : > { %v2173_v58 = vor.u32 %v2172_v50, %v2168_v49  ;;  %v372_v4 = vsel %vm6679_vm4, %v367_v53, %v371_v31  ;;  %v376_v5 = vrot.slane %v374_v55, 4  ;;  %v387_v7 = vshrl.u32 %v212_v26, 16  ;;  %v240_v26 = vld [vmem:[%s6653_s27 + $0x50] sm:$0x1]  ;;  %v5300_v53 = vld [vmem:[%s6653_s27 + $0x54] sm:$0xf] }
  0x41   : > { %v379_v6 = vrot.slane %v377_v56, 5  ;;  %v5108_v9 = vcombine.low %v362_v52, %v372_v4  ;;  %v2164_v17 = vrot.slane %v2163_v57, 4  ;;  %v385_v11 = vrot.slane %v383_v0, 5  ;;  %v6837_v4 = vld [vmem:[%s6653_s27 + $0x58] sm:$0xf] }
  0x42   : > { %v2174_v10 = vrot.slane %v2173_v58, 4  ;;  %v389_v13 = vrot.slane %v387_v7, 4  ;;  %v393_v14 = vshll.u32 %v239_v61, 16  ;;  %v2181_v18 = vshrl.u32 %v5297_v2, 16 }
  0x43   : > { %v380_v12 = vor.u32 %v379_v6, %v376_v5  ;;  %5870 = vmatprep.mubr.msk.bf16.mxu1 %vm687_vm3, %v5108_v9  ;;  %v2169_v19 = vsel %vm6679_vm4, %v2164_v17, %v2168_v49  ;;  %v2184_v24 = vshll.u32 %v5297_v2, 16  ;;  %v2190_v25 = vshll.u32 %v6806_v8, 16 }
  0x44   : > { %v2179_v21 = vsel %vm6679_vm4, %v2174_v10, %v2178_v59  ;;  %v390_v35 = vor.u32 %v389_v13, %v385_v11  ;;  %v395_v37 = vrot.slane %v393_v14, 5  ;;  %v2183_v38 = vrot.slane %v2181_v18, 4 }
  0x45   : > { %v5335_v29 = vcombine.low %v2169_v19, %v2179_v21  ;;  %v381_v31 = vrot.slane %v380_v12, 4  ;;  %v2186_v39 = vrot.slane %v2184_v24, 5  ;;  %v2192_v42 = vrot.slane %v2190_v25, 5  ;;  %v6843_v12 = vld [vmem:[%s6653_s27 + $0x5c] sm:$0x1] }
  0x46   : > { %v2194_v43 = vshrl.u32 %v6806_v8, 16  ;;  %v391_v45 = vrot.slane %v390_v35, 4  ;;  %v2200_v47 = vshll.u32 %v6814_v23, 16  ;;  %v398_v48 = vshrl.u32 %v6818_v27, 16  ;;  %v6847_v24 = vld [vmem:[%s6653_s27 + $0x54] sm:$0xf] }
  0x47   : > { %6006 = vmatprep.mubr.msk.bf16.mxu0 %vm687_vm3, %v5335_v29  ;;  %v386_v44 = vsel %vm6679_vm4, %v381_v31, %v385_v11  ;;  %v2187_v49 = vor.u32 %v2186_v39, %v2183_v38  ;;  %v401_v51 = vshll.u32 %v6818_v27, 16  ;;  %v407_v52 = vshll.u32 %v6821_v36, 16 }
  0x48   : > { %v2196_v50 = vrot.slane %v2194_v43, 4  ;;  %v396_v55 = vsel %vm6679_vm4, %v391_v45, %v395_v37  ;;  %v2202_v56 = vrot.slane %v2200_v47, 5  ;;  %v400_v57 = vrot.slane %v398_v48, 4  ;;  %v6853_v37 = vld [vmem:[%s6653_s27 + $0x58] sm:$0xf] }
  0x49   : > { %v411_v58 = vshrl.u32 %v6821_v36, 16  ;;  %v5109_v59 = vcombine.low %v386_v44, %v396_v55  ;;  %v2188_v61 = vrot.slane %v2187_v49, 4  ;;  %v403_v2 = vrot.slane %v401_v51, 5 }
  0x4a   : > { %v2197_v0 = vor.u32 %v2196_v50, %v2192_v42  ;;  %v409_v5 = vrot.slane %v407_v52, 5  ;;  %v417_v7 = vshll.u32 %v240_v26, 16  ;;  %v2205_v9 = vshrl.u32 %v5300_v53, 16  ;;  %v241_v26 = vld [vmem:[%s6653_s27 + $0x5c] sm:$0x1] }
  0x4b   : > { %v413_v6 = vrot.slane %v411_v58, 4  ;;  %5871 = vmatmul.mubr.msk.bf16.gmra.mrb[8].mxu1 %vm687_vm3, %v5109_v59  ;;  %v2193_v17 = vsel %vm6679_vm4, %v2188_v61, %v2192_v42  ;;  %v404_v11 = vor.u32 %v403_v2, %v400_v57  ;;  %v2208_v13 = vshll.u32 %v5300_v53, 16  ;;  %v5303_v53 = vld [vmem:[%s6653_s27 + $0x60] sm:$0xf]  ;;  %v6867_v59 = vld [vmem:[%s6653_s27 + $0x64] sm:$0xf] }
  0x4c   : > { %v2198_v10 = vrot.slane %v2197_v0, 4  ;;  %v419_v18 = vrot.slane %v417_v7, 5  ;;  %v2207_v19 = vrot.slane %v2205_v9, 4  ;;  %v2214_v21 = vshll.u32 %v6837_v4, 16  ;;  %v6874_v9 = vld [vmem:[%s6653_s27 + $0x68] sm:$0x1] }
  0x4d   : > { %v414_v14 = vor.u32 %v413_v6, %v409_v5  ;;  %v405_v29 = vrot.slane %v404_v11, 4  ;;  %v2210_v31 = vrot.slane %v2208_v13, 5  ;;  %v2218_v35 = vshrl.u32 %v6837_v4, 16 }
  0x4e   : > { %v2203_v25 = vsel %vm6679_vm4, %v2198_v10, %v2202_v56  ;;  %v2216_v42 = vrot.slane %v2214_v21, 5  ;;  %v2224_v43 = vshll.u32 %v6843_v12, 16  ;;  %v422_v48 = vshrl.u32 %v6847_v24, 16 }
  0x4f   : > { %v5336_v38 = vcombine.low %v2193_v17, %v2203_v25  ;;  %v415_v39 = vrot.slane %v414_v14, 4  ;;  %v410_v44 = vsel %vm6679_vm4, %v405_v29, %v409_v5  ;;  %v2211_v45 = vor.u32 %v2210_v31, %v2207_v19  ;;  %v6878_v19 = vld [vmem:[%s6653_s27 + $0x60] sm:$0xf] }
  0x50   : > { %v2220_v47 = vrot.slane %v2218_v35, 4  ;;  %v2226_v50 = vrot.slane %v2224_v43, 5  ;;  %v425_v51 = vshll.u32 %v6847_v24, 16  ;;  %v431_v52 = vshll.u32 %v6853_v37, 16  ;;  %v6884_v35 = vld [vmem:[%s6653_s27 + $0x64] sm:$0xf] }
  0x51   : > { %6007 = vmatmul.mubr.msk.bf16.gmra.mrb[8].mxu0 %vm687_vm3, %v5336_v38  ;;  %v420_v49 = vsel %vm6679_vm4, %v415_v39, %v419_v18  ;;  %v2212_v56 = vrot.slane %v2211_v45, 4  ;;  %v424_v58 = vrot.slane %v422_v48, 4  ;;  %v435_v2 = vshrl.u32 %v6853_v37, 16 }
  0x52   : > { %v5110_v55 = vcombine.low %v410_v44, %v420_v49  ;;  %v2221_v57 = vor.u32 %v2220_v47, %v2216_v42  ;;  %v427_v61 = vrot.slane %v425_v51, 5  ;;  %v433_v0 = vrot.slane %v431_v52, 5 }
  0x53   : > { %v441_v5 = vshll.u32 %v241_v26, 16  ;;  %v2217_v6 = vsel %vm6679_vm4, %v2212_v56, %v2216_v42  ;;  %v2229_v17 = vshrl.u32 %v5303_v53, 16  ;;  %v2232_v10 = vshll.u32 %v5303_v53, 16 }
  0x54   : > { %5874 = vmatprep.mubr.msk.bf16.mxu1 %vm687_vm3, %v5110_v55  ;;  %v2222_v7 = vrot.slane %v2221_v57, 4  ;;  %v428_v11 = vor.u32 %v427_v61, %v424_v58  ;;  %v437_v13 = vrot.slane %v435_v2, 4  ;;  %v2238_v18 = vshll.u32 %v6867_v59, 16  ;;  %v5363_v58 = vld [vmem:[%s6653_s27 + $0xc] sm:$0xe] }
  0x55   : > { %v443_v14 = vrot.slane %v441_v5, 5  ;;  %v2231_v25 = vrot.slane %v2229_v17, 4  ;;  %v2234_v29 = vrot.slane %v2232_v10, 5  ;;  %v2242_v31 = vshrl.u32 %v6867_v59, 16 }
  0x56   : > { %v2227_v21 = vsel %vm6679_vm4, %v2222_v7, %v2226_v50  ;;  %v429_v39 = vrot.slane %v428_v11, 4  ;;  %v438_v42 = vor.u32 %v437_v13, %v433_v0  ;;  %v2240_v43 = vrot.slane %v2238_v18, 5  ;;  %v242_v50 = vld [vmem:[%s6653_s27 + $0x68] sm:$0x1] }
  0x57   : > { %v5337_v38 = vcombine.low %v2217_v6, %v2227_v21  ;;  %v2235_v44 = vor.u32 %v2234_v29, %v2231_v25  ;;  %v2244_v45 = vrot.slane %v2242_v31, 4  ;;  %v2248_v47 = vshll.u32 %v6874_v9, 16  ;;  %v6912_v29 = vld [vmem:[%s6653_s27 + $0x70] sm:$0xf] }
  0x58   : > { %v446_v26 = vshrl.u32 %v6878_v19, 16  ;;  %v434_v48 = vsel %vm6679_vm4, %v429_v39, %v433_v0  ;;  %v439_v49 = vrot.slane %v438_v42, 4  ;;  %v449_v51 = vshll.u32 %v6878_v19, 16  ;;  %v6899_v0 = vld [vmem:[%s6653_s27 + $0x6c] sm:$0xf] }
  0x59   : > { %6010 = vmatprep.mubr.msk.bf16.mxu0 %vm687_vm3, %v5337_v38  ;;  %v455_v52 = vshll.u32 %v6884_v35, 16  ;;  %v2236_v53 = vrot.slane %v2235_v44, 4  ;;  %v2245_v55 = vor.u32 %v2244_v45, %v2240_v43  ;;  %v2250_v56 = vrot.slane %v2248_v47, 5 }
  0x5a   : > { %v448_v57 = vrot.slane %v446_v26, 4  ;;  %v444_v61 = vsel %vm6679_vm4, %v439_v49, %v443_v14  ;;  %v451_v2 = vrot.slane %v449_v51, 5  ;;  %v459_v6 = vshrl.u32 %v6884_v35, 16  ;;  %v243_v26 = vld [vmem:[%s6653_s27 + $0x74] sm:$0x1] }
  0x5b   : > { %v457_v5 = vrot.slane %v455_v52, 5  ;;  %v5111_v7 = vcombine.low %v434_v48, %v444_v61  ;;  %v2241_v17 = vsel %vm6679_vm4, %v2236_v53, %v2240_v43  ;;  %v2246_v10 = vrot.slane %v2245_v55, 4  ;;  %v5364_v48 = vld [vmem:[%s6653_s27 + $0x18] sm:$0xe] }
  0x5c   : > { %v465_v11 = vshll.u32 %v242_v50, 16  ;;  %v452_v14 = vor.u32 %v451_v2, %v448_v57  ;;  %v461_v18 = vrot.slane %v459_v6, 4  ;;  %v5379_v21 = vrot.slane %v5363_v58, 9  ;;  %v6931_v53 = vld [vmem:[%s6653_s27 + $0x78] sm:$0xf] }
  0x5d   : > { %v2806_v25 = vrot.slane %v2804_v62, 4  ;;  %5875 = vmatmul.mubr.msk.bf16.gmra.mrb[12].mxu1 %vm687_vm3, %v5111_v7  ;;  %v2251_v31 = vsel %vm6679_vm4, %v2246_v10, %v2250_v56  ;;  %v470_v39 = vshrl.u32 %v6899_v0, 16  ;;  %v473_v42 = vshll.u32 %v6899_v0, 16  ;;  %v244_v57 = vld [vmem:[%s6653_s27 + $0x80] sm:$0x1] }
  0x5e   : > { %v467_v38 = vrot.slane %v465_v11, 5  ;;  %v5338_v43 = vcombine.low %v2241_v17, %v2251_v31  ;;  %v453_v44 = vrot.slane %v452_v14, 4  ;;  %v462_v45 = vor.u32 %v461_v18, %v457_v5  ;;  %v5365_v10 = vld [vmem:[%s6653_s27 + $0x24] sm:$0xe] }
  0x5f   : > { %v2805_v47 = vsel %vm6905_vm7, %v5379_v21, %v2804_v62  ;;  %v2808_v49 = vsel %vm6905_vm7, %v2806_v25, %v2807_v63  ;;  %v472_v50 = vrot.slane %v470_v39, 4  ;;  %v475_v51 = vrot.slane %v473_v42, 5  ;;  %v6957_v39 = vld [vmem:[%s6653_s27 + $0x84] sm:$0xf] }
  0x60   : > { %v479_v52 = vshll.u32 %v6912_v29, 16  ;;  %6011 = vmatmul.mubr.msk.bf16.gmra.mrb[12].mxu0 %vm687_vm3, %v5338_v43  ;;  %v458_v15 = vsel %vm6679_vm4, %v453_v44, %v457_v5  ;;  %v463_v62 = vrot.slane %v462_v45, 4  ;;  %v5396_v55 = vcombine.low %v2805_v47, %v2808_v49  ;;  %v6965_v43 = vld [vmem:[%s6653_s27 + $0x88] sm:$0xf] }
  0x61   : > { %v483_v56 = vshrl.u32 %v6912_v29, 16  ;;  %v476_v63 = vor.u32 %v475_v51, %v472_v50  ;;  %v489_v61 = vshll.u32 %v243_v26, 16  ;;  %v5380_v2 = vrot.slane %v5364_v48, 9 }
  0x62   : > { %v481_v58 = vrot.slane %v479_v52, 5  ;;  %v468_v6 = vsel %vm6679_vm4, %v463_v62, %v467_v38  ;;  %6032 = vmatprep.mubr.msk.bf16.mxu0 %vm687_vm3, %v5396_v55  ;;  %v2815_v5 = vsel %vm6905_vm7, %v6722_v30, %v2814_v28  ;;  %v494_v17 = vshrl.u32 %v6931_v53, 16  ;;  %v245_v52 = vld [vmem:[%s6653_s27 + $0x8c] sm:$0x1] }
  0x63   : > { %v485_v7 = vrot.slane %v483_v56, 4  ;;  %v5112_v11 = vcombine.low %v458_v15, %v468_v6  ;;  %v477_v14 = vrot.slane %v476_v63, 4  ;;  %v491_v18 = vrot.slane %v489_v61, 5 }
  0x64   : > { %v2812_v21 = vsel %vm6905_vm7, %v5380_v2, %v2811_v22  ;;  %v496_v38 = vrot.slane %v494_v17, 4  ;;  %v497_v1 = vshll.u32 %v6931_v53, 16  ;;  %v503_v30 = vshll.u32 %v6938_v16, 16  ;;  %v6970_v22 = vld [vmem:[%s8464_s1 + $0xe] sm:$0x3] }
  0x65   : > { %v486_v25 = vor.u32 %v485_v7, %v481_v58  ;;  %v5397_v31 = vcombine.low %v2812_v21, %v2815_v5  ;;  %5878 = vmatprep.mubr.msk.bf16.mxu1 %vm687_vm3, %v5112_v11  ;;  %v482_v28 = vsel %vm6679_vm4, %v477_v14, %v481_v58  ;;  %v507_v60 = vshrl.u32 %v6938_v16, 16  ;;  %v6989_v5 = vld [vmem:[%s6653_s27 + $0x90] sm:$0xf] }
  0x66   : > { %v513_v42 = vshll.u32 %v244_v57, 16  ;;  %v499_v45 = vrot.slane %v497_v1, 5  ;;  %v5381_v47 = vrot.slane %v5365_v10, 9  ;;  %v2818_v26 = vrot.slane %v6729_v46, 5  ;;  %v5366_v57 = vld [vmem:[%s6653_s27 + $0x30] sm:$0xe] }
  0x67   : > { %v487_v44 = vrot.slane %v486_v25, 4  ;;  %v505_v48 = vrot.slane %v503_v30, 5  ;;  %v509_v49 = vrot.slane %v507_v60, 4  ;;  %v2821_v51 = vrot.slane %v6738_v54, 5  ;;  %v7001_v30 = vld [vmem:[%s6653_s27 + $0x94] sm:$0xf] }
  0x68   : > { %v515_v50 = vrot.slane %v513_v42, 5  ;;  %6033 = vmatmul.mubr.msk.bf16.vlgmr.msra.gmra.mrb[0].mxu0 %vm687_vm3, %v5397_v31  ;;  %v500_v62 = vor.u32 %v499_v45, %v496_v38  ;;  %v2819_v55 = vsel %vm6905_vm7, %v5381_v47, %v2818_v26  ;;  %v2820_v56 = vrot.slane %v2818_v26, 4  ;;  %v246_v60 = vld [vmem:[%s6653_s27 + $0x98] sm:$0x1]  ;;  %v5367_v26 = vld [vmem:[%s6653_s27 + $0x3c] sm:$0xe] }
  0x69   : > { %v492_v15 = vsel %vm6679_vm4, %v487_v44, %v491_v18  ;;  %6065 = vmatpush3.bf16.msra.mxu0 %v6689_v41  ;;  %v510_v46 = vor.u32 %v509_v49, %v505_v48  ;;  %v518_v58 = vshrl.u32 %v6957_v39, 16  ;;  %v521_v54 = vshll.u32 %v6957_v39, 16 }
  0x6a   : > { %v5113_v63 = vcombine.low %v482_v28, %v492_v15  ;;  %v501_v61 = vrot.slane %v500_v62, 4  ;;  %v2822_v2 = vsel %vm6905_vm7, %v2820_v56, %v2821_v51  ;;  %v527_v6 = vshll.u32 %v6965_v43, 16  ;;  %6432 = vmatprep.subr.msk.bf16.mxu0 %vm736_vm0, %v6970_v22 }
  0x6b   : > { %v531_v7 = vshrl.u32 %v6965_v43, 16  ;;  %v511_v41 = vrot.slane %v510_v46, 4  ;;  %v5398_v17 = vcombine.low %v2819_v55, %v2822_v2  ;;  %v520_v10 = vrot.slane %v518_v58, 4  ;;  %v7021_v46 = vld [vmem:[%s6653_s27 + $0xa0] sm:$0xf] }
  0x6c   : > { %5879 = vmatmul.mubr.msk.bf16.gmra.mrb[16].mxu1 %vm687_vm3, %v5113_v63  ;;  %v523_v11 = vrot.slane %v521_v54, 5  ;;  %v506_v14 = vsel %vm6679_vm4, %v501_v61, %v505_v48  ;;  %v529_v18 = vrot.slane %v527_v6, 5  ;;  %v537_v25 = vshll.u32 %v245_v52, 16  ;;  %v7010_v52 = vld [vmem:[%s6653_s27 + $0x9c] sm:$0xf] }
  0x6d   : > { %v533_v21 = vrot.slane %v531_v7, 4  ;;  %v516_v31 = vsel %vm6679_vm4, %v511_v41, %v515_v50  ;;  %6036 = vmatprep.mubr.msk.bf16.mxu0 %vm687_vm3, %v5398_v17  ;;  %v5382_v1 = vrot.slane %v5366_v57, 9  ;;  %v2825_v28 = vrot.slane %v6758_v33, 5 }
  0x6e   : > { %v524_v38 = vor.u32 %v523_v11, %v520_v10  ;;  %v5114_v42 = vcombine.low %v506_v14, %v516_v31  ;;  %v539_v45 = vrot.slane %v537_v25, 5  ;;  %v2828_v47 = vrot.slane %v6766_v40, 5  ;;  %v247_v10 = vld [vmem:[%s6653_s27 + $0xa4] sm:$0x1]  ;;  %v5368_v11 = vld [vmem:[%s6653_s27 + $0x48] sm:$0xe] }
  0x6f   : > { %v534_v44 = vor.u32 %v533_v21, %v529_v18  ;;  %v2826_v49 = vsel %vm6905_vm7, %v5382_v1, %v2825_v28  ;;  %v2827_v50 = vrot.slane %v2825_v28, 4  ;;  %v542_v51 = vshrl.u32 %v6989_v5, 16 }
  0x70   : > { %v525_v48 = vrot.slane %v524_v38, 4  ;;  %5882 = vmatprep.mubr.msk.bf16.mxu1 %vm687_vm3, %v5114_v42  ;;  %v545_v15 = vshll.u32 %v6989_v5, 16  ;;  %v551_v62 = vshll.u32 %v7001_v30, 16  ;;  %v555_v40 = vshrl.u32 %v7001_v30, 16 }
  0x71   : > { %v535_v33 = vrot.slane %v534_v44, 4  ;;  %v2829_v56 = vsel %vm6905_vm7, %v2827_v50, %v2828_v47  ;;  %v544_v57 = vrot.slane %v542_v51, 4  ;;  %v561_v63 = vshll.u32 %v246_v60, 16 }
  0x72   : > { %v530_v55 = vsel %vm6679_vm4, %v525_v48, %v529_v18  ;;  %v5399_v54 = vcombine.low %v2826_v49, %v2829_v56  ;;  %v547_v61 = vrot.slane %v545_v15, 5  ;;  %v553_v2 = vrot.slane %v551_v62, 5  ;;  %v7047_v56 = vld [vmem:[%s6653_s27 + $0xac] sm:$0xf] }
  0x73   : > { %v540_v58 = vsel %vm6679_vm4, %v535_v33, %v539_v45  ;;  %v557_v7 = vrot.slane %v555_v40, 4  ;;  %v563_v41 = vrot.slane %v561_v63, 5  ;;  %v5383_v17 = vrot.slane %v5367_v26, 9  ;;  %v7042_v33 = vld [vmem:[%s6653_s27 + $0xa8] sm:$0xf] }
  0x74   : > { %v5115_v6 = vcombine.low %v530_v55, %v540_v58  ;;  %6037 = vmatmul.mubr.msk.bf16.gmra.mrb[4].mxu0 %vm687_vm3, %v5399_v54  ;;  %v548_v14 = vor.u32 %v547_v61, %v544_v57  ;;  %v2832_v18 = vrot.slane %v6783_v20, 5  ;;  %v2835_v21 = vrot.slane %v6788_v34, 5  ;;  %v248_v61 = vld [vmem:[%s6653_s27 + $0xb0] sm:$0x1] }
  0x75   : > { %v566_v25 = vshrl.u32 %v7010_v52, 16  ;;  %v558_v31 = vor.u32 %v557_v7, %v553_v2  ;;  %v569_v38 = vshll.u32 %v7010_v52, 16  ;;  %v575_v1 = vshll.u32 %v7021_v46, 16 }
  0x76   : > { %5883 = vmatmul.mubr.msk.bf16.gmra.mrb[20].mxu1 %vm687_vm3, %v5115_v6  ;;  %v579_v28 = vshrl.u32 %v7021_v46, 16  ;;  %v549_v60 = vrot.slane %v548_v14, 4  ;;  %v2833_v42 = vsel %vm6905_vm7, %v5383_v17, %v2832_v18  ;;  %v2834_v20 = vrot.slane %v2832_v18, 4  ;;  %v7062_v14 = vld [vmem:[%s6653_s27 + $0xb4] sm:$0xf] }
  0x77   : > { %v568_v44 = vrot.slane %v566_v25, 4  ;;  %v559_v34 = vrot.slane %v558_v31, 4  ;;  %v571_v45 = vrot.slane %v569_v38, 5  ;;  %v577_v47 = vrot.slane %v575_v1, 5 }
  0x78   : > { %v581_v26 = vrot.slane %v579_v28, 4  ;;  %v554_v48 = vsel %vm6679_vm4, %v549_v60, %v553_v2  ;;  %v2836_v49 = vsel %vm6905_vm7, %v2834_v20, %v2835_v21  ;;  %v585_v50 = vshll.u32 %v247_v10, 16  ;;  %v5369_v2 = vld [vmem:[%s6653_s27 + $0x54] sm:$0xe] }
  0x79   : > { %v5384_v51 = vrot.slane %v5368_v11, 9  ;;  %v564_v15 = vsel %vm6679_vm4, %v559_v34, %v563_v41  ;;  %v5400_v62 = vcombine.low %v2833_v42, %v2836_v49  ;;  %v572_v40 = vor.u32 %v571_v45, %v568_v44  ;;  %v7071_v42 = vld [vmem:[%s6653_s27 + $0xb8] sm:$0xf]  ;;  %v249_v49 = vld [vmem:[%s6653_s27 + $0xbc] sm:$0x1] }
  0x7a   : > { %v582_v55 = vor.u32 %v581_v26, %v577_v47  ;;  %v5116_v57 = vcombine.low %v554_v48, %v564_v15  ;;  %v587_v63 = vrot.slane %v585_v50, 5  ;;  %v2839_v58 = vrot.slane %v6806_v8, 5 }
  0x7b   : > { %v2842_v54 = vrot.slane %v6814_v23, 5  ;;  %6040 = vmatprep.mubr.msk.bf16.mxu0 %vm687_vm3, %v5400_v62  ;;  %v573_v6 = vrot.slane %v572_v40, 4  ;;  %v590_v41 = vshrl.u32 %v7042_v33, 16  ;;  %v593_v17 = vshll.u32 %v7042_v33, 16 }
  0x7c   : > { %v583_v7 = vrot.slane %v582_v55, 4  ;;  %5886 = vmatprep.mubr.msk.bf16.mxu1 %vm687_vm3, %v5116_v57  ;;  %v2840_v10 = vsel %vm6905_vm7, %v5384_v51, %v2839_v58  ;;  %v2841_v11 = vrot.slane %v2839_v58, 4  ;;  %v599_v8 = vshll.u32 %v7047_v56, 16  ;;  %v5370_v55 = vld [vmem:[%s6653_s27 + $0x60] sm:$0xe] }
  0x7d   : > { %v603_v23 = vshrl.u32 %v7047_v56, 16  ;;  %v578_v18 = vsel %vm6679_vm4, %v573_v6, %v577_v47  ;;  %v592_v25 = vrot.slane %v590_v41, 4  ;;  %v595_v31 = vrot.slane %v593_v17, 5  ;;  %v5371_v6 = vld [vmem:[%s6653_s27 + $0x6c] sm:$0xe] }
  0x7e   : > { %v588_v21 = vsel %vm6679_vm4, %v583_v7, %v587_v63  ;;  %v2843_v1 = vsel %vm6905_vm7, %v2841_v11, %v2842_v54  ;;  %v601_v28 = vrot.slane %v599_v8, 5  ;;  %v609_v34 = vshll.u32 %v248_v61, 16  ;;  %v5307_v11 = vld [vmem:[%s6653_s27 + $0x70] sm:$0xf]  ;;  %v5308_v8 = vld [vmem:[%s6653_s27 + $0x74] sm:$0x1] }
  0x7f   : > { %v5117_v38 = vcombine.low %v578_v18, %v588_v21  ;;  %v605_v60 = vrot.slane %v603_v23, 4  ;;  %v5401_v20 = vcombine.low %v2840_v10, %v2843_v1  ;;  %v596_v44 = vor.u32 %v595_v31, %v592_v25 }
  0x80   : > { %v5385_v45 = vrot.slane %v5369_v2, 9  ;;  %v2846_v26 = vrot.slane %v6837_v4, 5  ;;  %v2849_v48 = vrot.slane %v6843_v12, 5  ;;  %v614_v50 = vshrl.u32 %v7062_v14, 16 }
  0x81   : > { %5887 = vmatmul.mubr.msk.bf16.gmra.mrb[24].mxu1 %vm687_vm3, %v5117_v38  ;;  %v606_v47 = vor.u32 %v605_v60, %v601_v28  ;;  %6041 = vmatmul.mubr.msk.bf16.gmra.mrb[8].mxu0 %vm687_vm3, %v5401_v20  ;;  %v597_v51 = vrot.slane %v596_v44, 4  ;;  %v611_v15 = vrot.slane %v609_v34, 5  ;;  %v617_v62 = vshll.u32 %v7062_v14, 16 }
  0x82   : > { %v623_v40 = vshll.u32 %v7071_v42, 16  ;;  %v2847_v4 = vsel %vm6905_vm7, %v5385_v45, %v2846_v26  ;;  %v2848_v12 = vrot.slane %v2846_v26, 4  ;;  %v616_v63 = vrot.slane %v614_v50, 4 }
  0x83   : > { %v607_v57 = vrot.slane %v606_v47, 4  ;;  %v602_v58 = vsel %vm6679_vm4, %v597_v51, %v601_v28  ;;  %v619_v54 = vrot.slane %v617_v62, 5  ;;  %v627_v2 = vshrl.u32 %v7071_v42, 16  ;;  %v5372_v47 = vld [vmem:[%s6653_s27 + $0x78] sm:$0xe] }
  0x84   : > { %v625_v61 = vrot.slane %v623_v40, 5  ;;  %v2850_v41 = vsel %vm6905_vm7, %v2848_v12, %v2849_v48  ;;  %v633_v17 = vshll.u32 %v249_v49, 16  ;;  %v5386_v10 = vrot.slane %v5370_v55, 9  ;;  %v6507_v51 = vld [vmem:[%s6653_s27] sm:$0xf] }
  0x85   : > { %v612_v7 = vsel %vm6679_vm4, %v607_v57, %v611_v15  ;;  %v5402_v18 = vcombine.low %v2847_v4, %v2850_v41  ;;  %v620_v21 = vor.u32 %v619_v54, %v616_v63  ;;  %v629_v25 = vrot.slane %v627_v2, 4  ;;  %v7109_v15 = vld [vmem:[%s6653_s27 + $0x4] sm:$0xf]  ;;  %v7113_v40 = vld [vmem:[%s6653_s27 + $0x7c] sm:$0xf] }
  0x86   : > { %v5118_v23 = vcombine.low %v602_v58, %v612_v7  ;;  %v635_v31 = vrot.slane %v633_v17, 5  ;;  %v2853_v38 = vrot.slane %v6867_v59, 5  ;;  %v2856_v1 = vrot.slane %v6874_v9, 5  ;;  %v7116_v55 = vld [vmem:[%s6653_s27 + $0x80] sm:$0x1] }
  0x87   : > { %v5387_v28 = vrot.slane %v5371_v6, 9  ;;  %6044 = vmatprep.mubr.msk.bf16.mxu0 %vm687_vm3, %v5402_v18  ;;  %v621_v60 = vrot.slane %v620_v21, 4  ;;  %v630_v20 = vor.u32 %v629_v25, %v625_v61  ;;  %v2860_v44 = vrot.slane %v5307_v11, 5  ;;  %v5313_v57 = vld [vmem:[%s6653_s27 + $0x88] sm:$0xf] }
  0x88   : > { %5890 = vmatprep.mubr.msk.bf16.mxu1 %vm687_vm3, %v5118_v23  ;;  %v2863_v34 = vrot.slane %v5308_v8, 5  ;;  %v2854_v45 = vsel %vm6905_vm7, %v5386_v10, %v2853_v38  ;;  %v2855_v59 = vrot.slane %v2853_v38, 4  ;;  %v5136_v62 = vcombine.low %v6507_v51, %v7109_v15  ;;  %v5314_v54 = vld [vmem:[%s6653_s27 + $0x8c] sm:$0x1]  ;;  %v5316_v17 = vld [vmem:[%s6653_s27 + $0x94] sm:$0xf] }
  0x89   : > { %v626_v9 = vsel %vm6679_vm4, %v621_v60, %v625_v61  ;;  %v631_v26 = vrot.slane %v630_v20, 4  ;;  %v2861_v48 = vsel %vm6905_vm7, %v5387_v28, %v2860_v44  ;;  %v2862_v49 = vrot.slane %v2860_v44, 4  ;;  %v5373_v61 = vld [vmem:[%s6653_s27 + $0x84] sm:$0xe]  ;;  %v5374_v23 = vld [vmem:[%s6653_s27 + $0x90] sm:$0xe] }
  0x8a   : > { %v2857_v50 = vsel %vm6905_vm7, %v2855_v59, %v2856_v1  ;;  %v5388_v58 = vrot.slane %v5372_v47, 9  ;;  %v2867_v7 = vrot.slane %v7113_v40, 5  ;;  %v2870_v41 = vrot.slane %v7116_v55, 5  ;;  %v5317_v25 = vld [vmem:[%s6653_s27 + $0x98] sm:$0x1] }
  0x8b   : > { %v636_v4 = vsel %vm6679_vm4, %v631_v26, %v635_v31  ;;  %v5403_v12 = vcombine.low %v2854_v45, %v2857_v50  ;;  %v2864_v63 = vsel %vm6905_vm7, %v2862_v49, %v2863_v34  ;;  %v5389_v10 = vrot.slane %v5373_v61, 9  ;;  %v5319_v31 = vld [vmem:[%s6653_s27 + $0xa0] sm:$0xf]  ;;  %v5320_v60 = vld [vmem:[%s6653_s27 + $0xa4] sm:$0x1] }
  0x8c   : > { %v5119_v2 = vcombine.low %v626_v9, %v636_v4  ;;  %v5404_v6 = vcombine.low %v2861_v48, %v2864_v63  ;;  %v2874_v11 = vrot.slane %v5313_v57, 5  ;;  %v2877_v8 = vrot.slane %v5314_v54, 5  ;;  %v5375_v20 = vld [vmem:[%s6653_s27 + $0x9c] sm:$0xe]  ;;  %v6509_v44 = vld [vmem:[%s6653_s27 + $0xc] sm:$0xf] }
  0x8d   : > { %6045 = vmatmul.mubr.msk.bf16.gmra.mrb[12].mxu0 %vm687_vm3, %v5403_v12  ;;  %v2868_v18 = vsel %vm6905_vm7, %v5388_v58, %v2867_v7  ;;  %v2869_v21 = vrot.slane %v2867_v7, 4  ;;  %v2881_v28 = vrot.slane %v5316_v17, 5  ;;  %v7143_v34 = vld [vmem:[%s6653_s27 + $0x10] sm:$0xf]  ;;  %v6511_v47 = vld [vmem:[%s6653_s27 + $0x18] sm:$0xf] }
  0x8e   : > { %5891 = vmatmul.mubr.msk.bf16.gmra.mrb[28].mxu1 %vm687_vm3, %v5119_v2  ;;  %6048 = vmatprep.mubr.msk.bf16.mxu0 %vm687_vm3, %v5404_v6  ;;  %v2875_v38 = vsel %vm6905_vm7, %v5389_v10, %v2874_v11  ;;  %v2876_v1 = vrot.slane %v2874_v11, 4  ;;  %v5137_v45 = vcombine.low %v6509_v44, %v7143_v34  ;;  %v7150_v9 = vld [vmem:[%s6653_s27 + $0x1c] sm:$0xf]  ;;  %v5390_v48 = vrot.slane %v5374_v23, 9  ;;  %v5322_v57 = vld [vmem:[%s6653_s27 + $0xac] sm:$0xf] }
  0x8f   : > { %5896 = vmatprep.mubr.msk.bf16.mxu1 %vm687_vm3, %v5136_v62  ;;  %v2871_v59 = vsel %vm6905_vm7, %v2869_v21, %v2870_v41  ;;  %v5138_v26 = vcombine.low %v6511_v47, %v7150_v9  ;;  %v2883_v51 = vrot.slane %v2881_v28, 4  ;;  %v2884_v62 = vrot.slane %v5317_v25, 5  ;;  %v6513_v54 = vld [vmem:[%s8464_s1 + $0x4] sm:$0x3]  ;;  %v5325_v2 = vld [vmem:[%s6653_s27 + $0xb8] sm:$0xf] }
  0x90   : > { %v5405_v49 = vcombine.low %v2868_v18, %v2871_v59  ;;  %v2878_v50 = vsel %vm6905_vm7, %v2876_v1, %v2877_v8  ;;  %v5391_v12 = vrot.slane %v5375_v20, 9  ;;  %v2888_v63 = vrot.slane %v5319_v31, 5  ;;  %v7165_v7 = vld [vmem:[%s8464_s1 + $0x6] sm:$0x3]  ;;  %v5323_v10 = vld [vmem:[%s6653_s27 + $0xb0] sm:$0x1] }
  0x91   : > { %v5406_v4 = vcombine.low %v2875_v38, %v2878_v50  ;;  %v2891_v58 = vrot.slane %v5320_v60, 5  ;;  %v1455_v61 = vsel %vm736_vm0, %v6513_v54, 0  ;;  %v2882_v41 = vsel %vm6905_vm7, %v5390_v48, %v2881_v28  ;;  %v5376_v11 = vld [vmem:[%s6653_s27 + $0xa8] sm:$0xe]  ;;  %v5326_v25 = vld [vmem:[%s6653_s27 + $0xbc] sm:$0x1] }
  0x92   : > { %v2890_v6 = vrot.slane %v2888_v63, 4  ;;  %v2885_v17 = vsel %vm6905_vm7, %v2883_v51, %v2884_v62  ;;  %v2895_v8 = vrot.slane %v5322_v57, 5  ;;  %v2889_v23 = vsel %vm6905_vm7, %v5391_v12, %v2888_v63  ;;  %v5377_v31 = vld [vmem:[%s6653_s27 + $0xb4] sm:$0xe]  ;;  %v6514_v38 = vld [vmem:[%s6653_s27 + $0x24] sm:$0xf] }
  0x93   : > { %v2902_v21 = vrot.slane %v5325_v2, 5  ;;  %v7186_v1 = vld [vmem:[%s6653_s27 + $0x28] sm:$0xf]  ;;  %v5407_v60 = vcombine.low %v2882_v41, %v2885_v17  ;;  %v5392_v44 = vrot.slane %v5376_v11, 9  ;;  %v2898_v59 = vrot.slane %v5323_v10, 5 }
  0x94   : > { %v2892_v18 = vsel %vm6905_vm7, %v2890_v6, %v2891_v58  ;;  %v5139_v28 = vcombine.low %v6514_v38, %v7186_v1  ;;  %v6516_v47 = vld [vmem:[%s6653_s27 + $0x30] sm:$0xf]  ;;  %v2905_v51 = vrot.slane %v5326_v25, 5  ;;  %v5328_v62 = vld [vmem:[%s6653_s27 + $0xc4] sm:$0xf]  ;;  %v2290_v25 = vshrl.u32 %v7113_v40, 16 }
  0x95   : > { %6049 = vmatmul.mubr.msk.bf16.gmra.mrb[16].mxu0 %vm687_vm3, %v5405_v49  ;;  %v5408_v20 = vcombine.low %v2889_v23, %v2892_v18  ;;  %v5393_v49 = vrot.slane %v5377_v31, 9  ;;  %v2904_v50 = vrot.slane %v2902_v21, 4  ;;  %v2896_v57 = vsel %vm6905_vm7, %v5392_v44, %v2895_v8  ;;  %v5378_v12 = vld [vmem:[%s6653_s27 + $0xc0] sm:$0xe]  ;;  %v6518_v41 = vld [vmem:[%s6653_s27 + $0x3c] sm:$0xf] }
  0x96   : > { %5897 = vmatmul.mubr.msk.bf16.vlgmr.msra.gmra.mrb[0].mxu1 %vm687_vm3, %v5137_v45  ;;  %6052 = vmatprep.mubr.msk.bf16.mxu0 %vm687_vm3, %v5406_v4  ;;  %v2897_v45 = vrot.slane %v2895_v8, 4  ;;  %v2909_v63 = vrot.slane %v5328_v62, 5  ;;  %v5394_v6 = vrot.slane %v5378_v12, 9  ;;  %v7211_v17 = vld [vmem:[%s6653_s27 + $0x40] sm:$0xf]  ;;  %v5142_v18 = vcombine.low %v6818_v27, %v6821_v36  ;;  %v6470_v62 = vld [vmem:[%s6653_s27 + $0x24] sm:$0xff]  }
  0x97   : > { %5929 = vmatpush3.bf16.msra.mxu1 %v1455_v61  ;;  %5900 = vmatprep.mubr.msk.bf16.mxu1 %vm687_vm3, %v5138_v26  ;;  %v7191_v26 = vld [vmem:[%s6653_s27 + $0x34] sm:$0xf]  ;;  %v2903_v58 = vsel %vm6905_vm7, %v5393_v49, %v2902_v21  ;;  %v2906_v54 = vsel %vm6905_vm7, %v2904_v50, %v2905_v51  ;;  %v5329_v61 = vld [vmem:[%s6653_s27 + $0xc8] sm:$0x1]  ;;  %v5141_v10 = vcombine.low %v6518_v41, %v7211_v17  ;;  %v2286_v21 = vshll.u32 %v7113_v40, 16 }
  0x98   : > { %6427 = vmatprep.subr.msk.bf16.mxu1 %vm736_vm0, %v7165_v7  ;;  %v5140_v48 = vcombine.low %v6516_v47, %v7191_v26  ;;  %v2899_v4 = vsel %vm6905_vm7, %v2897_v45, %v2898_v59  ;;  %v5410_v11 = vcombine.low %v2903_v58, %v2906_v54  ;;  %v2911_v8 = vrot.slane %v2909_v63, 4  ;;  %v1193_v45 = vld [vmem:[%s6653_s27] sm:$0xe]  ;;  %v1194_v59 = vld [vmem:[%s6653_s27 + $0xc] sm:$0xe] }
  0x99   : > { %v5409_v2 = vcombine.low %v2896_v57, %v2899_v4  ;;  %v2912_v23 = vrot.slane %v5329_v61, 5  ;;  %v2910_v31 = vsel %vm6905_vm7, %v5394_v6, %v2909_v63  ;;  %v7226_v27 = vrot.slane %v2286_v21, 5  ;;  %v1197_v41 = vld [vmem:[%s6653_s27 + $0x30] sm:$0xe] }
  0x9a   : > { %v2292_v36 = vrot.slane %v2290_v25, 4  ;;  %v5144_v44 = vcombine.low %v6878_v19, %v6884_v35  ;;  %v2296_v47 = vshll.u32 %v7116_v55, 16  ;;  %v5168_v19 = vrot.slane %v1193_v45, 9 }
  0x9b   : > { %v2913_v38 = vsel %vm6905_vm7, %v2911_v8, %v2912_v23  ;;  %8485 = vst [vmem:[#allocation3_spill] sm:$0xff] %v7226_v27  ;;  %v5169_v35 = vrot.slane %v1194_v59, 9  ;;  %v1260_v4 = vrot.slane %v7150_v9, 5  ;;  %v1267_v12 = vrot.slane %v7186_v1, 5  ;;  %v1198_v8 = vld [vmem:[%s6653_s27 + $0x3c] sm:$0xe] }
  0x9c   : > { %v5411_v40 = vcombine.low %v2910_v31, %v2913_v38  ;;  %v2293_v49 = vor.u32 %v2292_v36, %v7226_v27  ;;  %v7246_v51 = vrot.slane %v2296_v47, 5  ;;  %v5145_v58 = vcombine.low %v6899_v0, %v6912_v29  ;;  %v1199_v31 = vld [vmem:[%s6653_s27 + $0x48] sm:$0xe]  ;;  %v6524_v59 = vld [vmem:[%s6653_s27 + $0x38] sm:$0x1] }
  0x9d   : > { %6053 = vmatmul.mubr.msk.bf16.gmra.mrb[20].mxu0 %vm687_vm3, %v5407_v60  ;;  %v5143_v60 = vcombine.low %v6847_v24, %v6853_v37  ;;  %v6521_v24 = vld [vmem:[%s6653_s27 + $0x14] sm:$0x1]  ;;  %v4101_v54 = vsel %vm736_vm0, %v6970_v22, 0  ;;  %v5146_v61 = vcombine.low %v6931_v53, %v6938_v16  ;;  %v5147_v6 = vcombine.low %v6957_v39, %v6965_v43  ;;  %v6522_v16 = vld [vmem:[%s6653_s27 + $0x20] sm:$0x1] }
  0x9e   : > { %5901 = vmatmul.mubr.msk.bf16.gmra.mrb[4].mxu1 %vm687_vm3, %v5139_v28  ;;  %6056 = vmatprep.mubr.msk.bf16.mxu0 %vm687_vm3, %v5408_v20  ;;  %v1253_v28 = vrot.slane %v7143_v34, 5  ;;  %v6468_v20 = vld [vmem:[%s6653_s27 + $0x18] sm:$0xff]   ;;  %v6520_v34 = vld [vmem:[%s6653_s27 + $0x8] sm:$0x1]  ;;  %v1256_v37 = vrot.slane %v6521_v24, 5  ;;  %8486 = vst [vmem:[#allocation4_spill] sm:$0xff] %v7246_v51  ;;  %v5148_v9 = vcombine.low %v6989_v5, %v7001_v30 }
  0x9f   : > { %5904 = vmatprep.mubr.msk.bf16.mxu1 %vm687_vm3, %v5140_v48  ;;  %v1246_v48 = vrot.slane %v7109_v15, 5  ;;  %v1249_v50 = vrot.slane %v6520_v34, 5  ;;  %v1195_v15 = vld [vmem:[%s6653_s27 + $0x18] sm:$0xe]  ;;  %v7251_v63 = vrot.slane %v2293_v49, 4  ;;  %v1263_v22 = vrot.slane %v6522_v16, 5 }
  0xa0   : > { %v1255_v55 = vrot.slane %v1253_v28, 4  ;;  %v5170_v1 = vrot.slane %v1195_v15, 9  ;;  %v7273_v29 = vsel %vm6905_vm7, %v5169_v35, %v1253_v28  ;;  %v1269_v25 = vrot.slane %v1267_v12, 4  ;;  %v5493_v24 = vld [vmem:[%s6653_s27 + $0x18] sm:$0xf] }
  0xa1   : > { %v1248_v57 = vrot.slane %v1246_v48, 4  ;;  %8487 = vst [vmem:[#allocation5_spill] sm:$0xff] %v7251_v63  ;;  %v7269_v0 = vsel %vm6905_vm7, %v5168_v19, %v1246_v48  ;;  %v1277_v47 = vrot.slane %v6524_v59, 5  ;;  %v7310_v49 = vsel %vm736_vm0, %v7165_v7, 0  ;;  %v5494_v7 = vld [vmem:[%s6653_s27 + $0x1c] sm:$0xf] }
  0xa2   : > { %v7277_v53 = vsel %vm6905_vm7, %v1255_v55, %v1256_v37  ;;  %v7314_v34 = vsel %vm6905_vm7, %v5170_v1, %v1260_v4  ;;  %v6474_v37 = vld [vmem:[%s6653_s27 + $0x3c] sm:$0xff]   ;;  %v5173_v35 = vrot.slane %v1198_v8, 9  ;;  %v6525_v55 = vld [vmem:[%s6653_s27 + $0x44] sm:$0x1]  ;;  %v3622_v8 = vshll.u32 %v5493_v24, 16 }
  0xa3   : > { %v7288_v23 = vsel %vm6905_vm7, %v1248_v57, %v1249_v50  ;;  %v1200_v50 = vld [vmem:[%s6653_s27 + $0x54] sm:$0xe]  ;;  %v1284_v15 = vrot.slane %v6525_v55, 5  ;;  %v5497_v39 = vld [vmem:[%s6653_s27 + $0x28] sm:$0xf] }
  0xa4   : > { %v6532_v5 = vld [vmem:[%s6653_s27 + $0x70] sm:$0xf] }
  0xa5   : > { %6057 = vmatmul.mubr.msk.bf16.gmra.mrb[24].mxu0 %vm687_vm3, %v5409_v2  ;;  %v1196_v2 = vld [vmem:[%s6653_s27 + $0x24] sm:$0xe]  ;;  %v1309_v30 = vrot.slane %v6532_v5, 5 }
  0xa6   : > { %5905 = vmatmul.mubr.msk.bf16.gmra.mrb[8].mxu1 %vm687_vm3, %v5141_v10  ;;  %6060 = vmatprep.mubr.msk.bf16.mxu0 %vm687_vm3, %v5410_v11  ;;  %v1274_v10 = vrot.slane %v7191_v26, 5  ;;  %v6472_v11 = vld [vmem:[%s6653_s27 + $0x30] sm:$0xff]   ;;  %v5171_v21 = vrot.slane %v1196_v2, 9 }
  0xa7   : > { %5908 = vmatprep.mubr.msk.bf16.mxu1 %vm687_vm3, %v5142_v18  ;;  %v7284_v26 = vld [vmem:[%s8464_s1 + $0x10] sm:$0x3]  ;;  %v1262_v18 = vrot.slane %v1260_v4, 4  ;;  %v1311_v48 = vrot.slane %v1309_v30, 4 }
  0xa8   : > { %v1276_v45 = vrot.slane %v1274_v10, 4  ;;  %v7321_v19 = vsel %vm6905_vm7, %v5171_v21, %v1267_v12  ;;  %v3632_v21 = vshrl.u32 %v5494_v7, 16 }
  0xa9   : > { %v7330_v4 = vsel %vm6905_vm7, %v1262_v18, %v1263_v22  ;;  %v3619_v22 = vshrl.u32 %v5493_v24, 16  ;;  %v3628_v18 = vshll.u32 %v5494_v7, 16  ;;  %v5496_v24 = vld [vmem:[%s6653_s27 + $0x24] sm:$0xf] }
  0xaa   : > { %v7343_v1 = vsel %vm6905_vm7, %v1276_v45, %v1277_v47 }
  0xab   : > { %v3621_v43 = vrot.slane %v3619_v22, 4  ;;  %v7385_v7 = vrot.slane %v3628_v18, 5  ;;  %v3646_v22 = vshll.u32 %v5496_v24, 16  ;;  %v3656_v18 = vshrl.u32 %v5497_v39, 16 }
  0xad   : > { %6061 = vmatmul.mubr.msk.bf16.gmra.mrb[28].mxu0 %vm687_vm3, %v5411_v40  ;;  %v6523_v40 = vld [vmem:[%s6653_s27 + $0x2c] sm:$0x1]  ;;  %v3648_v27 = vrot.slane %v3646_v22, 5 }
  0xae   : > { %5909 = vmatmul.mubr.msk.bf16.gmra.mrb[12].mxu1 %vm687_vm3, %v5143_v60  ;;  %6066 = vmatprep.mubr.msk.bf16.mxu0 %vm687_vm3, %v6468_v20  ;;  %v1270_v28 = vrot.slane %v6523_v40, 5  ;;  %v1281_v60 = vrot.slane %v7211_v17, 5  ;;  %v6528_v40 = vld [vmem:[%s6653_s27 + $0x50] sm:$0x1]  ;;  %v6533_v17 = vld [vmem:[%s6653_s27 + $0x74] sm:$0x1] }
  0xaf   : > { %5912 = vmatprep.mubr.msk.bf16.mxu1 %vm687_vm3, %v5144_v44  ;;  %v5172_v44 = vrot.slane %v1197_v41, 9  ;;  %v5175_v41 = vrot.slane %v1200_v50, 9  ;;  %v1201_v50 = vld [vmem:[%s6653_s27 + $0x60] sm:$0xe]  ;;  %v5498_v20 = vld [vmem:[%s6653_s27 + $0x2c] sm:$0x1] }
  0xb0   : > { %v1283_v12 = vrot.slane %v1281_v60, 4  ;;  %v7356_v45 = vsel %vm6905_vm7, %v5173_v35, %v1281_v60  ;;  %v6529_v35 = vld [vmem:[%s6653_s27 + $0x5c] sm:$0x1] }
  0xb1   : > { %v7339_v2 = vsel %vm6905_vm7, %v5172_v44, %v1274_v10  ;;  %v1298_v55 = vrot.slane %v6529_v35, 5  ;;  %v1202_v35 = vld [vmem:[%s6653_s27 + $0x6c] sm:$0xe] }
  0xb2   : > { %v7360_v59 = vsel %vm6905_vm7, %v1283_v12, %v1284_v15  ;;  %v6530_v15 = vld [vmem:[%s6653_s27 + $0x64] sm:$0xf]  ;;  %v3634_v12 = vrot.slane %v3632_v21, 4  ;;  %v5177_v5 = vrot.slane %v1202_v35, 9 }
  0xb3   : > { %v6480_v21 = vld [vmem:[%s6653_s27 + $0x60] sm:$0xff]  }
  0xb5   : > { %6067 = vmatmul.mubr.msk.bf16.vlgmr.msra.gmra.mrb[0].mxu0 %vm687_vm3, %v6470_v62  ;;  %v6526_v62 = vld [vmem:[%s6653_s27 + $0x4c] sm:$0xf] }
  0xb6   : > { %5913 = vmatmul.mubr.msk.bf16.gmra.mrb[16].mxu1 %vm687_vm3, %v5145_v58  ;;  %6099 = vmatpush3.bf16.msra.mxu0 %v4101_v54  ;;  %v1288_v57 = vrot.slane %v6526_v62, 5  ;;  %v7334_v58 = vsel %vm6905_vm7, %v1269_v25, %v1270_v28  ;;  %v5174_v54 = vrot.slane %v1199_v31, 9  ;;  %v1291_v28 = vrot.slane %v6528_v40, 5 }
  0xb7   : > { %5916 = vmatprep.mubr.msk.bf16.mxu1 %vm687_vm3, %v5146_v61  ;;  %6070 = vmatprep.mubr.msk.bf16.mxu0 %vm687_vm3, %v6472_v11  ;;  %v6476_v61 = vld [vmem:[%s6653_s27 + $0x48] sm:$0xff]   ;;  %v6527_v11 = vld [vmem:[%s6653_s27 + $0x58] sm:$0xf]  ;;  %v1302_v62 = vrot.slane %v6530_v15, 5  ;;  %v5500_v15 = vld [vmem:[%s6653_s27 + $0x34] sm:$0xf] }
  0xb8   : > { %6433 = vmatprep.subr.msk.bf16.mxu0 %vm736_vm0, %v7284_v26  ;;  %v1295_v16 = vrot.slane %v6527_v11, 5  ;;  %v1290_v31 = vrot.slane %v1288_v57, 4  ;;  %v7364_v47 = vsel %vm6905_vm7, %v5174_v54, %v1288_v57  ;;  %v5495_v57 = vld [vmem:[%s6653_s27 + $0x20] sm:$0x1]  ;;  %v5499_v54 = vld [vmem:[%s6653_s27 + $0x30] sm:$0xf] }
  0xb9   : > { %v5176_v11 = vrot.slane %v1201_v50, 9  ;;  %v3670_v50 = vshll.u32 %v5499_v54, 16  ;;  %v3638_v25 = vshll.u32 %v5495_v57, 16  ;;  %v3676_v36 = vshll.u32 %v5500_v15, 16 }
  0xba   : > { %v7375_v60 = vsel %vm6905_vm7, %v5175_v41, %v1295_v16  ;;  %v7391_v41 = vsel %vm6905_vm7, %v1290_v31, %v1291_v28  ;;  %v1304_v31 = vrot.slane %v1302_v62, 4  ;;  %v3667_v28 = vshrl.u32 %v5499_v54, 16 }
  0xbb   : > { %v7433_v35 = vrot.slane %v3676_v36, 5 }
  0xbd   : > { %6071 = vmatmul.mubr.msk.bf16.gmra.mrb[4].mxu0 %vm687_vm3, %v6474_v37  ;;  %v1297_v37 = vrot.slane %v1295_v16, 4  ;;  %v6531_v16 = vld [vmem:[%s6653_s27 + $0x68] sm:$0x1] }
  0xbe   : > { %5917 = vmatmul.mubr.msk.bf16.gmra.mrb[20].mxu1 %vm687_vm3, %v5147_v6  ;;  %6074 = vmatprep.mubr.msk.bf16.mxu0 %vm687_vm3, %v6476_v61  ;;  %v3624_v6 = vrot.slane %v3622_v8, 5  ;;  %v6478_v61 = vld [vmem:[%s6653_s27 + $0x54] sm:$0xff]   ;;  %v1305_v40 = vrot.slane %v6531_v16, 5  ;;  %v3652_v8 = vshll.u32 %v5497_v39, 16  ;;  %v3635_v16 = vor.u32 %v3634_v12, %v7385_v7 }
  0xbf   : > { %5920 = vmatprep.mubr.msk.bf16.mxu1 %vm687_vm3, %v5148_v9  ;;  %v3643_v9 = vshrl.u32 %v5496_v24, 16  ;;  %v7400_v44 = vsel %vm6905_vm7, %v1297_v37, %v1298_v55  ;;  %v1312_v24 = vrot.slane %v6533_v17, 5  ;;  %v3680_v39 = vshrl.u32 %v5500_v15, 16 }
  0xc0   : > { %v3625_v10 = vor.u32 %v3624_v6, %v3621_v43  ;;  %v7406_v37 = vrot.slane %v3652_v8, 5  ;;  %v3658_v55 = vrot.slane %v3656_v18, 4  ;;  %v8488_v43 = vcombine.low %v7010_v52, %v7021_v46  ;;  %v6534_v8 = vld [vmem:[%s6653_s27 + $0x7c] sm:$0xf]  ;;  %v7442_v18 = vld [vmem:[%s6653_s27 + $0x38] sm:$0x1] }
  0xc1   : > { %v3645_v38 = vrot.slane %v3643_v9, 4  ;;  %v7415_v17 = vsel %vm6905_vm7, %v5176_v11, %v1302_v62  ;;  %v7419_v57 = vsel %vm6905_vm7, %v1304_v31, %v1305_v40  ;;  %v3669_v6 = vrot.slane %v3667_v28, 4  ;;  %8490 = vst [vmem:[#allocation6_spill] sm:$0xff] %v7442_v18 }
  0xc2   : > { %v3672_v12 = vrot.slane %v3670_v50, 5  ;;  %v8489_v52 = vcombine.low %v7042_v33, %v7047_v56  ;;  %v3626_v46 = vrot.slane %v3625_v10, 4  ;;  %v3636_v54 = vrot.slane %v3635_v16, 4  ;;  %v6482_v33 = vld [vmem:[%s6653_s27 + $0x6c] sm:$0xff]   ;;  %v1204_v16 = vld [vmem:[%s6653_s27 + $0x84] sm:$0xe] }
  0xc3   : > { %v3662_v62 = vshll.u32 %v5498_v20, 16  ;;  %v7427_v11 = vsel %vm6905_vm7, %v5177_v5, %v1309_v30  ;;  %v7431_v40 = vsel %vm6905_vm7, %v1311_v48, %v1312_v24  ;;  %v3682_v9 = vrot.slane %v3680_v39, 4  ;;  %v6483_v48 = vld [vmem:[%s6653_s27 + $0x78] sm:$0xff]  }
  0xc4   : > { %v3649_v10 = vor.u32 %v3648_v27, %v3645_v38  ;;  %v3659_v20 = vor.u32 %v3658_v55, %v7406_v37  ;;  %v1316_v30 = vrot.slane %v6534_v8, 5  ;;  %v3673_v38 = vor.u32 %v3672_v12, %v3669_v6  ;;  %v5502_v5 = vld [vmem:[%s6653_s27 + $0x3c] sm:$0xf] }
  0xc5   : > { %6075 = vmatmul.mubr.msk.bf16.gmra.mrb[8].mxu0 %vm687_vm3, %v6478_v61  ;;  %v3640_v61 = vrot.slane %v3638_v25, 5  ;;  %v1203_v25 = vld [vmem:[%s6653_s27 + $0x78] sm:$0xe]  ;;  %v7458_v50 = vrot.slane %v3662_v62, 5  ;;  %v3683_v39 = vor.u32 %v3682_v9, %v7433_v35  ;;  %v3686_v55 = vshll.u32 %v7442_v18, 16 }
  0xc6   : > { %5921 = vmatmul.mubr.msk.bf16.gmra.mrb[24].mxu1 %vm687_vm3, %v8488_v43  ;;  %6078 = vmatprep.mubr.msk.bf16.mxu0 %vm687_vm3, %v6480_v21  ;;  %v3631_v21 = vsel %vm6679_vm4, %v3626_v46, %v7385_v7  ;;  %v5178_v24 = vrot.slane %v1203_v25, 9  ;;  %v6535_v43 = vld [vmem:[%s6653_s27 + $0x88] sm:$0xf]  ;;  %v7466_v7 = vld [vmem:[%s6653_s27 + $0x40] sm:$0xf]  ;;  %v3650_v12 = vrot.slane %v3649_v10, 4  ;;  %v8492_v62 = vcombine.low %v7062_v14, %v7071_v42 }
  0xc7   : > { %5924 = vmatprep.mubr.msk.bf16.mxu1 %vm687_vm3, %v8489_v52  ;;  %v3641_v31 = vsel %vm6679_vm4, %v3636_v54, %v3640_v61  ;;  %v1323_v6 = vrot.slane %v6535_v43, 5  ;;  %8491 = vst [vmem:[#allocation7_spill] sm:$0xff] %v7466_v7  ;;  %v3660_v52 = vrot.slane %v3659_v20, 4  ;;  %v1318_v46 = vrot.slane %v1316_v30, 4  ;;  %v6536_v54 = vld [vmem:[%s6653_s27 + $0x80] sm:$0x1] }
  0xc8   : > { %v1319_v61 = vrot.slane %v6536_v54, 5  ;;  %v3674_v9 = vrot.slane %v3673_v38, 4  ;;  %v5179_v25 = vrot.slane %v1204_v16, 9  ;;  %v3691_v8 = vshrl.u32 %v5502_v5, 16  ;;  %v6484_v10 = vld [vmem:[%s6653_s27 + $0x84] sm:$0xff]  }
  0xc9   : > { %v3694_v43 = vshll.u32 %v5502_v5, 16  ;;  %v7480_v20 = vcombine.low %v3631_v21, %v3641_v31  ;;  %v7484_v14 = vsel %vm736_vm0, %v7284_v26, 0  ;;  %v3704_v38 = vshrl.u32 %v7466_v7, 16  ;;  %v6485_v21 = vld [vmem:[%s6653_s27 + $0x90] sm:$0xff]   ;;  %v6541_v18 = vld [vmem:[%s6653_s27 + $0xa0] sm:$0xf] }
  0xca   : > { %v3684_v16 = vrot.slane %v3683_v39, 4  ;;  %v3688_v5 = vrot.slane %v3686_v55, 5  ;;  %v1325_v54 = vrot.slane %v1323_v6, 4  ;;  %v3655_v31 = vsel %vm6679_vm4, %v3650_v12, %v7406_v37 }
  0xcb   : > { %v3665_v26 = vsel %vm6679_vm4, %v3660_v52, %v7458_v50  ;;  %v7499_v39 = vsel %vm6905_vm7, %v5178_v24, %v1316_v30  ;;  %v7503_v55 = vsel %vm6905_vm7, %v1318_v46, %v1319_v61  ;;  %v3679_v37 = vsel %vm6679_vm4, %v3674_v9, %v7433_v35  ;;  %v5508_v30 = vld [vmem:[%s6653_s27 + $0x54] sm:$0xf]  ;;  %v7520_v24 = vld [vmem:[%s6653_s27 + $0x58] sm:$0xf]  ;;  %v7525_v61 = vld [vmem:[%s6653_s27 + $0x90] sm:$0xe] }
  0xcc   : > { %v7516_v12 = vsel %vm6905_vm7, %v5179_v25, %v1323_v6  ;;  %v3693_v50 = vrot.slane %v3691_v8, 4  ;;  %v3696_v52 = vrot.slane %v3694_v43, 5  ;;  %v3706_v46 = vrot.slane %v3704_v38, 4 }
  0xcd   : > { %6079 = vmatmul.mubr.msk.bf16.gmra.mrb[12].mxu0 %vm687_vm3, %v6482_v33  ;;  %v8493_v33 = vcombine.low %v7269_v0, %v7288_v23  ;;  %v6537_v0 = vld [vmem:[%s6653_s27 + $0x8c] sm:$0x1]  ;;  %v3689_v36 = vsel %vm6679_vm4, %v3684_v16, %v3688_v5  ;;  %v3739_v25 = vshrl.u32 %v5508_v30, 16  ;;  %v3742_v8 = vshll.u32 %v5508_v30, 16 }
  0xce   : > { %5925 = vmatmul.mubr.msk.bf16.gmra.mrb[28].mxu1 %vm687_vm3, %v8492_v62  ;;  %6082 = vmatprep.mubr.msk.bf16.mxu0 %vm687_vm3, %v6483_v48  ;;  %v3700_v48 = vshll.u32 %v7466_v7, 16  ;;  %v1326_v23 = vrot.slane %v6537_v0, 5  ;;  %v5505_v62 = vld [vmem:[%s6653_s27 + $0x48] sm:$0xf]  ;;  %v7509_v0 = vld [vmem:[%s6653_s27 + $0x4c] sm:$0xf]  ;;  %v8495_v38 = vcombine.low %v7273_v29, %v7277_v53  ;;  %v7543_v16 = vcombine.low %v3655_v31, %v3665_v26 }
  0xcf   : > { %5930 = vmatprep.mubr.msk.bf16.mxu1 %vm687_vm3, %v8493_v33  ;;  %v7506_v33 = vld [vmem:[%s6653_s27 + $0x44] sm:$0x1]  ;;  %v3715_v27 = vshrl.u32 %v5505_v62, 16  ;;  %v3718_v15 = vshll.u32 %v5505_v62, 16  ;;  %v3724_v6 = vshll.u32 %v7509_v0, 16  ;;  %v3728_v9 = vshrl.u32 %v7509_v0, 16 }
  0xd0   : > { %8494 = vst [vmem:[#allocation8_spill] sm:$0xff] %v7506_v33  ;;  %v7522_v28 = vrot.slane %v3700_v48, 5  ;;  %v7531_v35 = vsel %vm6905_vm7, %v1325_v54, %v1326_v23  ;;  %v3748_v43 = vshll.u32 %v7520_v24, 16  ;;  %v3752_v48 = vshrl.u32 %v7520_v24, 16  ;;  %v5511_v31 = vld [vmem:[%s6653_s27 + $0x60] sm:$0xf] }
  0xd1   : > { %v3710_v5 = vshll.u32 %v7506_v33, 16  ;;  %v5180_v54 = vrot.slane %v7525_v61, 9  ;;  %v8496_v23 = vcombine.low %v7314_v34, %v7330_v4  ;;  %v7554_v29 = vcombine.low %v3679_v37, %v3689_v36  ;;  %v6486_v26 = vld [vmem:[%s6653_s27 + $0x9c] sm:$0xff]   ;;  %v6487_v30 = vld [vmem:[%s6653_s27 + $0xa8] sm:$0xff]  }
  0xd2   : > { %v3697_v53 = vor.u32 %v3696_v52, %v3693_v50  ;;  %v3717_v62 = vrot.slane %v3715_v27, 4  ;;  %v7565_v34 = vrot.slane %v3724_v6, 5  ;;  %v3730_v4 = vrot.slane %v3728_v9, 4  ;;  %v6538_v36 = vld [vmem:[%s8464_s1 + $0x8] sm:$0x3] }
  0xd3   : > { %v3741_v27 = vrot.slane %v3739_v25, 4  ;;  %v3744_v37 = vrot.slane %v3742_v8, 5  ;;  %v7574_v50 = vrot.slane %v3748_v43, 5  ;;  %v3754_v52 = vrot.slane %v3752_v48, 4  ;;  %v6539_v6 = vld [vmem:[%s6653_s27 + $0x94] sm:$0xf] }
  0xd4   : > { %v7580_v9 = vld [vmem:[%s6653_s27 + $0x64] sm:$0xf]  ;;  %v3763_v61 = vshrl.u32 %v5511_v31, 16  ;;  %v7582_v22 = vrot.slane %v3697_v53, 4  ;;  %v1337_v25 = vrot.slane %v6541_v18, 5  ;;  %v3731_v43 = vor.u32 %v3730_v4, %v7565_v34 }
  0xd5   : > { %6083 = vmatmul.mubr.msk.bf16.gmra.mrb[16].mxu0 %vm687_vm3, %v6484_v10  ;;  %8497 = vst [vmem:[#allocation9_spill] sm:$0xff] %v7580_v9  ;;  %v3766_v10 = vshll.u32 %v5511_v31, 16  ;;  %v3745_v31 = vor.u32 %v3744_v37, %v3741_v27  ;;  %v3755_v53 = vor.u32 %v3754_v52, %v7574_v50  ;;  %v8498_v18 = vcombine.low %v7321_v19, %v7334_v58  ;;  %v6488_v37 = vld [vmem:[%s6653_s27 + $0xb4] sm:$0xff]  }
  0xd6   : > { %5931 = vmatmul.mubr.msk.bf16.vlgmr.msra.gmra.mrb[0].mxu1 %vm687_vm3, %v8495_v38  ;;  %6086 = vmatprep.mubr.msk.bf16.mxu0 %vm687_vm3, %v6485_v21  ;;  %v3720_v21 = vrot.slane %v3718_v15, 5  ;;  %v7563_v38 = vld [vmem:[%s6653_s27 + $0x50] sm:$0x1]  ;;  %v7572_v15 = vld [vmem:[%s6653_s27 + $0x5c] sm:$0x1]  ;;  %v8499_v27 = vcombine.low %v7339_v2, %v7343_v1  ;;  %v1339_v52 = vrot.slane %v1337_v25, 4 }
  0xd7   : > { %5963 = vmatpush3.bf16.msra.mxu1 %v7310_v49  ;;  %5934 = vmatprep.mubr.msk.bf16.mxu1 %vm687_vm3, %v8496_v23  ;;  %v3707_v49 = vor.u32 %v3706_v46, %v7522_v28  ;;  %v7576_v46 = vrot.slane %v3710_v5, 5  ;;  %v1330_v23 = vrot.slane %v6539_v6, 5  ;;  %v3734_v48 = vshll.u32 %v7563_v38, 16  ;;  %v1206_v5 = vld [vmem:[%s6653_s27 + $0x9c] sm:$0xe] }
  0xd8   : > { %6429 = vmatprep.subr.msk.bf16.mxu1 %vm736_vm0, %v6538_v36  ;;  %v6540_v36 = vld [vmem:[%s6653_s27 + $0x98] sm:$0x1]  ;;  %v3721_v7 = vor.u32 %v3720_v21, %v3717_v62  ;;  %v3758_v6 = vshll.u32 %v7572_v15, 16  ;;  %v3776_v62 = vshrl.u32 %v7580_v9, 16  ;;  %v3768_v4 = vrot.slane %v3766_v10, 5 }
  0xd9   : > { %v1333_v33 = vrot.slane %v6540_v36, 5  ;;  %v3708_v8 = vrot.slane %v3707_v49, 4  ;;  %v3772_v36 = vshll.u32 %v7580_v9, 16  ;;  %v7601_v21 = vsel %vm6905_vm7, %v5180_v54, %v1330_v23  ;;  %v7612_v2 = vld [vmem:[%s6653_s27 + $0x68] sm:$0x1] }
  0xda   : > { %v3765_v49 = vrot.slane %v3763_v61, 4  ;;  %v3722_v19 = vrot.slane %v3721_v7, 4  ;;  %v5181_v58 = vrot.slane %v1206_v5, 9  ;;  %v3732_v3 = vrot.slane %v3731_v43, 4  ;;  %8500 = vst [vmem:[#allocation10_spill] sm:$0xff] %v7612_v2  ;;  %v6489_v5 = vld [vmem:[%s6653_s27 + $0xc0] sm:$0xff]  }
  0xdb   : > { %v3736_v54 = vrot.slane %v3734_v48, 5  ;;  %v3760_v63 = vrot.slane %v3758_v6, 5  ;;  %v1344_v61 = vrot.slane %v7047_v56, 5  ;;  %v3746_v10 = vrot.slane %v3745_v31, 4  ;;  %v1208_v31 = vld [vmem:[%s6653_s27 + $0xb4] sm:$0xe] }
  0xdc   : > { %v3756_v51 = vrot.slane %v3755_v53, 4  ;;  %v7614_v1 = vrot.slane %v3772_v36, 5  ;;  %v3778_v7 = vrot.slane %v3776_v62, 4  ;;  %v3703_v43 = vsel %vm6679_vm4, %v7582_v22, %v7522_v28  ;;  %v6543_v62 = vld [vmem:[%s6653_s27 + $0xb0] sm:$0x1] }
  0xdd   : > { %6087 = vmatmul.mubr.msk.bf16.gmra.mrb[20].mxu0 %vm687_vm3, %v6486_v26  ;;  %v1332_v26 = vrot.slane %v1330_v23, 4  ;;  %v1207_v23 = vld [vmem:[%s6653_s27 + $0xa8] sm:$0xe]  ;;  %v3713_v48 = vsel %vm6679_vm4, %v3708_v8, %v7576_v46  ;;  %v3769_v6 = vor.u32 %v3768_v4, %v3765_v49  ;;  %v3727_v53 = vsel %vm6679_vm4, %v3722_v19, %v7565_v34  ;;  %v5514_v46 = vld [vmem:[%s6653_s27 + $0x6c] sm:$0xf] }
  0xde   : > { %5935 = vmatmul.mubr.msk.bf16.gmra.mrb[4].mxu1 %vm687_vm3, %v8498_v18  ;;  %6090 = vmatprep.mubr.msk.bf16.mxu0 %vm687_vm3, %v6487_v30  ;;  %v6542_v18 = vld [vmem:[%s6653_s27 + $0xa4] sm:$0x1]  ;;  %v7634_v36 = vsel %vm6905_vm7, %v5181_v58, %v1337_v25  ;;  %v5182_v28 = vrot.slane %v1207_v23, 9  ;;  %v1346_v8 = vrot.slane %v1344_v61, 4  ;;  %v3782_v49 = vshll.u32 %v7612_v2, 16 }
  0xdf   : > { %5938 = vmatprep.mubr.msk.bf16.mxu1 %vm687_vm3, %v8499_v27  ;;  %v1340_v30 = vrot.slane %v6542_v18, 5  ;;  %v7626_v56 = vsel %vm6905_vm7, %v1332_v26, %v1333_v33  ;;  %v3737_v33 = vsel %vm6679_vm4, %v3732_v3, %v3736_v54  ;;  %v1347_v26 = vrot.slane %v6543_v62, 5  ;;  %v5517_v18 = vld [vmem:[%s6653_s27 + $0x78] sm:$0xf]  ;;  %v7689_v54 = vld [vmem:[%s6653_s27 + $0xbc] sm:$0x1] }
  0xe0   : > { %v3751_v34 = vsel %vm6679_vm4, %v3746_v10, %v7574_v50  ;;  %v3761_v25 = vsel %vm6679_vm4, %v3756_v51, %v3760_v63  ;;  %v3779_v4 = vor.u32 %v3778_v7, %v7614_v1  ;;  %v5183_v27 = vrot.slane %v1208_v31, 9  ;;  %v7663_v51 = vld [vmem:[%s6653_s27 + $0x70] sm:$0xf]  ;;  %v7693_v10 = vld [vmem:[%s6653_s27 + $0x7c] sm:$0xf] }
  0xe1   : > { %v7638_v22 = vsel %vm6905_vm7, %v1339_v52, %v1340_v30  ;;  %v8502_v3 = vcombine.low %v7356_v45, %v7360_v59  ;;  %v7659_v19 = vrot.slane %v3769_v6, 4  ;;  %v1351_v50 = vrot.slane %v7071_v42, 5  ;;  %8503 = vst [vmem:[#allocation12_spill] sm:$0xff] %v7663_v51  ;;  %8505 = vst [vmem:[#allocation13_spill] sm:$0xff] %v7693_v10  ;;  %v5520_v7 = vld [vmem:[%s6653_s27 + $0x84] sm:$0xf] }
  0xe2   : > { %8501 = vst [vmem:[#allocation11_spill] sm:$0xff] %v7638_v22  ;;  %v3787_v63 = vshrl.u32 %v5514_v46, 16  ;;  %v8504_v45 = vcombine.low %v7364_v47, %v7391_v41  ;;  %v7671_v58 = vcombine.low %v3727_v53, %v3737_v33  ;;  %v7677_v42 = vsel %vm6905_vm7, %v5182_v28, %v1344_v61  ;;  %v6490_v61 = vld [vmem:[%s6653_s27 + $0xcc] sm:$0xff]   ;;  %v7705_v31 = vld [vmem:[%s6653_s27 + $0x88] sm:$0xf] }
  0xe3   : > { %v7680_v30 = vcombine.low %v3751_v34, %v3761_v25  ;;  %v7684_v47 = vsel %vm6905_vm7, %v1346_v8, %v1347_v26  ;;  %v7686_v41 = vrot.slane %v3782_v49, 5  ;;  %v3796_v6 = vshll.u32 %v7663_v51, 16  ;;  %8506 = vst [vmem:[#allocation14_spill] sm:$0xff] %v7705_v31  ;;  %v5523_v62 = vld [vmem:[%s6653_s27 + $0x90] sm:$0xf] }
  0xe4   : > { %v7711_v28 = vrot.slane %v1351_v50, 4  ;;  %v7713_v33 = vrot.slane %v3787_v63, 4  ;;  %v3800_v8 = vshrl.u32 %v7663_v51, 16  ;;  %v3811_v26 = vshrl.u32 %v5517_v18, 16  ;;  %v7720_v25 = vld [vmem:[%s6653_s27 + $0x94] sm:$0xf] }
  0xe5   : > { %6091 = vmatmul.mubr.msk.bf16.gmra.mrb[24].mxu0 %vm687_vm3, %v6488_v37  ;;  %v7657_v37 = vcombine.low %v3703_v43, %v3713_v48  ;;  %v7701_v43 = vsel %vm6905_vm7, %v5183_v27, %v1351_v50  ;;  %v3790_v48 = vshll.u32 %v5514_v46, 16  ;;  %v3814_v49 = vshll.u32 %v5517_v18, 16  ;;  %8507 = vst [vmem:[#allocation15_spill] sm:$0xff] %v7720_v25  ;;  %v7758_v2 = vld [vmem:[%s6653_s27 + $0x8c] sm:$0x1] }
  0xe6   : > { %5939 = vmatmul.mubr.msk.bf16.gmra.mrb[8].mxu1 %vm687_vm3, %v8502_v3  ;;  %6094 = vmatprep.mubr.msk.bf16.mxu0 %vm687_vm3, %v6489_v5  ;;  %v7697_v5 = vrot.slane %v3779_v4, 4  ;;  %v3820_v46 = vshll.u32 %v7693_v10, 16  ;;  %v3824_v34 = vshrl.u32 %v7693_v10, 16  ;;  %v3835_v4 = vshrl.u32 %v5520_v7, 16 }
  0xe7   : > { %5942 = vmatprep.mubr.msk.bf16.mxu1 %vm687_vm3, %v8504_v45  ;;  %v3838_v27 = vshll.u32 %v5520_v7, 16  ;;  %v3844_v3 = vshll.u32 %v7705_v31, 16  ;;  %v3848_v50 = vshrl.u32 %v7705_v31, 16  ;;  %v7730_v45 = vld [vmem:[%s6653_s27 + $0x74] sm:$0x1]  ;;  %v3792_v18 = vrot.slane %v3790_v48, 5 }
  0xe8   : > { %v3859_v52 = vshrl.u32 %v5523_v62, 16  ;;  %v3862_v53 = vshll.u32 %v5523_v62, 16  ;;  %v8508_v7 = vcombine.low %v7375_v60, %v7400_v44  ;;  %v3802_v59 = vrot.slane %v3800_v8, 4  ;;  %v5526_v48 = vld [vmem:[%s6653_s27 + $0x9c] sm:$0xf] }
  0xe9   : > { %v3868_v63 = vshll.u32 %v7720_v25, 16  ;;  %v3872_v23 = vshrl.u32 %v7720_v25, 16  ;;  %v8509_v62 = vcombine.low %v7415_v17, %v7419_v57  ;;  %v7748_v44 = vld [vmem:[%s6653_s27 + $0x80] sm:$0x1]  ;;  %v3813_v60 = vrot.slane %v3811_v26, 4 }
  0xea   : > { %8510 = vst [vmem:[#allocation16_spill] sm:$0xff] %v7748_v44  ;;  %v3837_v31 = vrot.slane %v3835_v4, 4  ;;  %v3840_v8 = vrot.slane %v3838_v27, 5  ;;  %v7752_v10 = vrot.slane %v3844_v3, 5  ;;  %v3850_v51 = vrot.slane %v3848_v50, 4 }
  0xeb   : > { %v7755_v25 = vld [vmem:[%s6653_s27 + $0xa0] sm:$0xf]  ;;  %v3861_v17 = vrot.slane %v3859_v52, 4  ;;  %v3864_v57 = vrot.slane %v3862_v53, 5  ;;  %v3886_v9 = vshll.u32 %v5526_v48, 16  ;;  %v3793_v26 = vor.u32 %v3792_v18, %v7713_v33 }
  0xec   : > { %v3830_v27 = vshll.u32 %v7748_v44, 16  ;;  %v7767_v3 = vld [vmem:[%s6653_s27 + $0x98] sm:$0x1]  ;;  %v3892_v50 = vshll.u32 %v7755_v25, 16  ;;  %v3896_v52 = vshrl.u32 %v7755_v25, 16  ;;  %v3841_v22 = vor.u32 %v3840_v8, %v3837_v31 }
  0xed   : > { %6095 = vmatmul.mubr.msk.bf16.gmra.mrb[28].mxu0 %vm687_vm3, %v6490_v61  ;;  %v7738_v61 = vrot.slane %v3796_v6, 5  ;;  %v3826_v6 = vrot.slane %v3824_v34, 4  ;;  %v3874_v34 = vrot.slane %v3872_v23, 4  ;;  %v3854_v33 = vshll.u32 %v7758_v2, 16 }
  0xee   : > { %5943 = vmatmul.mubr.msk.bf16.gmra.mrb[12].mxu1 %vm687_vm3, %v8508_v7  ;;  %6100 = vmatprep.mubr.msk.bf16.mxu0 %vm687_vm3, %v7480_v20  ;;  %v3816_v7 = vrot.slane %v3814_v49, 5  ;;  %v7750_v20 = vrot.slane %v3820_v46, 5  ;;  %v3806_v49 = vshll.u32 %v7730_v45, 16  ;;  %v7762_v46 = vrot.slane %v3868_v63, 5 }
  0xef   : > { %5946 = vmatprep.mubr.msk.bf16.mxu1 %vm687_vm3, %v8509_v62  ;;  %v3883_v62 = vshrl.u32 %v5526_v48, 16  ;;  %v3803_v4 = vor.u32 %v3802_v59, %v7738_v61  ;;  %v3851_v23 = vor.u32 %v3850_v51, %v7752_v10  ;;  %v3865_v59 = vor.u32 %v3864_v57, %v3861_v17  ;;  %v7800_v57 = vld [vmem:[%s6653_s27 + $0xa4] sm:$0x1] }
  0xf0   : > { %v3817_v53 = vor.u32 %v3816_v7, %v3813_v60  ;;  %v3827_v48 = vor.u32 %v3826_v6, %v7750_v20  ;;  %v3888_v18 = vrot.slane %v3886_v9, 5  ;;  %v8511_v44 = vcombine.low %v7427_v11, %v7431_v40 }
  0xf1   : > { %v3885_v63 = vrot.slane %v3883_v62, 4  ;;  %v8512_v31 = vrot.slane %v7689_v54, 5  ;;  %v3808_v51 = vrot.slane %v3806_v49, 5  ;;  %v3875_v60 = vor.u32 %v3874_v34, %v7762_v46  ;;  %v7803_v34 = vld [vmem:[%s6653_s27 + $0xac] sm:$0xf] }
  0xf2   : > { %v3878_v9 = vshll.u32 %v7767_v3, 16  ;;  %v8513_v11 = vcombine.low %v7499_v39, %v7503_v55  ;;  %v3794_v40 = vrot.slane %v3793_v26, 4  ;;  %v7796_v54 = vrot.slane %v3892_v50, 5 }
  0xf3   : > { %v3818_v7 = vrot.slane %v3817_v53, 4  ;;  %v3828_v6 = vrot.slane %v3827_v48, 4  ;;  %v3832_v8 = vrot.slane %v3830_v27, 5  ;;  %v3856_v17 = vrot.slane %v3854_v33, 5  ;;  %v7813_v48 = vld [vmem:[%s6653_s27 + $0xb0] sm:$0x1] }
  0xf4   : > { %v3842_v39 = vrot.slane %v3841_v22, 4  ;;  %v3852_v55 = vrot.slane %v3851_v23, 4  ;;  %v3866_v62 = vrot.slane %v3865_v59, 4  ;;  %v3889_v49 = vor.u32 %v3888_v18, %v3885_v63 }
  0xf5   : > { %6101 = vmatmul.mubr.msk.bf16.vlgmr.msra.gmra.mrb[0].mxu0 %vm687_vm3, %v7543_v16  ;;  %v7786_v16 = vsel %vm6905_vm7, %v7711_v28, %v8512_v31  ;;  %v3898_v28 = vrot.slane %v3896_v52, 4  ;;  %v3880_v26 = vrot.slane %v3878_v9, 5  ;;  %v3799_v52 = vsel %vm6679_vm4, %v3794_v40, %v7738_v61 }
  0xf6   : > { %5947 = vmatmul.mubr.msk.bf16.gmra.mrb[16].mxu1 %vm687_vm3, %v8511_v44  ;;  %6133 = vmatpush3.bf16.msra.mxu0 %v7484_v14  ;;  %v3804_v14 = vrot.slane %v3803_v4, 4  ;;  %v5529_v44 = vld [vmem:[%s6653_s27 + $0xa8] sm:$0xf]  ;;  %v3902_v22 = vshll.u32 %v7800_v57, 16  ;;  %v3823_v33 = vsel %vm6679_vm4, %v3818_v7, %v7750_v20  ;;  %v3833_v23 = vsel %vm6679_vm4, %v3828_v6, %v3832_v8 }
  0xf7   : > { %5950 = vmatprep.mubr.msk.bf16.mxu1 %vm687_vm3, %v8513_v11  ;;  %6104 = vmatprep.mubr.msk.bf16.mxu0 %vm687_vm3, %v7554_v29  ;;  %v3876_v29 = vrot.slane %v3875_v60, 4  ;;  %v3907_v4 = vshrl.u32 %v5529_v44, 16  ;;  %v3910_v50 = vshll.u32 %v5529_v44, 16  ;;  %v3899_v53 = vor.u32 %v3898_v28, %v7796_v54  ;;  %v5578_v11 = vld [vmem:[%s6653_s27 + $0x48] sm:$0xe] }
  0xf8   : > { %v3809_v27 = vsel %vm6679_vm4, %v3804_v14, %v3808_v51  ;;  %v3916_v59 = vshll.u32 %v7803_v34, 16  ;;  %v3920_v61 = vshrl.u32 %v7803_v34, 16  ;;  %v3847_v63 = vsel %vm6679_vm4, %v3842_v39, %v7752_v10  ;;  %v7878_v39 = vld [vmem:[%s6653_s27 + $0xb8] sm:$0xf] }
  0xf9   : > { %v3857_v18 = vsel %vm6679_vm4, %v3852_v55, %v3856_v17  ;;  %v3871_v20 = vsel %vm6679_vm4, %v3866_v62, %v7762_v46  ;;  %v3890_v31 = vrot.slane %v3889_v49, 4  ;;  %v8514_v51 = vcombine.low %v7516_v12, %v7531_v35 }
  0xfa   : > { %v3909_v10 = vrot.slane %v3907_v4, 4  ;;  %v3912_v60 = vrot.slane %v3910_v50, 5  ;;  %v3926_v9 = vshll.u32 %v7813_v48, 16  ;;  %v8515_v46 = vcombine.low %v7601_v21, %v7626_v56  ;;  %v5532_v21 = vld [vmem:[%s6653_s27 + $0xb4] sm:$0xf] }
  0xfb   : > { %v5199_v12 = vcombine.low %v7677_v42, %v7684_v47  ;;  %v8516_v35 = vsel %vm6679_vm4, %v7697_v5, %v7686_v41  ;;  %v3900_v14 = vrot.slane %v3899_v53, 4  ;;  %v3904_v28 = vrot.slane %v3902_v22, 5  ;;  %v5580_v4 = vld [vmem:[%s6653_s27 + $0x60] sm:$0xe]  ;;  %v5581_v53 = vld [vmem:[%s6653_s27 + $0x6c] sm:$0xe] }
  0xfc   : > { %v5200_v56 = vcombine.low %v7701_v43, %v7786_v16  ;;  %v7861_v44 = vcombine.low %v3799_v52, %v3809_v27  ;;  %v7863_v42 = vrot.slane %v3916_v59, 5  ;;  %v3922_v47 = vrot.slane %v3920_v61, 4  ;;  %v8525_v16 = vld [vmem:[#allocation4_spill] sm:$0xff] }
  0xfd   : > { %6105 = vmatmul.mubr.msk.bf16.gmra.mrb[4].mxu0 %vm687_vm3, %v7657_v37  ;;  %v3881_v37 = vsel %vm6679_vm4, %v3876_v29, %v3880_v26  ;;  %v7865_v41 = vcombine.low %v3823_v33, %v3833_v23  ;;  %v7867_v5 = vcombine.low %v3847_v63, %v3857_v18  ;;  %v3895_v6 = vsel %vm6679_vm4, %v3890_v31, %v7796_v54  ;;  %v8518_v23 = vld [vmem:[#allocation11_spill] sm:$0xff]  ;;  %v5535_v63 = vld [vmem:[%s6653_s27 + $0xc0] sm:$0xf]  ;;  %v8520_v18 = vld [vmem:[#allocation9_spill] sm:$0xff] }
  0xfe   : > { %5951 = vmatmul.mubr.msk.bf16.gmra.mrb[20].mxu1 %vm687_vm3, %v8514_v51  ;;  %6108 = vmatprep.mubr.msk.bf16.mxu0 %vm687_vm3, %v7671_v58  ;;  %v8517_v58 = vsel %vm6679_vm4, %v7659_v19, %v7614_v1  ;;  %v7869_v7 = vcombine.low %v3871_v20, %v3881_v37  ;;  %v5594_v1 = vrot.slane %v5578_v11, 9  ;;  %v5579_v19 = vld [vmem:[%s6653_s27 + $0x54] sm:$0xe]  ;;  %v3913_v8 = vor.u32 %v3912_v60, %v3909_v10  ;;  %v8521_v31 = vld [vmem:[#allocation10_spill] sm:$0xff] }
  0xff   : > { %5954 = vmatprep.mubr.msk.bf16.mxu1 %vm687_vm3, %v8515_v46  ;;  %v5548_v40 = vcombine.low %v8517_v58, %v8516_v35  ;;  %v7875_v17 = vrot.slane %v3926_v9, 5  ;;  %v3931_v55 = vshrl.u32 %v5532_v21, 16  ;;  %v3905_v62 = vsel %vm6679_vm4, %v3900_v14, %v3904_v28  ;;  %v8522_v9 = vld [vmem:[#allocation12_spill] sm:$0xff]  ;;  %v7927_v35 = vld [vmem:[%s6653_s27 + $0xbc] sm:$0x1] }
 0x100   : > { %v3934_v49 = vshll.u32 %v5532_v21, 16  ;;  %v4390_v29 = vrot.slane %v7509_v0, 5  ;;  %v4393_v26 = vrot.slane %v7563_v38, 5  ;;  %v3923_v50 = vor.u32 %v3922_v47, %v7863_v42  ;;  %v7930_v58 = vld [vmem:[%s6653_s27 + $0xc4] sm:$0xf] }
 0x101   : > { %v5595_v52 = vrot.slane %v5579_v19, 9  ;;  %v4397_v54 = vrot.slane %v7520_v24, 5  ;;  %v4400_v27 = vrot.slane %v7572_v15, 5  ;;  %v3940_v22 = vshll.u32 %v7878_v39, 16  ;;  %v5582_v19 = vld [vmem:[%s6653_s27 + $0x78] sm:$0xe] }
 0x102   : > { %v3944_v33 = vshrl.u32 %v7878_v39, 16  ;;  %v7895_v0 = vsel %vm6905_vm7, %v5594_v1, %v4390_v29  ;;  %v4392_v38 = vrot.slane %v4390_v29, 4  ;;  %v8519_v59 = vcombine.low %v7634_v36, %v8518_v23  ;;  %v8523_v23 = vld [vmem:[#allocation13_spill] sm:$0xff] }
 0x103   : > { %v7902_v24 = vcombine.low %v3895_v6, %v3905_v62  ;;  %v7906_v15 = vsel %vm6905_vm7, %v5595_v52, %v4397_v54  ;;  %v5596_v61 = vrot.slane %v5580_v4, 9  ;;  %v4404_v20 = vrot.slane %v8520_v18, 5  ;;  %v6491_v6 = vld [vmem:[%s6653_s27 + $0xc] sm:$0xff]  }
 0x104   : > { %v7912_v36 = vsel %vm6905_vm7, %v4392_v38, %v4393_v26  ;;  %v4407_v51 = vrot.slane %v8521_v31, 5  ;;  %v5597_v37 = vrot.slane %v5581_v53, 9  ;;  %v4411_v11 = vrot.slane %v8522_v9, 5 }
 0x105   : > { %6109 = vmatmul.mubr.msk.bf16.gmra.mrb[8].mxu0 %vm687_vm3, %v7680_v30  ;;  %v4399_v30 = vrot.slane %v4397_v54, 4  ;;  %v5611_v10 = vcombine.low %v7895_v0, %v7912_v36  ;;  %v4414_v46 = vrot.slane %v7730_v45, 5  ;;  %v7936_v14 = vsel %vm6905_vm7, %v5596_v61, %v4404_v20 }
 0x106   : > { %5955 = vmatmul.mubr.msk.bf16.gmra.mrb[24].mxu1 %vm687_vm3, %v8519_v59  ;;  %6112 = vmatprep.mubr.msk.bf16.mxu0 %vm687_vm3, %v5548_v40  ;;  %v4406_v28 = vrot.slane %v4404_v20, 4  ;;  %v7938_v21 = vrot.slane %v3931_v55, 4  ;;  %v3955_v47 = vshrl.u32 %v5535_v63, 16  ;;  %v7942_v45 = vsel %vm6905_vm7, %v5597_v37, %v4411_v11  ;;  %v5309_v55 = vld [vmem:[%s6653_s27 + $0x78] sm:$0xf]  ;;  %v8524_v59 = vld [vmem:[#allocation16_spill] sm:$0xff] }
 0x107   : > { %5958 = vmatprep.mubr.msk.bf16.mxu1 %vm687_vm3, %v5199_v12  ;;  %v7920_v60 = vsel %vm6905_vm7, %v4399_v30, %v4400_v27  ;;  %v7924_v12 = vrot.slane %v3913_v8, 4  ;;  %v4413_v1 = vrot.slane %v4411_v11, 4  ;;  %v7946_v8 = vrot.slane %v3923_v50, 4 }
 0x108   : > { %v5612_v40 = vcombine.low %v7906_v15, %v7920_v60  ;;  %v7948_v62 = vrot.slane %v3934_v49, 5  ;;  %v3958_v29 = vshll.u32 %v5535_v63, 16  ;;  %v7952_v26 = vsel %vm6905_vm7, %v4406_v28, %v4407_v51  ;;  %v8527_v28 = vld [vmem:[#allocation14_spill] sm:$0xff] }
 0x109   : > { %v7955_v4 = vrot.slane %v3940_v22, 5  ;;  %v7957_v52 = vrot.slane %v3944_v33, 4  ;;  %v5613_v54 = vcombine.low %v7936_v14, %v7952_v26  ;;  %v7963_v27 = vsel %vm6905_vm7, %v4413_v1, %v4414_v46  ;;  %v5583_v33 = vld [vmem:[%s6653_s27 + $0x84] sm:$0xe]  ;;  %v6492_v1 = vld [vmem:[%s6653_s27 + $0x18] sm:$0xff]  }
 0x10a   : > { %v3950_v49 = vshll.u32 %v7927_v35, 16  ;;  %v3964_v50 = vshll.u32 %v7930_v58, 16  ;;  %v5614_v53 = vcombine.low %v7942_v45, %v7963_v27  ;;  %v5598_v22 = vrot.slane %v5582_v19, 9  ;;  %v6554_v60 = vld [vmem:[%s6653_s27 + $0xa0] sm:$0xf] }
 0x10b   : > { %v3957_v38 = vrot.slane %v3955_v47, 4  ;;  %v4421_v30 = vrot.slane %v8524_v59, 5  ;;  %v2277_v61 = vshrl.u32 %v5309_v55, 16  ;;  %v3960_v63 = vrot.slane %v3958_v29, 5  ;;  %v5538_v29 = vld [vmem:[%s6653_s27 + $0xcc] sm:$0xf] }
 0x10c   : > { %v3968_v18 = vshrl.u32 %v7930_v58, 16  ;;  %v2280_v43 = vshll.u32 %v5309_v55, 16  ;;  %v5599_v37 = vrot.slane %v5583_v33, 9  ;;  %v3919_v9 = vsel %vm6679_vm4, %v7924_v12, %v7863_v42  ;;  %v8006_v55 = vld [vmem:[%s6653_s27 + $0xd0] sm:$0xf] }
 0x10d   : > { %6113 = vmatmul.mubr.msk.bf16.gmra.mrb[12].mxu0 %vm687_vm3, %v7861_v44  ;;  %v4418_v44 = vrot.slane %v8523_v23, 5  ;;  %v2279_v51 = vrot.slane %v2277_v61, 4  ;;  %v3937_v11 = vor.u32 %v7948_v62, %v7938_v21  ;;  %v4425_v47 = vrot.slane %v8527_v28, 5  ;;  %v6493_v21 = vld [vmem:[%s6653_s27 + $0x24] sm:$0xff]   ;;  %v6558_v27 = vld [vmem:[%s6653_s27 + $0xac] sm:$0xf] }
 0x10e   : > { %5959 = vmatmul.mubr.msk.bf16.gmra.mrb[28].mxu1 %vm687_vm3, %v5200_v56  ;;  %6116 = vmatprep.mubr.msk.bf16.mxu0 %vm687_vm3, %v7865_v41  ;;  %v8526_v56 = vld [vmem:[#allocation5_spill] sm:$0xff]  ;;  %v2282_v46 = vrot.slane %v2280_v43, 5  ;;  %v3929_v19 = vsel %vm6679_vm4, %v7946_v8, %v7875_v17  ;;  %v4428_v12 = vrot.slane %v7758_v2, 5  ;;  %v8014_v62 = vrot.slane %v3964_v50, 5  ;;  %v5584_v8 = vld [vmem:[%s6653_s27 + $0x90] sm:$0xe] }
 0x10f   : > { %5964 = vmatprep.mubr.msk.bf16.mxu1 %vm687_vm3, %v6491_v6  ;;  %v2299_v41 = vsel %vm6679_vm4, %v8526_v56, %v8525_v16  ;;  %v7988_v20 = vsel %vm6905_vm7, %v5598_v22, %v4418_v44  ;;  %v4420_v31 = vrot.slane %v4418_v44, 4  ;;  %v3947_v6 = vor.u32 %v7957_v52, %v7955_v4  ;;  %v8020_v52 = vld [vmem:[%s6653_s27 + $0xc8] sm:$0x1]  ;;  %v8529_v16 = vld [vmem:[#allocation2_spill] sm:$0xff] }
 0x110   : > { %v3970_v22 = vrot.slane %v3968_v18, 4  ;;  %v2283_v17 = vor.u32 %v2282_v46, %v2279_v51  ;;  %v3952_v23 = vrot.slane %v3950_v49, 5  ;;  %v3961_v44 = vor.u32 %v3960_v63, %v3957_v38  ;;  %v8530_v51 = vld [vmem:[#allocation3_spill] sm:$0xff] }
 0x111   : > { %v8010_v42 = vsel %vm6905_vm7, %v4420_v31, %v4421_v30  ;;  %v8024_v59 = vsel %vm6905_vm7, %v5599_v37, %v4425_v47  ;;  %v4427_v30 = vrot.slane %v4425_v47, 4  ;;  %v3979_v2 = vshrl.u32 %v5538_v29, 16 }
 0x112   : > { %v5615_v33 = vcombine.low %v7988_v20, %v8010_v42  ;;  %v3982_v50 = vshll.u32 %v5538_v29, 16  ;;  %v3988_v61 = vshll.u32 %v8006_v55, 16  ;;  %v2284_v18 = vrot.slane %v2283_v17, 4  ;;  %v6494_v29 = vld [vmem:[%s6653_s27 + $0x30] sm:$0xff]  }
 0x113   : > { %v3992_v49 = vshrl.u32 %v8006_v55, 16  ;;  %v8035_v38 = vsel %vm6905_vm7, %v4427_v30, %v4428_v12  ;;  %v5600_v63 = vrot.slane %v5584_v8, 9  ;;  %v3971_v56 = vor.u32 %v3970_v22, %v8014_v62 }
 0x114   : > { %v3974_v31 = vshll.u32 %v8020_v52, 16  ;;  %v5616_v37 = vcombine.low %v8024_v59, %v8035_v38  ;;  %v5554_v46 = vcombine.low %v3919_v9, %v3929_v19  ;;  %v3938_v28 = vrot.slane %v3937_v11, 4  ;;  %v5585_v11 = vld [vmem:[%s6653_s27 + $0x9c] sm:$0xe] }
 0x115   : > { %6117 = vmatmul.mubr.msk.bf16.gmra.mrb[16].mxu0 %vm687_vm3, %v7867_v5  ;;  %v8528_v5 = vld [vmem:[#allocation15_spill] sm:$0xff]  ;;  %v3948_v47 = vrot.slane %v3947_v6, 4  ;;  %v3962_v12 = vrot.slane %v3961_v44, 4  ;;  %v4435_v8 = vrot.slane %v7767_v3, 5  ;;  %v3981_v30 = vrot.slane %v3979_v2, 4  ;;  %v6495_v19 = vld [vmem:[%s6653_s27 + $0x3c] sm:$0xff]  }
 0x116   : > { %5965 = vmatmul.mubr.msk.bf16.vlgmr.msra.gmra.mrb[0].mxu1 %vm687_vm3, %v6492_v1  ;;  %6120 = vmatprep.mubr.msk.bf16.mxu0 %vm687_vm3, %v7869_v7  ;;  %v4432_v43 = vrot.slane %v8528_v5, 5  ;;  %v2289_v7 = vsel %vm6679_vm4, %v2284_v18, %v8530_v51  ;;  %v3984_v18 = vrot.slane %v3982_v50, 5  ;;  %v8058_v5 = vrot.slane %v3988_v61, 5 }
 0x117   : > { %6167 = vmatpush3.bf16.msra.mxu1 %v8529_v16  ;;  %5968 = vmatprep.mubr.msk.bf16.mxu1 %vm687_vm3, %v6493_v21  ;;  %v8047_v1 = vcombine.low %v2289_v7, %v2299_v41  ;;  %v8051_v21 = vld [vmem:[%s6653_s27 + $0xd4] sm:$0x1]  ;;  %v3994_v9 = vrot.slane %v3992_v49, 4  ;;  %v3972_v41 = vrot.slane %v3971_v56, 4  ;;  %v3976_v6 = vrot.slane %v3974_v31, 5 }
 0x118   : > { %v8055_v22 = vsel %vm6905_vm7, %v5600_v63, %v4432_v43  ;;  %v4434_v17 = vrot.slane %v4432_v43, 4  ;;  %v3943_v63 = vsel %vm6679_vm4, %v3938_v28, %v7955_v4  ;;  %v3953_v2 = vsel %vm6679_vm4, %v3948_v47, %v3952_v23  ;;  %v6545_v16 = vld [vmem:[%s6653_s27 + $0x1c] sm:$0xf]  ;;  %v5586_v28 = vld [vmem:[%s6653_s27 + $0xa8] sm:$0xe] }
 0x119   : > { %v3998_v50 = vshll.u32 %v8051_v21, 16  ;;  %v5601_v61 = vrot.slane %v5585_v11, 9  ;;  %v4439_v49 = vrot.slane %v7755_v25, 5  ;;  %v3967_v4 = vsel %vm6679_vm4, %v3962_v12, %v8014_v62  ;;  %v5574_v62 = vld [vmem:[%s6653_s27 + $0x18] sm:$0xe]  ;;  %v6496_v47 = vld [vmem:[%s6653_s27 + $0x48] sm:$0xff]  }
 0x11a   : > { %v8064_v44 = vsel %vm6905_vm7, %v4434_v17, %v4435_v8  ;;  %v3995_v43 = vor.u32 %v3994_v9, %v8058_v5  ;;  %v4442_v23 = vrot.slane %v7800_v57, 5  ;;  %v3977_v25 = vsel %vm6679_vm4, %v3972_v41, %v3976_v6  ;;  %v6546_v11 = vld [vmem:[%s6653_s27 + $0x20] sm:$0x1] }
 0x11b   : > { %v5617_v3 = vcombine.low %v8055_v22, %v8064_v44  ;;  %v4362_v56 = vrot.slane %v6545_v16, 5  ;;  %v8090_v31 = vsel %vm6905_vm7, %v5601_v61, %v4439_v49  ;;  %v4441_v51 = vrot.slane %v4439_v49, 4  ;;  %v5587_v49 = vld [vmem:[%s6653_s27 + $0xb4] sm:$0xe] }
 0x11c   : > { %v5555_v7 = vcombine.low %v3943_v63, %v3953_v2  ;;  %v3996_v17 = vrot.slane %v3995_v43, 4  ;;  %v5602_v41 = vrot.slane %v5586_v28, 9  ;;  %v4446_v6 = vrot.slane %v7803_v34, 5  ;;  %v5575_v2 = vld [vmem:[%s6653_s27 + $0x24] sm:$0xe] }
 0x11d   : > { %6121 = vmatmul.mubr.msk.bf16.gmra.mrb[20].mxu0 %vm687_vm3, %v7902_v24  ;;  %v3985_v24 = vor.u32 %v3984_v18, %v3981_v30  ;;  %v8095_v57 = vsel %vm6905_vm7, %v4441_v51, %v4442_v23  ;;  %v6497_v30 = vld [vmem:[%s6653_s27 + $0x54] sm:$0xff]   ;;  %v5590_v18 = vrot.slane %v5574_v62, 9  ;;  %v4364_v9 = vrot.slane %v4362_v56, 4  ;;  %v6549_v28 = vld [vmem:[%s6653_s27 + $0x2c] sm:$0x1] }
 0x11e   : > { %5969 = vmatmul.mubr.msk.bf16.gmra.mrb[4].mxu1 %vm687_vm3, %v6494_v29  ;;  %6124 = vmatprep.mubr.msk.bf16.mxu0 %vm687_vm3, %v5554_v46  ;;  %v4000_v46 = vrot.slane %v3998_v50, 5  ;;  %v5556_v29 = vcombine.low %v3967_v4, %v3977_v25  ;;  %v5618_v8 = vcombine.low %v8090_v31, %v8095_v57  ;;  %v4449_v63 = vrot.slane %v7813_v48, 5  ;;  %v6547_v50 = vld [vmem:[%s6653_s27 + $0x28] sm:$0xf]  ;;  %v5576_v25 = vld [vmem:[%s6653_s27 + $0x30] sm:$0xe] }
 0x11f   : > { %5972 = vmatprep.mubr.msk.bf16.mxu1 %vm687_vm3, %v6495_v19  ;;  %v3986_v12 = vrot.slane %v3985_v24, 4  ;;  %v4365_v19 = vrot.slane %v6546_v11, 5  ;;  %v4369_v61 = vrot.slane %v6547_v50, 5  ;;  %v8118_v48 = vsel %vm6905_vm7, %v5602_v41, %v4446_v6  ;;  %v6499_v11 = vld [vmem:[%s6653_s27 + $0x6c] sm:$0xff]   ;;  %v8531_v41 = vld [vmem:[#allocation6_spill] sm:$0xff] }
 0x120   : > { %v4001_v34 = vsel %vm6679_vm4, %v3996_v17, %v4000_v46  ;;  %v4448_v24 = vrot.slane %v4446_v6, 4  ;;  %v4363_v43 = vsel %vm6905_vm7, %v5590_v18, %v4362_v56  ;;  %v5591_v51 = vrot.slane %v5575_v2, 9  ;;  %v5588_v50 = vld [vmem:[%s6653_s27 + $0xc0] sm:$0xe]  ;;  %v6563_v31 = vld [vmem:[%s6653_s27 + $0xc8] sm:$0x1] }
 0x121   : > { %v3991_v4 = vsel %vm6679_vm4, %v3986_v12, %v8058_v5  ;;  %v4366_v23 = vsel %vm6905_vm7, %v4364_v9, %v4365_v19  ;;  %v6548_v5 = vld [vmem:[%s6653_s27 + $0x34] sm:$0xf]  ;;  %v6498_v12 = vld [vmem:[%s6653_s27 + $0x60] sm:$0xff]   ;;  %v5592_v18 = vrot.slane %v5576_v25, 9  ;;  %v4456_v9 = vrot.slane %v7927_v35, 5 }
 0x122   : > { %v4376_v16 = vrot.slane %v6548_v5, 5  ;;  %v8129_v62 = vsel %vm6905_vm7, %v4448_v24, %v4449_v63  ;;  %v5557_v46 = vcombine.low %v3991_v4, %v4001_v34  ;;  %v5607_v17 = vcombine.low %v4363_v43, %v4366_v23  ;;  %v5577_v24 = vld [vmem:[%s6653_s27 + $0x3c] sm:$0xe] }
 0x123   : > { %v5619_v56 = vcombine.low %v8118_v48, %v8129_v62  ;;  %v4379_v6 = vrot.slane %v8531_v41, 5  ;;  %v4370_v35 = vsel %vm6905_vm7, %v5591_v51, %v4369_v61  ;;  %v5604_v5 = vrot.slane %v5588_v50, 9 }
 0x124   : > { %v4378_v19 = vrot.slane %v4376_v16, 4  ;;  %v4377_v23 = vsel %vm6905_vm7, %v5592_v18, %v4376_v16  ;;  %v4463_v51 = vrot.slane %v8020_v52, 5  ;;  %v2440_v57 = vshll.u32 %v6563_v31, 16 }
 0x125   : > { %6125 = vmatmul.mubr.msk.bf16.gmra.mrb[24].mxu0 %vm687_vm3, %v5555_v7  ;;  %v5603_v7 = vrot.slane %v5587_v49, 9 }
 0x126   : > { %5973 = vmatmul.mubr.msk.bf16.gmra.mrb[8].mxu1 %vm687_vm3, %v6496_v47  ;;  %6128 = vmatprep.mubr.msk.bf16.mxu0 %vm687_vm3, %v5556_v29  ;;  %v4372_v47 = vrot.slane %v6549_v28, 5  ;;  %v4453_v29 = vrot.slane %v7878_v39, 5  ;;  %v8532_v39 = vld [vmem:[#allocation7_spill] sm:$0xff]  ;;  %v4380_v25 = vsel %vm6905_vm7, %v4378_v19, %v4379_v6  ;;  %v5593_v28 = vrot.slane %v5577_v24, 9 }
 0x127   : > { %5976 = vmatprep.mubr.msk.bf16.mxu1 %vm687_vm3, %v6497_v30  ;;  %v4371_v30 = vrot.slane %v4369_v61, 4  ;;  %v4383_v49 = vrot.slane %v8532_v39, 5  ;;  %v4460_v61 = vrot.slane %v7930_v58, 5  ;;  %v6550_v39 = vld [vmem:[%s6653_s27 + $0x70] sm:$0xf]  ;;  %v4467_v24 = vrot.slane %v8006_v55, 5 }
 0x128   : > { %v8141_v63 = vsel %vm6905_vm7, %v5603_v7, %v4453_v29  ;;  %v4455_v2 = vrot.slane %v4453_v29, 4  ;;  %v5306_v7 = vld [vmem:[%s6653_s27 + $0x6c] sm:$0xf]  ;;  %v8533_v29 = vld [vmem:[#allocation8_spill] sm:$0xff] }
 0x129   : > { %v4373_v34 = vsel %vm6905_vm7, %v4371_v30, %v4372_v47  ;;  %v4385_v47 = vrot.slane %v4383_v49, 4  ;;  %v6500_v30 = vld [vmem:[%s6653_s27 + $0x78] sm:$0xff]   ;;  %v8172_v16 = vsel %vm6905_vm7, %v5604_v5, %v4460_v61  ;;  %v4462_v18 = vrot.slane %v4460_v61, 4 }
 0x12a   : > { %v8148_v4 = vsel %vm6905_vm7, %v4455_v2, %v4456_v9  ;;  %v5609_v9 = vcombine.low %v4377_v23, %v4380_v25  ;;  %v2253_v19 = vshrl.u32 %v5306_v7, 16  ;;  %v2256_v41 = vshll.u32 %v5306_v7, 16 }
 0x12b   : > { %v5620_v43 = vcombine.low %v8141_v63, %v8148_v4  ;;  %v8177_v58 = vsel %vm6905_vm7, %v4462_v18, %v4463_v51  ;;  %v4384_v6 = vsel %vm6905_vm7, %v5593_v28, %v4383_v49  ;;  %v4470_v49 = vrot.slane %v8051_v21, 5  ;;  %v6502_v51 = vld [vmem:[%s6653_s27 + $0x90] sm:$0xff]   ;;  %v6503_v21 = vld [vmem:[%s6653_s27 + $0x9c] sm:$0xff]  }
 0x12c   : > { %v5621_v50 = vcombine.low %v8172_v16, %v8177_v58  ;;  %v2255_v23 = vrot.slane %v2253_v19, 4  ;;  %v2258_v25 = vrot.slane %v2256_v41, 5  ;;  %v4469_v7 = vrot.slane %v4467_v24, 4 }
 0x12d   : > { %6129 = vmatmul.mubr.msk.bf16.gmra.mrb[28].mxu0 %vm687_vm3, %v5557_v46  ;;  %v5608_v46 = vcombine.low %v4370_v35, %v4373_v34  ;;  %v2262_v35 = vshll.u32 %v6550_v39, 16  ;;  %v2266_v34 = vshrl.u32 %v6550_v39, 16 }
 0x12e   : > { %5977 = vmatmul.mubr.msk.bf16.gmra.mrb[12].mxu1 %vm687_vm3, %v6498_v12  ;;  %6134 = vmatprep.mubr.msk.bf16.mxu0 %vm687_vm3, %v5607_v17  ;;  %v4386_v12 = vrot.slane %v8533_v29, 5  ;;  %v5589_v17 = vld [vmem:[%s6653_s27 + $0xcc] sm:$0xe]  ;;  %v8199_v55 = vsel %vm6905_vm7, %v4469_v7, %v4470_v49 }
 0x12f   : > { %5980 = vmatprep.mubr.msk.bf16.mxu1 %vm687_vm3, %v6499_v11  ;;  %v6501_v11 = vld [vmem:[%s6653_s27 + $0x84] sm:$0xff]   ;;  %v5605_v52 = vrot.slane %v5589_v17, 9  ;;  %v2268_v28 = vrot.slane %v2266_v34, 4  ;;  %v6551_v17 = vld [vmem:[%s6653_s27 + $0x74] sm:$0x1] }
 0x130   : > { %v4387_v2 = vsel %vm6905_vm7, %v4385_v47, %v4386_v12  ;;  %v5312_v47 = vld [vmem:[%s6653_s27 + $0x84] sm:$0xf]  ;;  %v2259_v12 = vor.u32 %v2258_v25, %v2255_v23  ;;  %v6505_v34 = vld [vmem:[%s6653_s27 + $0xb4] sm:$0xff]  }
 0x131   : > { %v8194_v5 = vsel %vm6905_vm7, %v5605_v52, %v4467_v24  ;;  %v5610_v61 = vcombine.low %v4384_v6, %v4387_v2  ;;  %v2304_v18 = vshll.u32 %v5312_v47, 16  ;;  %v5315_v6 = vld [vmem:[%s6653_s27 + $0x90] sm:$0xf]  ;;  %v6504_v2 = vld [vmem:[%s6653_s27 + $0xa8] sm:$0xff]  }
 0x132   : > { %v5622_v29 = vcombine.low %v8194_v5, %v8199_v55  ;;  %v2260_v52 = vrot.slane %v2259_v12, 4  ;;  %v2325_v23 = vshrl.u32 %v5315_v6, 16  ;;  %v2328_v25 = vshll.u32 %v5315_v6, 16 }
 0x133   : > { %v2358_v12 = vshll.u32 %v6554_v60, 16 }
 0x134   : > { %v2330_v14 = vrot.slane %v2328_v25, 5  ;;  %v6557_v25 = vld [vmem:[%s6653_s27 + $0xa4] sm:$0x1] }
 0x135   : > { %6135 = vmatmul.mubr.msk.bf16.vlgmr.msra.gmra.mrb[0].mxu0 %vm687_vm3, %v5608_v46  ;;  %v2264_v46 = vrot.slane %v2262_v35, 5  ;;  %v5318_v35 = vld [vmem:[%s6653_s27 + $0x9c] sm:$0xf]  ;;  %v8241_v6 = vrot.slane %v2358_v12, 5 }
 0x136   : > { %5981 = vmatmul.mubr.msk.bf16.gmra.mrb[16].mxu1 %vm687_vm3, %v6500_v30  ;;  %6138 = vmatprep.mubr.msk.bf16.mxu0 %vm687_vm3, %v5609_v9  ;;  %v2272_v30 = vshll.u32 %v6551_v17, 16  ;;  %v2301_v9 = vshrl.u32 %v5312_v47, 16  ;;  %v2352_v47 = vshll.u32 %v5318_v35, 16  ;;  %v6555_v17 = vld [vmem:[%s6653_s27 + $0x8c] sm:$0x1] }
 0x137   : > { %5984 = vmatprep.mubr.msk.bf16.mxu1 %vm687_vm3, %v6501_v11  ;;  %v2269_v13 = vor.u32 %v2268_v28, %v2264_v46  ;;  %v6552_v11 = vld [vmem:[%s6653_s27 + $0x88] sm:$0xf]  ;;  %v2265_v7 = vsel %vm6679_vm4, %v2260_v52, %v2264_v46 }
 0x138   : > { %v2310_v19 = vshll.u32 %v6552_v11, 16  ;;  %v2314_v41 = vshrl.u32 %v6552_v11, 16  ;;  %v2274_v0 = vrot.slane %v2272_v30, 5  ;;  %v2303_v36 = vrot.slane %v2301_v9, 4 }
 0x139   : > { %v2270_v39 = vrot.slane %v2269_v13, 4  ;;  %v2320_v30 = vshll.u32 %v6555_v17, 16  ;;  %v2327_v9 = vrot.slane %v2325_v23, 4  ;;  %v2354_v11 = vrot.slane %v2352_v47, 5 }
 0x13a   : > { %v8218_v24 = vrot.slane %v2310_v19, 5  ;;  %v2316_v49 = vrot.slane %v2314_v41, 4  ;;  %v6506_v19 = vld [vmem:[%s6653_s27 + $0xc0] sm:$0xff]  }
 0x13b   : > { %v2275_v46 = vsel %vm6679_vm4, %v2270_v39, %v2274_v0  ;;  %v5321_v39 = vld [vmem:[%s6653_s27 + $0xa8] sm:$0xf] }
 0x13c   : > { %v2317_v13 = vor.u32 %v2316_v49, %v8218_v24  ;;  %v5339_v41 = vcombine.low %v2265_v7, %v2275_v46  ;;  %v2368_v7 = vshll.u32 %v6557_v25, 16  ;;  %v2376_v45 = vshll.u32 %v5321_v39, 16 }
 0x13d   : > { %6139 = vmatmul.mubr.msk.bf16.gmra.mrb[4].mxu0 %vm687_vm3, %v5610_v61  ;;  %v6553_v61 = vld [vmem:[%s6653_s27 + $0x94] sm:$0xf] }
 0x13e   : > { %5985 = vmatmul.mubr.msk.bf16.gmra.mrb[20].mxu1 %vm687_vm3, %v6502_v51  ;;  %6142 = vmatprep.mubr.msk.bf16.mxu0 %vm687_vm3, %v5611_v10  ;;  %v2306_v10 = vrot.slane %v2304_v18, 5  ;;  %v2334_v51 = vshll.u32 %v6553_v61, 16  ;;  %v2338_v28 = vshrl.u32 %v6553_v61, 16  ;;  %v2318_v0 = vrot.slane %v2317_v13, 4 }
 0x13f   : > { %5988 = vmatprep.mubr.msk.bf16.mxu1 %vm687_vm3, %v6503_v21  ;;  %v2349_v21 = vshrl.u32 %v5318_v35, 16  ;;  %v6556_v35 = vld [vmem:[%s6653_s27 + $0x98] sm:$0x1]  ;;  %v2373_v61 = vshrl.u32 %v5321_v39, 16  ;;  %v5327_v39 = vld [vmem:[%s6653_s27 + $0xc0] sm:$0xf] }
 0x140   : > { %v2307_v15 = vor.u32 %v2306_v10, %v2303_v36  ;;  %v8238_v26 = vrot.slane %v2334_v51, 5  ;;  %v2322_v36 = vrot.slane %v2320_v30, 5  ;;  %v2331_v10 = vor.u32 %v2330_v14, %v2327_v9  ;;  %v5324_v51 = vld [vmem:[%s6653_s27 + $0xb4] sm:$0xf] }
 0x141   : > { %v2351_v18 = vrot.slane %v2349_v21, 4  ;;  %v2386_v21 = vshrl.u32 %v6558_v27, 16  ;;  %v2397_v20 = vshrl.u32 %v5324_v51, 16  ;;  %v2400_v42 = vshll.u32 %v5324_v51, 16 }
 0x142   : > { %v2308_v52 = vrot.slane %v2307_v15, 4  ;;  %v2323_v46 = vsel %vm6679_vm4, %v2318_v0, %v2322_v36  ;;  %v2332_v15 = vrot.slane %v2331_v10, 4  ;;  %v2370_v30 = vrot.slane %v2368_v7, 5 }
 0x143   : > { %v2355_v23 = vor.u32 %v2354_v11, %v2351_v18  ;;  %v2375_v9 = vrot.slane %v2373_v61, 4  ;;  %v2388_v11 = vrot.slane %v2386_v21, 4  ;;  %v6562_v61 = vld [vmem:[%s6653_s27 + $0xbc] sm:$0x1] }
 0x144   : > { %v2313_v47 = vsel %vm6679_vm4, %v2308_v52, %v8218_v24  ;;  %v2337_v0 = vsel %vm6679_vm4, %v2332_v15, %v8238_v26  ;;  %v2416_v22 = vshll.u32 %v6562_v61, 16 }
 0x145   : > { %6143 = vmatmul.mubr.msk.bf16.gmra.mrb[8].mxu0 %vm687_vm3, %v5612_v40  ;;  %v2362_v40 = vshrl.u32 %v6554_v60, 16  ;;  %v2356_v17 = vrot.slane %v2355_v23, 4  ;;  %v5341_v24 = vcombine.low %v2313_v47, %v2323_v46 }
 0x146   : > { %5989 = vmatmul.mubr.msk.bf16.gmra.mrb[24].mxu1 %vm687_vm3, %v6504_v2  ;;  %6146 = vmatprep.mubr.msk.bf16.mxu0 %vm687_vm3, %v5613_v54  ;;  %v2340_v54 = vrot.slane %v2338_v28, 4 }
 0x147   : > { %5992 = vmatprep.mubr.msk.bf16.mxu1 %vm687_vm3, %v6505_v34  ;;  %v2364_v2 = vrot.slane %v2362_v40, 4  ;;  %v2344_v34 = vshll.u32 %v6556_v35, 16  ;;  %v2361_v10 = vsel %vm6679_vm4, %v2356_v17, %v8241_v6  ;;  %v2442_v17 = vrot.slane %v2440_v57, 5 }
 0x148   : > { %v2341_v49 = vor.u32 %v2340_v54, %v8238_v26  ;;  %v2378_v54 = vrot.slane %v2376_v45, 5  ;;  %v6560_v26 = vld [vmem:[%s6653_s27 + $0xb0] sm:$0x1] }
 0x149   : > { %v2365_v28 = vor.u32 %v2364_v2, %v8241_v6  ;;  %v2346_v60 = vrot.slane %v2344_v34, 5  ;;  %v2392_v35 = vshll.u32 %v6560_v26, 16  ;;  %v2421_v34 = vshrl.u32 %v5327_v39, 16 }
 0x14a   : > { %v2342_v13 = vrot.slane %v2341_v49, 4  ;;  %v2379_v38 = vor.u32 %v2378_v54, %v2375_v9  ;;  %v2424_v6 = vshll.u32 %v5327_v39, 16  ;;  %v6561_v49 = vld [vmem:[%s6653_s27 + $0xc4] sm:$0xf] }
 0x14b   : > { %v2366_v14 = vrot.slane %v2365_v28, 4  ;;  %v2430_v23 = vshll.u32 %v6561_v49, 16  ;;  %v2434_v25 = vshrl.u32 %v6561_v49, 16  ;;  %v2394_v45 = vrot.slane %v2392_v35, 5 }
 0x14c   : > { %v2347_v36 = vsel %vm6679_vm4, %v2342_v13, %v2346_v60  ;;  %v2380_v51 = vrot.slane %v2379_v38, 4  ;;  %v2418_v60 = vrot.slane %v2416_v22, 5 }
 0x14d   : > { %6147 = vmatmul.mubr.msk.bf16.gmra.mrb[12].mxu0 %vm687_vm3, %v5614_v53  ;;  %v2382_v53 = vshll.u32 %v6558_v27, 16  ;;  %v2371_v59 = vsel %vm6679_vm4, %v2366_v14, %v2370_v30  ;;  %v5342_v44 = vcombine.low %v2337_v0, %v2347_v36  ;;  %v2423_v27 = vrot.slane %v2421_v34, 4 }
 0x14e   : > { %5993 = vmatmul.mubr.msk.bf16.gmra.mrb[28].mxu1 %vm687_vm3, %v6506_v19  ;;  %6150 = vmatprep.mubr.msk.bf16.mxu0 %vm687_vm3, %v5615_v33  ;;  %v6559_v33 = vld [vmem:[%s6653_s27 + $0xb8] sm:$0xf]  ;;  %v2399_v19 = vrot.slane %v2397_v20, 4  ;;  %v2432_v21 = vrot.slane %v2430_v23, 5  ;;  %v2436_v47 = vrot.slane %v2434_v25, 4 }
 0x14f   : > { %6014 = vmatprep.mubr.msk.bf16.mxu1 %vm687_vm3, %v5339_v41  ;;  %v2406_v12 = vshll.u32 %v6559_v33, 16  ;;  %v2410_v40 = vshrl.u32 %v6559_v33, 16  ;;  %v2384_v18 = vrot.slane %v2382_v53, 5  ;;  %v2402_v41 = vrot.slane %v2400_v42, 5 }
 0x150   : > { %v2426_v53 = vrot.slane %v2424_v6, 5 }
 0x151   : > { %v2408_v52 = vrot.slane %v2406_v12, 5  ;;  %v2412_v2 = vrot.slane %v2410_v40, 4  ;;  %v2385_v20 = vsel %vm6679_vm4, %v2380_v51, %v2384_v18  ;;  %v2437_v12 = vor.u32 %v2436_v47, %v2432_v21 }
 0x152   : > { %v2427_v33 = vor.u32 %v2426_v53, %v2423_v27 }
 0x153   : > { %v2413_v7 = vor.u32 %v2412_v2, %v2408_v52  ;;  %v2438_v13 = vrot.slane %v2437_v12, 4  ;;  %v8344_v2 = vld [vmem:[%s8465_s2] ss:$0 sm:$0xff] }
 0x154   : > { %v2428_v40 = vrot.slane %v2427_v33, 4 }
 0x155   : > { %6151 = vmatmul.mubr.msk.bf16.gmra.mrb[16].mxu0 %vm687_vm3, %v5616_v37  ;;  %v2389_v37 = vor.u32 %v2388_v11, %v2384_v18  ;;  %v2414_v15 = vrot.slane %v2413_v7, 4  ;;  %v2443_v9 = vsel %vm6679_vm4, %v2438_v13, %v2442_v17 }
 0x156   : > { %6015 = vmatmul.mubr.msk.bf16.vlgmr.msra.gmra.mrb[16].mxu1 %vm687_vm3, %v8047_v1  ;;  %6154 = vmatprep.mubr.msk.bf16.mxu0 %vm687_vm3, %v5617_v3  ;;  %v2403_v1 = vor.u32 %v2402_v41, %v2399_v19  ;;  %v5343_v3 = vcombine.low %v2361_v10, %v2371_v59  ;;  %v2433_v30 = vsel %vm6679_vm4, %v2428_v40, %v2432_v21 }
 0x157   : > { %6018 = vmatprep.mubr.msk.bf16.mxu1 %vm687_vm3, %v5341_v24  ;;  %v2390_v28 = vrot.slane %v2389_v37, 4  ;;  %v2419_v48 = vsel %vm6679_vm4, %v2414_v15, %v2418_v60  ;;  %v5346_v14 = vcombine.low %v2433_v30, %v2443_v9 }
 0x158   : > { %v2404_v46 = vrot.slane %v2403_v1, 4 }
 0x159   : > { %v2395_v42 = vsel %vm6679_vm4, %v2390_v28, %v2394_v45 }
 0x15a   : > { %v5344_v62 = vcombine.low %v2385_v20, %v2395_v42 }
 0x15d   : > { %6155 = vmatmul.mubr.msk.bf16.gmra.mrb[20].mxu0 %vm687_vm3, %v5618_v8  ;;  %v2409_v8 = vsel %vm6679_vm4, %v2404_v46, %v2408_v52 }
 0x15e   : > { %6019 = vmatmul.mubr.msk.bf16.gmra.mrb[20].mxu1 %vm687_vm3, %v5342_v44  ;;  %6158 = vmatprep.mubr.msk.bf16.mxu0 %vm687_vm3, %v5619_v56  ;;  %v5345_v56 = vcombine.low %v2409_v8, %v2419_v48 }
 0x15f   : > { %6022 = vmatprep.mubr.msk.bf16.mxu1 %vm687_vm3, %v5343_v3 }
 0x165   : > { %6159 = vmatmul.mubr.msk.bf16.gmra.mrb[24].mxu0 %vm687_vm3, %v5620_v43 }
 0x166   : > { %6023 = vmatmul.mubr.msk.bf16.gmra.mrb[24].mxu1 %vm687_vm3, %v5344_v62  ;;  %6162 = vmatprep.mubr.msk.bf16.mxu0 %vm687_vm3, %v5621_v50 }
 0x167   : > { %6026 = vmatprep.mubr.msk.bf16.mxu1 %vm687_vm3, %v5345_v56 }
 0x16d   : > { %6163 = vmatmul.mubr.msk.bf16.gmra.mrb[28].mxu0 %vm687_vm3, %v5622_v29 }
 0x16e   : > { %6027 = vmatmul.mubr.msk.bf16.gmra.mrb[28].mxu1 %vm687_vm3, %v5346_v14 }
 0x1e9   : > { %v5966_v63 = vpop.f32.mrb[0].mxu1 }
 0x1ea   : > { %v1853_v4 = vpop.f32.mrb[1].mxu1 }
 0x1eb   : > { %v5967_v43 = vpop.f32.mrb[2].mxu1 }
 0x1ec   : > { %v1856_v16 = vpop.f32.mrb[3].mxu1 }
 0x1f1   : > { %v5970_v58 = vpop.f32.mrb[4].mxu1 }
 0x1f2   : > { %v1869_v50 = vpop.f32.mrb[5].mxu1 }
 0x1f3   : > { %v5971_v54 = vpop.f32.mrb[6].mxu1 }
 0x1f4   : > { %v1872_v18 = vpop.f32.mrb[7].mxu1 }
 0x1f9   : > { %v5974_v11 = vpop.f32.mrb[8].mxu1 }
 0x1fa   : > { %v1885_v32 = vpop.f32.mrb[9].mxu1 }
 0x1fb   : > { %v8329_v24 = vpop.f32.mrb[10].mxu1 }
 0x1fc   : > { %v8331_v19 = vpop.f32.mrb[11].mxu1 }
 0x201   : > { %v8333_v5 = vpop.f32.mrb[12].mxu1 }
 0x202   : > { %v8335_v55 = vpop.f32.mrb[13].mxu1 }
 0x203   : > { %v8337_v29 = vpop.f32.mrb[14].mxu1 }
 0x204   : > { %v8339_v41 = vpop.f32.mrb[15].mxu1 }
 0x208   : > { %v6136_v52 = vpop.f32.mrb[0].mxu0 }
 0x209   : > { %v6168_v39 = vadd.f32 %v6136_v52, %v5966_v63  ;;  %v4607_v0 = vpop.f32.mrb[1].mxu0 }
 0x20a   : > { %v6169_v36 = vadd.f32 %v4607_v0, %v1853_v4  ;;  %v6137_v10 = vpop.f32.mrb[2].mxu0 }
 0x20b   : > { %v4775_v59 = vadd.f32 %v6168_v39, %v8344_v2  ;;  %v6170_v38 = vadd.f32 %v6137_v10, %v5967_v43  ;;  %v4610_v37 = vpop.f32.mrb[3].mxu0 }
 0x20c   : > { %v4773_v26 = vadd.f32 %v6169_v36, %v8344_v2  ;;  %v6171_v35 = vadd.f32 %v4610_v37, %v1856_v16 }
 0x20d   : > { %v4807_v34 = vmax.f32 %v4775_v59, 0.0  ;;  %v4776_v6 = vadd.f32 %v6170_v38, %v8344_v2 }
 0x20e   : > { %v4805_v49 = vmax.f32 %v4773_v26, 0.0  ;;  %v4774_v23 = vadd.f32 %v6171_v35, %v8344_v2 }
 0x20f   : > { %v5677_v25 = vpack.c.bf16 %v4807_v34, %v4807_v34  ;;  %v4808_v1 = vmax.f32 %v4776_v6, 0.0 }
 0x210   : > { %v5675_v7 = vpack.c.bf16 %v4805_v49, %v4805_v49  ;;  %v4806_v61 = vmax.f32 %v4774_v23, 0.0  ;;  %v6140_v22 = vpop.f32.mrb[4].mxu0 }
 0x211   : > { %4968 = vst.msk [vmem:[%s8353_s24 + $0x8] sm:$0xf] %vm4965_vm8, %v5677_v25  ;;  %v5678_v44 = vpack.c.bf16 %v4808_v1, %v4808_v1  ;;  %v6172_v3 = vadd.f32 %v6140_v22, %v5970_v58  ;;  %v4623_v51 = vpop.f32.mrb[5].mxu0 }
 0x212   : > { %4966 = vst.msk [vmem:[%s8353_s24] sm:$0xf] %vm4965_vm8, %v5675_v7  ;;  %v5676_v28 = vpack.c.bf16 %v4806_v61, %v4806_v61  ;;  %v6173_v45 = vadd.f32 %v4623_v51, %v1869_v50  ;;  %v6141_v27 = vpop.f32.mrb[6].mxu0 }
 0x213   : > { %4969 = vst.msk [vmem:[%s8353_s24 + $0xc] sm:$0xf] %vm4965_vm8, %v5678_v44  ;;  %v4779_v53 = vadd.f32 %v6172_v3, %v8344_v2  ;;  %v6174_v21 = vadd.f32 %v6141_v27, %v5971_v54  ;;  %v4626_v47 = vpop.f32.mrb[7].mxu0 }
 0x214   : > { %4967 = vst.msk [vmem:[%s8353_s24 + $0x4] sm:$0xf] %vm4965_vm8, %v5676_v28  ;;  %v4777_v46 = vadd.f32 %v6173_v45, %v8344_v2  ;;  %v6175_v15 = vadd.f32 %v4626_v47, %v1872_v18 }
 0x215   : > { %v4811_v60 = vmax.f32 %v4779_v53, 0.0  ;;  %v4780_v20 = vadd.f32 %v6174_v21, %v8344_v2 }
 0x216   : > { %v4809_v42 = vmax.f32 %v4777_v46, 0.0  ;;  %v4778_v33 = vadd.f32 %v6175_v15, %v8344_v2 }
 0x217   : > { %v5681_v12 = vpack.c.bf16 %v4811_v60, %v4811_v60  ;;  %v4812_v31 = vmax.f32 %v4780_v20, 0.0 }
 0x218   : > { %v5679_v57 = vpack.c.bf16 %v4809_v42, %v4809_v42  ;;  %v4810_v8 = vmax.f32 %v4778_v33, 0.0  ;;  %v6144_v48 = vpop.f32.mrb[8].mxu0 }
 0x219   : > { %4972 = vst.msk [vmem:[%s8353_s24 + $0x18] sm:$0xf] %vm4965_vm8, %v5681_v12  ;;  %v5682_v62 = vpack.c.bf16 %v4812_v31, %v4812_v31  ;;  %v6176_v56 = vadd.f32 %v6144_v48, %v5974_v11  ;;  %v4639_v40 = vpop.f32.mrb[9].mxu0 }
 0x21a   : > { %4970 = vst.msk [vmem:[%s8353_s24 + $0x10] sm:$0xf] %vm4965_vm8, %v5679_v57  ;;  %v5680_v13 = vpack.c.bf16 %v4810_v8, %v4810_v8  ;;  %v6177_v17 = vadd.f32 %v4639_v40, %v1885_v32  ;;  %v6145_v30 = vpop.f32.mrb[10].mxu0 }
 0x21b   : > { %4973 = vst.msk [vmem:[%s8353_s24 + $0x1c] sm:$0xf] %vm4965_vm8, %v5682_v62  ;;  %v4783_v9 = vadd.f32 %v6176_v56, %v8344_v2  ;;  %v6178_v14 = vadd.f32 %v6145_v30, %v8329_v24  ;;  %v4642_v63 = vpop.f32.mrb[11].mxu0 }
 0x21c   : > { %4971 = vst.msk [vmem:[%s8353_s24 + $0x14] sm:$0xf] %vm4965_vm8, %v5680_v13  ;;  %v4781_v4 = vadd.f32 %v6177_v17, %v8344_v2  ;;  %v6179_v43 = vadd.f32 %v4642_v63, %v8331_v19 }
 0x21d   : > { %v4815_v16 = vmax.f32 %v4783_v9, 0.0  ;;  %v4784_v58 = vadd.f32 %v6178_v14, %v8344_v2 }
 0x21e   : > { %v4813_v50 = vmax.f32 %v4781_v4, 0.0  ;;  %v4782_v54 = vadd.f32 %v6179_v43, %v8344_v2 }
 0x21f   : > { %v5685_v18 = vpack.c.bf16 %v4815_v16, %v4815_v16  ;;  %v4816_v11 = vmax.f32 %v4784_v58, 0.0 }
 0x220   : > { %v5683_v32 = vpack.c.bf16 %v4813_v50, %v4813_v50  ;;  %v4814_v24 = vmax.f32 %v4782_v54, 0.0  ;;  %v6148_v52 = vpop.f32.mrb[12].mxu0 }
 0x221   : > { %4976 = vst.msk [vmem:[%s8353_s24 + $0x28] sm:$0xf] %vm4965_vm8, %v5685_v18  ;;  %v5686_v39 = vpack.c.bf16 %v4816_v11, %v4816_v11  ;;  %v6180_v0 = vadd.f32 %v6148_v52, %v8333_v5  ;;  %v4655_v36 = vpop.f32.mrb[13].mxu0 }
 0x222   : > { %4974 = vst.msk [vmem:[%s8353_s24 + $0x20] sm:$0xf] %vm4965_vm8, %v5683_v32  ;;  %v5684_v19 = vpack.c.bf16 %v4814_v24, %v4814_v24  ;;  %v6181_v10 = vadd.f32 %v4655_v36, %v8335_v55  ;;  %v6149_v59 = vpop.f32.mrb[14].mxu0 }
 0x223   : > { %4977 = vst.msk [vmem:[%s8353_s24 + $0x2c] sm:$0xf] %vm4965_vm8, %v5686_v39  ;;  %v4787_v38 = vadd.f32 %v6180_v0, %v8344_v2  ;;  %v6182_v37 = vadd.f32 %v6149_v59, %v8337_v29  ;;  %v4658_v26 = vpop.f32.mrb[15].mxu0 }
 0x224   : > { %4975 = vst.msk [vmem:[%s8353_s24 + $0x24] sm:$0xf] %vm4965_vm8, %v5684_v19  ;;  %v4785_v5 = vadd.f32 %v6181_v10, %v8344_v2  ;;  %v6183_v35 = vadd.f32 %v4658_v26, %v8339_v41 }
 0x225   : > { %v4819_v34 = vmax.f32 %v4787_v38, 0.0  ;;  %v4788_v6 = vadd.f32 %v6182_v37, %v8344_v2 }
 0x226   : > { %v4817_v55 = vmax.f32 %v4785_v5, 0.0  ;;  %v4786_v49 = vadd.f32 %v6183_v35, %v8344_v2 }
 0x227   : > { %v5689_v23 = vpack.c.bf16 %v4819_v34, %v4819_v34  ;;  %v4820_v25 = vmax.f32 %v4788_v6, 0.0 }
 0x228   : > { %v5687_v1 = vpack.c.bf16 %v4817_v55, %v4817_v55  ;;  %v4818_v29 = vmax.f32 %v4786_v49, 0.0  ;;  %v6152_v7 = vpop.f32.mrb[16].mxu0 }
 0x229   : > { %4980 = vst.msk [vmem:[%s8353_s24 + $0x38] sm:$0xf] %vm4965_vm8, %v5689_v23  ;;  %v5690_v61 = vpack.c.bf16 %v4820_v25, %v4820_v25  ;;  %v6016_v22 = vpop.f32.mrb[16].mxu1  ;;  %v4671_v44 = vpop.f32.mrb[17].mxu0 }
 0x22a   : > { %4978 = vst.msk [vmem:[%s8353_s24 + $0x30] sm:$0xf] %vm4965_vm8, %v5687_v1  ;;  %v5688_v41 = vpack.c.bf16 %v4818_v29, %v4818_v29  ;;  %v6184_v3 = vadd.f32 %v6152_v7, %v6016_v22  ;;  %v2643_v51 = vpop.f32.mrb[17].mxu1  ;;  %v6153_v28 = vpop.f32.mrb[18].mxu0 }
 0x22b   : > { %4981 = vst.msk [vmem:[%s8353_s24 + $0x3c] sm:$0xf] %vm4965_vm8, %v5690_v61  ;;  %v6185_v45 = vadd.f32 %v4671_v44, %v2643_v51  ;;  %v6017_v27 = vpop.f32.mrb[18].mxu1  ;;  %v4674_v53 = vpop.f32.mrb[19].mxu0 }
 0x22c   : > { %4979 = vst.msk [vmem:[%s8353_s24 + $0x34] sm:$0xf] %vm4965_vm8, %v5688_v41  ;;  %v4791_v21 = vadd.f32 %v6184_v3, %v8344_v2  ;;  %v6186_v47 = vadd.f32 %v6153_v28, %v6017_v27  ;;  %v2646_v46 = vpop.f32.mrb[19].mxu1 }
 0x22d   : > { %v4789_v15 = vadd.f32 %v6185_v45, %v8344_v2  ;;  %v6187_v60 = vadd.f32 %v4674_v53, %v2646_v46 }
 0x22e   : > { %v4823_v20 = vmax.f32 %v4791_v21, 0.0  ;;  %v4792_v42 = vadd.f32 %v6186_v47, %v8344_v2 }
 0x22f   : > { %v4821_v33 = vmax.f32 %v4789_v15, 0.0  ;;  %v4790_v12 = vadd.f32 %v6187_v60, %v8344_v2 }
 0x230   : > { %v5693_v31 = vpack.c.bf16 %v4823_v20, %v4823_v20  ;;  %v4824_v57 = vmax.f32 %v4792_v42, 0.0  ;;  %v6156_v8 = vpop.f32.mrb[20].mxu0 }
 0x231   : > { %v5691_v48 = vpack.c.bf16 %v4821_v33, %v4821_v33  ;;  %v4822_v62 = vmax.f32 %v4790_v12, 0.0  ;;  %v6020_v56 = vpop.f32.mrb[20].mxu1  ;;  %v4687_v40 = vpop.f32.mrb[21].mxu0 }
 0x232   : > { %4984 = vst.msk [vmem:[%s8353_s24 + $0x48] sm:$0xf] %vm4965_vm8, %v5693_v31  ;;  %v5694_v13 = vpack.c.bf16 %v4824_v57, %v4824_v57  ;;  %v6188_v17 = vadd.f32 %v6156_v8, %v6020_v56  ;;  %v2659_v30 = vpop.f32.mrb[21].mxu1  ;;  %v6157_v9 = vpop.f32.mrb[22].mxu0 }
 0x233   : > { %4982 = vst.msk [vmem:[%s8353_s24 + $0x40] sm:$0xf] %vm4965_vm8, %v5691_v48  ;;  %v5692_v14 = vpack.c.bf16 %v4822_v62, %v4822_v62  ;;  %v6189_v63 = vadd.f32 %v4687_v40, %v2659_v30  ;;  %v6021_v4 = vpop.f32.mrb[22].mxu1  ;;  %v4690_v43 = vpop.f32.mrb[23].mxu0 }
 0x234   : > { %4985 = vst.msk [vmem:[%s8353_s24 + $0x4c] sm:$0xf] %vm4965_vm8, %v5694_v13  ;;  %v4795_v16 = vadd.f32 %v6188_v17, %v8344_v2  ;;  %v6190_v58 = vadd.f32 %v6157_v9, %v6021_v4  ;;  %v2662_v50 = vpop.f32.mrb[23].mxu1 }
 0x235   : > { %4983 = vst.msk [vmem:[%s8353_s24 + $0x44] sm:$0xf] %vm4965_vm8, %v5692_v14  ;;  %v4793_v54 = vadd.f32 %v6189_v63, %v8344_v2  ;;  %v6191_v18 = vadd.f32 %v4690_v43, %v2662_v50 }
 0x236   : > { %v4827_v11 = vmax.f32 %v4795_v16, 0.0  ;;  %v4796_v32 = vadd.f32 %v6190_v58, %v8344_v2 }
 0x237   : > { %v4825_v24 = vmax.f32 %v4793_v54, 0.0  ;;  %v4794_v52 = vadd.f32 %v6191_v18, %v8344_v2 }
 0x238   : > { %v5697_v39 = vpack.c.bf16 %v4827_v11, %v4827_v11  ;;  %v4828_v0 = vmax.f32 %v4796_v32, 0.0  ;;  %v6160_v36 = vpop.f32.mrb[24].mxu0 }
 0x239   : > { %v5695_v19 = vpack.c.bf16 %v4825_v24, %v4825_v24  ;;  %v4826_v10 = vmax.f32 %v4794_v52, 0.0  ;;  %v6024_v59 = vpop.f32.mrb[24].mxu1  ;;  %v4703_v38 = vpop.f32.mrb[25].mxu0 }
 0x23a   : > { %4988 = vst.msk [vmem:[%s8353_s24 + $0x58] sm:$0xf] %vm4965_vm8, %v5697_v39  ;;  %v5698_v37 = vpack.c.bf16 %v4828_v0, %v4828_v0  ;;  %v6192_v26 = vadd.f32 %v6160_v36, %v6024_v59  ;;  %v2675_v5 = vpop.f32.mrb[25].mxu1  ;;  %v6161_v35 = vpop.f32.mrb[26].mxu0 }
 0x23b   : > { %4986 = vst.msk [vmem:[%s8353_s24 + $0x50] sm:$0xf] %vm4965_vm8, %v5695_v19  ;;  %v5696_v34 = vpack.c.bf16 %v4826_v10, %v4826_v10  ;;  %v6193_v6 = vadd.f32 %v4703_v38, %v2675_v5  ;;  %v6025_v55 = vpop.f32.mrb[26].mxu1  ;;  %v4706_v49 = vpop.f32.mrb[27].mxu0 }
 0x23c   : > { %4989 = vst.msk [vmem:[%s8353_s24 + $0x5c] sm:$0xf] %vm4965_vm8, %v5698_v37  ;;  %v4799_v23 = vadd.f32 %v6192_v26, %v8344_v2  ;;  %v6194_v25 = vadd.f32 %v6161_v35, %v6025_v55  ;;  %v2678_v1 = vpop.f32.mrb[27].mxu1 }
 0x23d   : > { %4987 = vst.msk [vmem:[%s8353_s24 + $0x54] sm:$0xf] %vm4965_vm8, %v5696_v34  ;;  %v4797_v29 = vadd.f32 %v6193_v6, %v8344_v2  ;;  %v6195_v7 = vadd.f32 %v4706_v49, %v2678_v1 }
 0x23e   : > { %v4831_v61 = vmax.f32 %v4799_v23, 0.0  ;;  %v4800_v22 = vadd.f32 %v6194_v25, %v8344_v2 }
 0x23f   : > { %v4829_v44 = vmax.f32 %v4797_v29, 0.0  ;;  %v4798_v41 = vadd.f32 %v6195_v7, %v8344_v2 }
 0x240   : > { %v5701_v3 = vpack.c.bf16 %v4831_v61, %v4831_v61  ;;  %v4832_v51 = vmax.f32 %v4800_v22, 0.0  ;;  %v6164_v28 = vpop.f32.mrb[28].mxu0 }
 0x241   : > { %v5699_v45 = vpack.c.bf16 %v4829_v44, %v4829_v44  ;;  %v4830_v27 = vmax.f32 %v4798_v41, 0.0  ;;  %v6028_v53 = vpop.f32.mrb[28].mxu1  ;;  %v4719_v21 = vpop.f32.mrb[29].mxu0 }
 0x242   : > { %4992 = vst.msk [vmem:[%s8353_s24 + $0x68] sm:$0xf] %vm4965_vm8, %v5701_v3  ;;  %v5702_v47 = vpack.c.bf16 %v4832_v51, %v4832_v51  ;;  %v6196_v46 = vadd.f32 %v6164_v28, %v6028_v53  ;;  %v2691_v15 = vpop.f32.mrb[29].mxu1  ;;  %v6165_v60 = vpop.f32.mrb[30].mxu0 }
 0x243   : > { %4990 = vst.msk [vmem:[%s8353_s24 + $0x60] sm:$0xf] %vm4965_vm8, %v5699_v45  ;;  %v5700_v20 = vpack.c.bf16 %v4830_v27, %v4830_v27  ;;  %v6197_v42 = vadd.f32 %v4719_v21, %v2691_v15  ;;  %v6029_v33 = vpop.f32.mrb[30].mxu1  ;;  %v4722_v12 = vpop.f32.mrb[31].mxu0 }
 0x244   : > { %4993 = vst.msk [vmem:[%s8353_s24 + $0x6c] sm:$0xf] %vm4965_vm8, %v5702_v47  ;;  %v4803_v31 = vadd.f32 %v6196_v46, %v8344_v2  ;;  %v6198_v57 = vadd.f32 %v6165_v60, %v6029_v33  ;;  %v2694_v8 = vpop.f32.mrb[31].mxu1 }
 0x245   : > { %4991 = vst.msk [vmem:[%s8353_s24 + $0x64] sm:$0xf] %vm4965_vm8, %v5700_v20  ;;  %v4801_v48 = vadd.f32 %v6197_v42, %v8344_v2  ;;  %v6199_v62 = vadd.f32 %v4722_v12, %v2694_v8 }
 0x246   : > { %v4835_v56 = vmax.f32 %v4803_v31, 0.0  ;;  %v4804_v40 = vadd.f32 %v6198_v57, %v8344_v2 }
 0x247   : > { %v4833_v13 = vmax.f32 %v4801_v48, 0.0  ;;  %v4802_v17 = vadd.f32 %v6199_v62, %v8344_v2 }
 0x248   : > { %v5705_v30 = vpack.c.bf16 %v4835_v56, %v4835_v56  ;;  %v4836_v9 = vmax.f32 %v4804_v40, 0.0 }
 0x249   : > { %v5703_v14 = vpack.c.bf16 %v4833_v13, %v4833_v13  ;;  %v4834_v63 = vmax.f32 %v4802_v17, 0.0 }
 0x24a   : > { %4996 = vst.msk [vmem:[%s8353_s24 + $0x78] sm:$0xf] %vm4965_vm8, %v5705_v30  ;;  %v5706_v4 = vpack.c.bf16 %v4836_v9, %v4836_v9 }
 0x24b   : > { %4994 = vst.msk [vmem:[%s8353_s24 + $0x70] sm:$0xf] %vm4965_vm8, %v5703_v14  ;;  %v5704_v43 = vpack.c.bf16 %v4834_v63, %v4834_v63 }
 0x24c   : > { %4997 = vst.msk [vmem:[%s8353_s24 + $0x7c] sm:$0xf] %vm4965_vm8, %v5706_v4 }
 0x24d   : > { %4995 = vst.msk [vmem:[%s8353_s24 + $0x74] sm:$0xf] %vm4965_vm8, %v5704_v43 }
 0x24e PF: > { %s13_s14 = sadd.s32 1, %s6586_s14   ;;  %s8534_s12 = smov %s6582_s13 }
 0x24f   : > { %p10_p5 = scmp.ge.s32.totalorder %s13_s14, 4   ;;  %s8535_s13 = smov %s8537_s15 }
 0x251   :  { %12 = sbr.rel (!%p10_p5) target bundleno = 2 (0x2), region = 73 }

</bundles_post_ra>
